<compile_context>
chip_gen: v6e
topology: v6e:2x2x1
jax: 0.10.0
libtpu: 0.0.40
codegen_flags: <defaults>
</compile_context>

<pallas_src>
import jax
import jax.numpy as jnp
from jax.experimental import pallas as pl
from jax.experimental.pallas import tpu as pltpu


# ---------------------------------------------------------------------------
# Fused Pallas kernel: conv3x3+BN+ReLU -> conv3x3+BN+ReLU -> bilinear x2
# ---------------------------------------------------------------------------
def _up_fused_kernel(xpad_ref, w1_ref, b1_ref, w2_ref, b2_ref, mt_ref,
                     o_ref, y1p_ref):
    # xpad_ref: (1, H+2, W+2, Cin)   haloed channels-last input tile (one batch element)
    # w1_ref  : (9, Cin, Cout)       BN-scale-folded conv1 taps
    # b1_ref  : (1, Cout)            BN shift 1
    # w2_ref  : (9, Cout, Cpad)      BN-scale-folded conv2 taps, Cout padded to Cpad (lane-dense)
    # b2_ref  : (1, Cpad)            BN shift 2 (zero-padded)
    # mt_ref  : (H*W, 4*H*W)         kron(A_h, A_w)^T  (x2 bilinear, align_corners=False)
    # o_ref   : (1, Cout, 4*H*W)     lane-dense output slab (reshaped to NCHW by the wrapper)
    # y1p_ref : (H+2, W+2, Cout)     VMEM scratch holding the zero-padded conv1 output
    H = xpad_ref.shape[1] - 2
    W = xpad_ref.shape[2] - 2
    Cin = xpad_ref.shape[3]
    Cout = w1_ref.shape[2]
    Cpad = w2_ref.shape[2]
    taps = [(ky, kx) for ky in range(3) for kx in range(3)]

    # ---- conv1 (3x3, pad 1) + folded-BN + ReLU: 9 shifted-tap matmuls ----
    acc1 = None
    for t, (ky, kx) in enumerate(taps):
        tap = xpad_ref[0, ky:ky + H, kx:kx + W, :].reshape(H * W, Cin)
        d = jnp.dot(tap, w1_ref[t], preferred_element_type=jnp.float32)
        acc1 = d if acc1 is None else acc1 + d
    y1 = jnp.maximum(acc1 + b1_ref[...], 0.0)                       # (H*W, Cout)

    # ---- keep the zero-padded intermediate in VMEM (never touches HBM) ----
    y1p_ref[...] = jnp.zeros(y1p_ref.shape, jnp.float32)
    y1p_ref[1:H + 1, 1:W + 1, :] = y1.reshape(H, W, Cout)

    # ---- conv2 (3x3, pad 1) + folded-BN + ReLU (lane-dense Cpad channels) ----
    acc2 = None
    for t, (ky, kx) in enumerate(taps):
        tap = y1p_ref[ky:ky + H, kx:kx + W, :].reshape(H * W, Cout)
        d = jnp.dot(tap, w2_ref[t], preferred_element_type=jnp.float32)
        acc2 = d if acc2 is None else acc2 + d
    y2 = jnp.maximum(acc2 + b2_ref[...], 0.0)                       # (H*W, Cpad)

    # ---- bilinear x2 upsample: one lane-dense matmul over the flattened spatial dim ----
    y2t = jnp.transpose(y2)                                         # (Cpad, H*W), native-tile xpose
    out = jnp.dot(y2t[0:Cout, :], mt_ref[...],
                  preferred_element_type=jnp.float32)               # (Cout, 4*H*W)
    o_ref[0] = out.astype(o_ref.dtype)


# ---------------------------------------------------------------------------
# Host-side parameter / layout plumbing
# ---------------------------------------------------------------------------
def add_coords_nchw(x):
    """AddCoords(if_normalize=False): cat [x, coord_i(w), coord_j(h)] on dim=1."""
    b, c, h, w = x.shape
    ci = jnp.broadcast_to(jnp.arange(w, dtype=x.dtype).reshape(1, 1, 1, w), (b, 1, h, w))
    cj = jnp.broadcast_to(jnp.arange(h, dtype=x.dtype).reshape(1, 1, h, 1), (b, 1, h, w))
    return jnp.concatenate([x, ci, cj], axis=1)


def bilinear_matrix(n_in, scale=2):
    """PyTorch F.interpolate(mode='bilinear', align_corners=False) 1-D matrix (n_out, n_in)."""
    n_out = n_in * scale
    o = jnp.arange(n_out, dtype=jnp.float32)
    src = jnp.maximum((o + 0.5) / scale - 0.5, 0.0)
    i0 = jnp.floor(src).astype(jnp.int32)
    i1 = jnp.minimum(i0 + 1, n_in - 1)
    frac = src - i0.astype(jnp.float32)
    oi = jnp.arange(n_out, dtype=jnp.int32)
    A = jnp.zeros((n_out, n_in), jnp.float32)
    A = A.at[oi, i0].add(1.0 - frac)
    A = A.at[oi, i1].add(frac)
    return A


def fold_bn(gamma, beta, mean, var, eps=1e-5):
    scale = gamma / jnp.sqrt(var + eps)
    shift = beta - mean * scale
    return scale, shift


def prep_conv(w_torch, gamma, beta, mean, var, eps=1e-5):
    """(Cout,Cin,3,3) conv weight + BN stats -> BN-scaled taps (9,Cin,Cout), shift (1,Cout)."""
    scale, shift = fold_bn(gamma, beta, mean, var, eps)
    Cout, Cin = w_torch.shape[0], w_torch.shape[1]
    w = jnp.transpose(w_torch, (2, 3, 1, 0)).reshape(9, Cin, Cout)   # tap-major (ky,kx), then cin
    return w * scale.reshape(1, 1, Cout), shift.reshape(1, Cout)


def up_forward(x_nchw, params, if_add_coord=True):
    """Fused Pallas implementation of Up.forward. Input/output NCHW."""
    x = add_coords_nchw(x_nchw) if if_add_coord else x_nchw
    B, _, H, W = x.shape
    Cin = params["w1"].shape[1]
    Cout = params["w1"].shape[2]
    cpad = -(-Cout // 128) * 128                     # lane-dense conv-2 channel padding

    # channels-last + 1-px zero halo; only this small raw input pays an extra HBM pass
    xpad = jnp.pad(jnp.transpose(x, (0, 2, 3, 1)), ((0, 0), (1, 1), (1, 1), (0, 0)))

    # zero-pad conv-2 output channels so vregs / the y2 transpose are fully lane-dense
    w2p = jnp.pad(params["w2"], ((0, 0), (0, 0), (0, cpad - Cout)))
    b2p = jnp.pad(params["b2"], ((0, 0), (0, cpad - Cout)))

    # x2 bilinear (align_corners=False) as a single matmul on the flattened spatial dim
    mt = jnp.kron(bilinear_matrix(H), bilinear_matrix(W)).T          # (H*W, 4*H*W)

    out_flat = pl.pallas_call(
        _up_fused_kernel,
        out_shape=jax.ShapeDtypeStruct((B, Cout, 4 * H * W), jnp.float32),
        grid=(B,),
        in_specs=[
            pl.BlockSpec((1, H + 2, W + 2, Cin), lambda b: (b, 0, 0, 0)),
            pl.BlockSpec((9, Cin, Cout), lambda b: (0, 0, 0)),
            pl.BlockSpec((1, Cout), lambda b: (0, 0)),
            pl.BlockSpec((9, Cout, cpad), lambda b: (0, 0, 0)),
            pl.BlockSpec((1, cpad), lambda b: (0, 0)),
            pl.BlockSpec((H * W, 4 * H * W), lambda b: (0, 0)),
        ],
        out_specs=pl.BlockSpec((1, Cout, 4 * H * W), lambda b: (b, 0, 0)),
        scratch_shapes=[pltpu.VMEM((H + 2, W + 2, Cout), jnp.float32)],
        compiler_params=pltpu.CompilerParams(dimension_semantics=("parallel",)),
    )(xpad, params["w1"], params["b1"], w2p, b2p, mt)

    return out_flat.reshape(B, Cout, 2 * H, 2 * W)


# ---------------------------------------------------------------------------
# Pure-JAX reference (identical math) for a correctness check
# ---------------------------------------------------------------------------
def im2col_nhwc(x_nhwc):
    B, H, W, C = x_nhwc.shape
    xp = jnp.pad(x_nhwc, ((0, 0), (1, 1), (1, 1), (0, 0)))
    cols = [xp[:, ky:ky + H, kx:kx + W, :] for ky in range(3) for kx in range(3)]
    return jnp.concatenate(cols, axis=-1).reshape(B, H * W, 9 * C)


def up_forward_ref(x_nchw, params, if_add_coord=True):
    x = add_coords_nchw(x_nchw) if if_add_coord else x_nchw
    B, C, H, W = x.shape
    Cout = params["w1"].shape[2]
    hp = jax.lax.Precision.HIGHEST
    w1m = params["w1"].reshape(-1, Cout)
    w2m = params["w2"].reshape(-1, Cout)
    xh = jnp.transpose(x, (0, 2, 3, 1))
    p1 = im2col_nhwc(xh)
    y1 = jnp.maximum(jnp.matmul(p1, w1m, precision=hp) + params["b1"], 0.0)
    p2 = im2col_nhwc(y1.reshape(B, H, W, Cout))
    y2 = jnp.maximum(jnp.matmul(p2, w2m, precision=hp) + params["b2"], 0.0)
    y2 = jnp.transpose(y2.reshape(B, H, W, Cout), (0, 3, 1, 2))
    a_h, a_w = bilinear_matrix(H), bilinear_matrix(W)
    return jnp.einsum("oh,bchw,pw->bcop", a_h, y2, a_w, precision=hp)


# ---------------------------------------------------------------------------
if __name__ == "__main__":
    B, Cin, H, W, Cout = 2, 4, 16, 16, 8
    if_add_coord = True
    cin_eff = Cin + (2 if if_add_coord else 0)

    key = jax.random.PRNGKey(0)
    ks = jax.random.split(key, 8)
    x = jax.random.normal(ks[0], (B, Cin, H, W), jnp.float32)

    # Conv weights, PyTorch layout (Cout, Cin, 3, 3); no conv bias since bn='batch'
    w1 = jax.random.normal(ks[1], (Cout, cin_eff, 3, 3), jnp.float32) * 0.1
    w2 = jax.random.normal(ks[2], (Cout, Cout, 3, 3), jnp.float32) * 0.1

    # BatchNorm2d affine params + running stats (inference-mode fold)
    g1 = 1.0 + 0.1 * jax.random.normal(ks[3], (Cout,), jnp.float32)
    be1 = 0.1 * jax.random.normal(ks[4], (Cout,), jnp.float32)
    m1 = 0.1 * jax.random.normal(ks[5], (Cout,), jnp.float32)
    v1 = jnp.ones((Cout,), jnp.float32)
    g2 = 1.0 + 0.1 * jax.random.normal(ks[6], (Cout,), jnp.float32)
    be2 = 0.1 * jax.random.normal(ks[7], (Cout,), jnp.float32)
    m2 = jnp.zeros((Cout,), jnp.float32)
    v2 = jnp.ones((Cout,), jnp.float32)

    w1s, b1 = prep_conv(w1, g1, be1, m1, v1)
    w2s, b2 = prep_conv(w2, g2, be2, m2, v2)
    params = dict(w1=w1s, b1=b1, w2=w2s, b2=b2)

    out = jax.block_until_ready(up_forward(x, params, if_add_coord))
    ref = up_forward_ref(x, params, if_add_coord)

    assert out.shape == (B, Cout, 2 * H, 2 * W), out.shape
    assert bool(jnp.all(jnp.isfinite(out)))
    assert bool(jnp.allclose(out, ref, atol=1e-3, rtol=1e-3)), \
        float(jnp.max(jnp.abs(out - ref)))

    print("KERNEL_OK")
</pallas_src>

<mosaic_0001>
module attributes {stable_mosaic.version = 11 : i64} {
  func.func @_up_fused_kernel(%arg0: i32, %arg1: memref<1x18x18x6xf32, #tpu.memory_space<vmem>>, %arg2: memref<9x6x8xf32, #tpu.memory_space<vmem>>, %arg3: memref<1x8xf32, #tpu.memory_space<vmem>>, %arg4: memref<9x8x128xf32, #tpu.memory_space<vmem>>, %arg5: memref<1x128xf32, #tpu.memory_space<vmem>>, %arg6: memref<256x1024xf32, #tpu.memory_space<vmem>>, %arg7: memref<1x8x1024xf32, #tpu.memory_space<vmem>>, %arg8: memref<18x18x8xf32, #tpu.memory_space<vmem>>) attributes {dimension_semantics = [#tpu.dimension_semantics<parallel>], iteration_bounds = array<i64: 2>, scalar_prefetch = 0 : i64, scratch_operands = 1 : i64, tpu.core_type = #tpu.core_type<tc>, window_params = [{transform_indices = @transform_0, window_bounds = array<i64: 1, 18, 18, 6>}, {pipeline_mode = #tpu.pipeline_mode<synchronous>, transform_indices = @transform_1, window_bounds = array<i64: 9, 6, 8>}, {pipeline_mode = #tpu.pipeline_mode<synchronous>, transform_indices = @transform_2, window_bounds = array<i64: 1, 8>}, {pipeline_mode = #tpu.pipeline_mode<synchronous>, transform_indices = @transform_3, window_bounds = array<i64: 9, 8, 128>}, {pipeline_mode = #tpu.pipeline_mode<synchronous>, transform_indices = @transform_4, window_bounds = array<i64: 1, 128>}, {pipeline_mode = #tpu.pipeline_mode<synchronous>, transform_indices = @transform_5, window_bounds = array<i64: 256, 1024>}, {transform_indices = @transform_6, window_bounds = array<i64: 1, 8, 1024>}]} {
    %c0 = arith.constant 0 : index
    %c0_0 = arith.constant 0 : index
    %c0_1 = arith.constant 0 : index
    %c0_2 = arith.constant 0 : index
    %0 = vector.load %arg1[%c0, %c0_0, %c0_1, %c0_2] : memref<1x18x18x6xf32, #tpu.memory_space<vmem>>, vector<1x16x16x6xf32>
    %1 = vector.shape_cast %0 : vector<1x16x16x6xf32> to vector<16x16x6xf32>
    %2 = vector.shape_cast %1 : vector<16x16x6xf32> to vector<256x6xf32>
    %c0_3 = arith.constant 0 : index
    %c0_4 = arith.constant 0 : index
    %c0_5 = arith.constant 0 : index
    %3 = vector.load %arg2[%c0_3, %c0_4, %c0_5] : memref<9x6x8xf32, #tpu.memory_space<vmem>>, vector<1x6x8xf32>
    %4 = vector.shape_cast %3 : vector<1x6x8xf32> to vector<6x8xf32>
    %cst = arith.constant dense<0.000000e+00> : vector<256x8xf32>
    %5 = tpu.matmul %2, %4, %cst {dimension_numbers = #tpu.dot_dimension_numbers<[1], [0], [0], [1], [0, 0, 1, 1], [], []>} : vector<256x6xf32>, vector<6x8xf32>, vector<256x8xf32> -> vector<256x8xf32>
    %c0_6 = arith.constant 0 : index
    %c0_7 = arith.constant 0 : index
    %c1 = arith.constant 1 : index
    %c0_8 = arith.constant 0 : index
    %6 = vector.load %arg1[%c0_6, %c0_7, %c1, %c0_8] : memref<1x18x18x6xf32, #tpu.memory_space<vmem>>, vector<1x16x16x6xf32>
    %7 = vector.shape_cast %6 : vector<1x16x16x6xf32> to vector<16x16x6xf32>
    %8 = vector.shape_cast %7 : vector<16x16x6xf32> to vector<256x6xf32>
    %c1_9 = arith.constant 1 : index
    %c0_10 = arith.constant 0 : index
    %c0_11 = arith.constant 0 : index
    %9 = vector.load %arg2[%c1_9, %c0_10, %c0_11] : memref<9x6x8xf32, #tpu.memory_space<vmem>>, vector<1x6x8xf32>
    %10 = vector.shape_cast %9 : vector<1x6x8xf32> to vector<6x8xf32>
    %cst_12 = arith.constant dense<0.000000e+00> : vector<256x8xf32>
    %11 = tpu.matmul %8, %10, %cst_12 {dimension_numbers = #tpu.dot_dimension_numbers<[1], [0], [0], [1], [0, 0, 1, 1], [], []>} : vector<256x6xf32>, vector<6x8xf32>, vector<256x8xf32> -> vector<256x8xf32>
    %12 = arith.addf %5, %11 : vector<256x8xf32>
    %c0_13 = arith.constant 0 : index
    %c0_14 = arith.constant 0 : index
    %c2 = arith.constant 2 : index
    %c0_15 = arith.constant 0 : index
    %13 = vector.load %arg1[%c0_13, %c0_14, %c2, %c0_15] : memref<1x18x18x6xf32, #tpu.memory_space<vmem>>, vector<1x16x16x6xf32>
    %14 = vector.shape_cast %13 : vector<1x16x16x6xf32> to vector<16x16x6xf32>
    %15 = vector.shape_cast %14 : vector<16x16x6xf32> to vector<256x6xf32>
    %c2_16 = arith.constant 2 : index
    %c0_17 = arith.constant 0 : index
    %c0_18 = arith.constant 0 : index
    %16 = vector.load %arg2[%c2_16, %c0_17, %c0_18] : memref<9x6x8xf32, #tpu.memory_space<vmem>>, vector<1x6x8xf32>
    %17 = vector.shape_cast %16 : vector<1x6x8xf32> to vector<6x8xf32>
    %cst_19 = arith.constant dense<0.000000e+00> : vector<256x8xf32>
    %18 = tpu.matmul %15, %17, %cst_19 {dimension_numbers = #tpu.dot_dimension_numbers<[1], [0], [0], [1], [0, 0, 1, 1], [], []>} : vector<256x6xf32>, vector<6x8xf32>, vector<256x8xf32> -> vector<256x8xf32>
    %19 = arith.addf %12, %18 : vector<256x8xf32>
    %c0_20 = arith.constant 0 : index
    %c1_21 = arith.constant 1 : index
    %c0_22 = arith.constant 0 : index
    %c0_23 = arith.constant 0 : index
    %20 = vector.load %arg1[%c0_20, %c1_21, %c0_22, %c0_23] : memref<1x18x18x6xf32, #tpu.memory_space<vmem>>, vector<1x16x16x6xf32>
    %21 = vector.shape_cast %20 : vector<1x16x16x6xf32> to vector<16x16x6xf32>
    %22 = vector.shape_cast %21 : vector<16x16x6xf32> to vector<256x6xf32>
    %c3 = arith.constant 3 : index
    %c0_24 = arith.constant 0 : index
    %c0_25 = arith.constant 0 : index
    %23 = vector.load %arg2[%c3, %c0_24, %c0_25] : memref<9x6x8xf32, #tpu.memory_space<vmem>>, vector<1x6x8xf32>
    %24 = vector.shape_cast %23 : vector<1x6x8xf32> to vector<6x8xf32>
    %cst_26 = arith.constant dense<0.000000e+00> : vector<256x8xf32>
    %25 = tpu.matmul %22, %24, %cst_26 {dimension_numbers = #tpu.dot_dimension_numbers<[1], [0], [0], [1], [0, 0, 1, 1], [], []>} : vector<256x6xf32>, vector<6x8xf32>, vector<256x8xf32> -> vector<256x8xf32>
    %26 = arith.addf %19, %25 : vector<256x8xf32>
    %c0_27 = arith.constant 0 : index
    %c1_28 = arith.constant 1 : index
    %c1_29 = arith.constant 1 : index
    %c0_30 = arith.constant 0 : index
    %27 = vector.load %arg1[%c0_27, %c1_28, %c1_29, %c0_30] : memref<1x18x18x6xf32, #tpu.memory_space<vmem>>, vector<1x16x16x6xf32>
    %28 = vector.shape_cast %27 : vector<1x16x16x6xf32> to vector<16x16x6xf32>
    %29 = vector.shape_cast %28 : vector<16x16x6xf32> to vector<256x6xf32>
    %c4 = arith.constant 4 : index
    %c0_31 = arith.constant 0 : index
    %c0_32 = arith.constant 0 : index
    %30 = vector.load %arg2[%c4, %c0_31, %c0_32] : memref<9x6x8xf32, #tpu.memory_space<vmem>>, vector<1x6x8xf32>
    %31 = vector.shape_cast %30 : vector<1x6x8xf32> to vector<6x8xf32>
    %cst_33 = arith.constant dense<0.000000e+00> : vector<256x8xf32>
    %32 = tpu.matmul %29, %31, %cst_33 {dimension_numbers = #tpu.dot_dimension_numbers<[1], [0], [0], [1], [0, 0, 1, 1], [], []>} : vector<256x6xf32>, vector<6x8xf32>, vector<256x8xf32> -> vector<256x8xf32>
    %33 = arith.addf %26, %32 : vector<256x8xf32>
    %c0_34 = arith.constant 0 : index
    %c1_35 = arith.constant 1 : index
    %c2_36 = arith.constant 2 : index
    %c0_37 = arith.constant 0 : index
    %34 = vector.load %arg1[%c0_34, %c1_35, %c2_36, %c0_37] : memref<1x18x18x6xf32, #tpu.memory_space<vmem>>, vector<1x16x16x6xf32>
    %35 = vector.shape_cast %34 : vector<1x16x16x6xf32> to vector<16x16x6xf32>
    %36 = vector.shape_cast %35 : vector<16x16x6xf32> to vector<256x6xf32>
    %c5 = arith.constant 5 : index
    %c0_38 = arith.constant 0 : index
    %c0_39 = arith.constant 0 : index
    %37 = vector.load %arg2[%c5, %c0_38, %c0_39] : memref<9x6x8xf32, #tpu.memory_space<vmem>>, vector<1x6x8xf32>
    %38 = vector.shape_cast %37 : vector<1x6x8xf32> to vector<6x8xf32>
    %cst_40 = arith.constant dense<0.000000e+00> : vector<256x8xf32>
    %39 = tpu.matmul %36, %38, %cst_40 {dimension_numbers = #tpu.dot_dimension_numbers<[1], [0], [0], [1], [0, 0, 1, 1], [], []>} : vector<256x6xf32>, vector<6x8xf32>, vector<256x8xf32> -> vector<256x8xf32>
    %40 = arith.addf %33, %39 : vector<256x8xf32>
    %c0_41 = arith.constant 0 : index
    %c2_42 = arith.constant 2 : index
    %c0_43 = arith.constant 0 : index
    %c0_44 = arith.constant 0 : index
    %41 = vector.load %arg1[%c0_41, %c2_42, %c0_43, %c0_44] : memref<1x18x18x6xf32, #tpu.memory_space<vmem>>, vector<1x16x16x6xf32>
    %42 = vector.shape_cast %41 : vector<1x16x16x6xf32> to vector<16x16x6xf32>
    %43 = vector.shape_cast %42 : vector<16x16x6xf32> to vector<256x6xf32>
    %c6 = arith.constant 6 : index
    %c0_45 = arith.constant 0 : index
    %c0_46 = arith.constant 0 : index
    %44 = vector.load %arg2[%c6, %c0_45, %c0_46] : memref<9x6x8xf32, #tpu.memory_space<vmem>>, vector<1x6x8xf32>
    %45 = vector.shape_cast %44 : vector<1x6x8xf32> to vector<6x8xf32>
    %cst_47 = arith.constant dense<0.000000e+00> : vector<256x8xf32>
    %46 = tpu.matmul %43, %45, %cst_47 {dimension_numbers = #tpu.dot_dimension_numbers<[1], [0], [0], [1], [0, 0, 1, 1], [], []>} : vector<256x6xf32>, vector<6x8xf32>, vector<256x8xf32> -> vector<256x8xf32>
    %47 = arith.addf %40, %46 : vector<256x8xf32>
    %c0_48 = arith.constant 0 : index
    %c2_49 = arith.constant 2 : index
    %c1_50 = arith.constant 1 : index
    %c0_51 = arith.constant 0 : index
    %48 = vector.load %arg1[%c0_48, %c2_49, %c1_50, %c0_51] : memref<1x18x18x6xf32, #tpu.memory_space<vmem>>, vector<1x16x16x6xf32>
    %49 = vector.shape_cast %48 : vector<1x16x16x6xf32> to vector<16x16x6xf32>
    %50 = vector.shape_cast %49 : vector<16x16x6xf32> to vector<256x6xf32>
    %c7 = arith.constant 7 : index
    %c0_52 = arith.constant 0 : index
    %c0_53 = arith.constant 0 : index
    %51 = vector.load %arg2[%c7, %c0_52, %c0_53] : memref<9x6x8xf32, #tpu.memory_space<vmem>>, vector<1x6x8xf32>
    %52 = vector.shape_cast %51 : vector<1x6x8xf32> to vector<6x8xf32>
    %cst_54 = arith.constant dense<0.000000e+00> : vector<256x8xf32>
    %53 = tpu.matmul %50, %52, %cst_54 {dimension_numbers = #tpu.dot_dimension_numbers<[1], [0], [0], [1], [0, 0, 1, 1], [], []>} : vector<256x6xf32>, vector<6x8xf32>, vector<256x8xf32> -> vector<256x8xf32>
    %54 = arith.addf %47, %53 : vector<256x8xf32>
    %c0_55 = arith.constant 0 : index
    %c2_56 = arith.constant 2 : index
    %c2_57 = arith.constant 2 : index
    %c0_58 = arith.constant 0 : index
    %55 = vector.load %arg1[%c0_55, %c2_56, %c2_57, %c0_58] : memref<1x18x18x6xf32, #tpu.memory_space<vmem>>, vector<1x16x16x6xf32>
    %56 = vector.shape_cast %55 : vector<1x16x16x6xf32> to vector<16x16x6xf32>
    %57 = vector.shape_cast %56 : vector<16x16x6xf32> to vector<256x6xf32>
    %c8 = arith.constant 8 : index
    %c0_59 = arith.constant 0 : index
    %c0_60 = arith.constant 0 : index
    %58 = vector.load %arg2[%c8, %c0_59, %c0_60] : memref<9x6x8xf32, #tpu.memory_space<vmem>>, vector<1x6x8xf32>
    %59 = vector.shape_cast %58 : vector<1x6x8xf32> to vector<6x8xf32>
    %cst_61 = arith.constant dense<0.000000e+00> : vector<256x8xf32>
    %60 = tpu.matmul %57, %59, %cst_61 {dimension_numbers = #tpu.dot_dimension_numbers<[1], [0], [0], [1], [0, 0, 1, 1], [], []>} : vector<256x6xf32>, vector<6x8xf32>, vector<256x8xf32> -> vector<256x8xf32>
    %61 = arith.addf %54, %60 : vector<256x8xf32>
    %c0_62 = arith.constant 0 : index
    %c0_63 = arith.constant 0 : index
    %62 = vector.load %arg3[%c0_62, %c0_63] : memref<1x8xf32, #tpu.memory_space<vmem>>, vector<1x8xf32>
    %63 = vector.broadcast %62 : vector<1x8xf32> to vector<256x8xf32>
    %64 = arith.addf %61, %63 : vector<256x8xf32>
    %cst_64 = arith.constant 0.000000e+00 : f32
    %65 = vector.broadcast %cst_64 : f32 to vector<256x8xf32>
    %66 = arith.maximumf %64, %65 : vector<256x8xf32>
    %cst_65 = arith.constant 0.000000e+00 : f32
    %67 = vector.broadcast %cst_65 : f32 to vector<18x18x8xf32>
    %c0_66 = arith.constant 0 : index
    %c0_67 = arith.constant 0 : index
    %c0_68 = arith.constant 0 : index
    %68 = vector.load %arg8[%c0_66, %c0_67, %c0_68] : memref<18x18x8xf32, #tpu.memory_space<vmem>>, vector<18x18x8xf32>
    tpu.vector_store %arg8[%c0_66, %c0_67, %c0_68], %67 {strides = array<i32>} : memref<18x18x8xf32, #tpu.memory_space<vmem>>, vector<18x18x8xf32>,
    %69 = vector.shape_cast %66 : vector<256x8xf32> to vector<16x16x8xf32>
    %c1_69 = arith.constant 1 : index
    %c1_70 = arith.constant 1 : index
    %c0_71 = arith.constant 0 : index
    %70 = vector.load %arg8[%c1_69, %c1_70, %c0_71] : memref<18x18x8xf32, #tpu.memory_space<vmem>>, vector<16x16x8xf32>
    tpu.vector_store %arg8[%c1_69, %c1_70, %c0_71], %69 {strides = array<i32>} : memref<18x18x8xf32, #tpu.memory_space<vmem>>, vector<16x16x8xf32>,
    %c0_72 = arith.constant 0 : index
    %c0_73 = arith.constant 0 : index
    %c0_74 = arith.constant 0 : index
    %71 = vector.load %arg8[%c0_72, %c0_73, %c0_74] : memref<18x18x8xf32, #tpu.memory_space<vmem>>, vector<16x16x8xf32>
    %72 = vector.shape_cast %71 : vector<16x16x8xf32> to vector<256x8xf32>
    %c0_75 = arith.constant 0 : index
    %c0_76 = arith.constant 0 : index
    %c0_77 = arith.constant 0 : index
    %73 = vector.load %arg4[%c0_75, %c0_76, %c0_77] : memref<9x8x128xf32, #tpu.memory_space<vmem>>, vector<1x8x128xf32>
    %74 = vector.shape_cast %73 : vector<1x8x128xf32> to vector<8x128xf32>
    %cst_78 = arith.constant dense<0.000000e+00> : vector<256x128xf32>
    %75 = tpu.matmul %72, %74, %cst_78 {dimension_numbers = #tpu.dot_dimension_numbers<[1], [0], [0], [1], [0, 0, 1, 1], [], []>} : vector<256x8xf32>, vector<8x128xf32>, vector<256x128xf32> -> vector<256x128xf32>
    %c0_79 = arith.constant 0 : index
    %c1_80 = arith.constant 1 : index
    %c0_81 = arith.constant 0 : index
    %76 = vector.load %arg8[%c0_79, %c1_80, %c0_81] : memref<18x18x8xf32, #tpu.memory_space<vmem>>, vector<16x16x8xf32>
    %77 = vector.shape_cast %76 : vector<16x16x8xf32> to vector<256x8xf32>
    %c1_82 = arith.constant 1 : index
    %c0_83 = arith.constant 0 : index
    %c0_84 = arith.constant 0 : index
    %78 = vector.load %arg4[%c1_82, %c0_83, %c0_84] : memref<9x8x128xf32, #tpu.memory_space<vmem>>, vector<1x8x128xf32>
    %79 = vector.shape_cast %78 : vector<1x8x128xf32> to vector<8x128xf32>
    %cst_85 = arith.constant dense<0.000000e+00> : vector<256x128xf32>
    %80 = tpu.matmul %77, %79, %cst_85 {dimension_numbers = #tpu.dot_dimension_numbers<[1], [0], [0], [1], [0, 0, 1, 1], [], []>} : vector<256x8xf32>, vector<8x128xf32>, vector<256x128xf32> -> vector<256x128xf32>
    %81 = arith.addf %75, %80 : vector<256x128xf32>
    %c0_86 = arith.constant 0 : index
    %c2_87 = arith.constant 2 : index
    %c0_88 = arith.constant 0 : index
    %82 = vector.load %arg8[%c0_86, %c2_87, %c0_88] : memref<18x18x8xf32, #tpu.memory_space<vmem>>, vector<16x16x8xf32>
    %83 = vector.shape_cast %82 : vector<16x16x8xf32> to vector<256x8xf32>
    %c2_89 = arith.constant 2 : index
    %c0_90 = arith.constant 0 : index
    %c0_91 = arith.constant 0 : index
    %84 = vector.load %arg4[%c2_89, %c0_90, %c0_91] : memref<9x8x128xf32, #tpu.memory_space<vmem>>, vector<1x8x128xf32>
    %85 = vector.shape_cast %84 : vector<1x8x128xf32> to vector<8x128xf32>
    %cst_92 = arith.constant dense<0.000000e+00> : vector<256x128xf32>
    %86 = tpu.matmul %83, %85, %cst_92 {dimension_numbers = #tpu.dot_dimension_numbers<[1], [0], [0], [1], [0, 0, 1, 1], [], []>} : vector<256x8xf32>, vector<8x128xf32>, vector<256x128xf32> -> vector<256x128xf32>
    %87 = arith.addf %81, %86 : vector<256x128xf32>
    %c1_93 = arith.constant 1 : index
    %c0_94 = arith.constant 0 : index
    %c0_95 = arith.constant 0 : index
    %88 = vector.load %arg8[%c1_93, %c0_94, %c0_95] : memref<18x18x8xf32, #tpu.memory_space<vmem>>, vector<16x16x8xf32>
    %89 = vector.shape_cast %88 : vector<16x16x8xf32> to vector<256x8xf32>
    %c3_96 = arith.constant 3 : index
    %c0_97 = arith.constant 0 : index
    %c0_98 = arith.constant 0 : index
    %90 = vector.load %arg4[%c3_96, %c0_97, %c0_98] : memref<9x8x128xf32, #tpu.memory_space<vmem>>, vector<1x8x128xf32>
    %91 = vector.shape_cast %90 : vector<1x8x128xf32> to vector<8x128xf32>
    %cst_99 = arith.constant dense<0.000000e+00> : vector<256x128xf32>
    %92 = tpu.matmul %89, %91, %cst_99 {dimension_numbers = #tpu.dot_dimension_numbers<[1], [0], [0], [1], [0, 0, 1, 1], [], []>} : vector<256x8xf32>, vector<8x128xf32>, vector<256x128xf32> -> vector<256x128xf32>
    %93 = arith.addf %87, %92 : vector<256x128xf32>
    %c1_100 = arith.constant 1 : index
    %c1_101 = arith.constant 1 : index
    %c0_102 = arith.constant 0 : index
    %94 = vector.load %arg8[%c1_100, %c1_101, %c0_102] : memref<18x18x8xf32, #tpu.memory_space<vmem>>, vector<16x16x8xf32>
    %95 = vector.shape_cast %94 : vector<16x16x8xf32> to vector<256x8xf32>
    %c4_103 = arith.constant 4 : index
    %c0_104 = arith.constant 0 : index
    %c0_105 = arith.constant 0 : index
    %96 = vector.load %arg4[%c4_103, %c0_104, %c0_105] : memref<9x8x128xf32, #tpu.memory_space<vmem>>, vector<1x8x128xf32>
    %97 = vector.shape_cast %96 : vector<1x8x128xf32> to vector<8x128xf32>
    %cst_106 = arith.constant dense<0.000000e+00> : vector<256x128xf32>
    %98 = tpu.matmul %95, %97, %cst_106 {dimension_numbers = #tpu.dot_dimension_numbers<[1], [0], [0], [1], [0, 0, 1, 1], [], []>} : vector<256x8xf32>, vector<8x128xf32>, vector<256x128xf32> -> vector<256x128xf32>
    %99 = arith.addf %93, %98 : vector<256x128xf32>
    %c1_107 = arith.constant 1 : index
    %c2_108 = arith.constant 2 : index
    %c0_109 = arith.constant 0 : index
    %100 = vector.load %arg8[%c1_107, %c2_108, %c0_109] : memref<18x18x8xf32, #tpu.memory_space<vmem>>, vector<16x16x8xf32>
    %101 = vector.shape_cast %100 : vector<16x16x8xf32> to vector<256x8xf32>
    %c5_110 = arith.constant 5 : index
    %c0_111 = arith.constant 0 : index
    %c0_112 = arith.constant 0 : index
    %102 = vector.load %arg4[%c5_110, %c0_111, %c0_112] : memref<9x8x128xf32, #tpu.memory_space<vmem>>, vector<1x8x128xf32>
    %103 = vector.shape_cast %102 : vector<1x8x128xf32> to vector<8x128xf32>
    %cst_113 = arith.constant dense<0.000000e+00> : vector<256x128xf32>
    %104 = tpu.matmul %101, %103, %cst_113 {dimension_numbers = #tpu.dot_dimension_numbers<[1], [0], [0], [1], [0, 0, 1, 1], [], []>} : vector<256x8xf32>, vector<8x128xf32>, vector<256x128xf32> -> vector<256x128xf32>
    %105 = arith.addf %99, %104 : vector<256x128xf32>
    %c2_114 = arith.constant 2 : index
    %c0_115 = arith.constant 0 : index
    %c0_116 = arith.constant 0 : index
    %106 = vector.load %arg8[%c2_114, %c0_115, %c0_116] : memref<18x18x8xf32, #tpu.memory_space<vmem>>, vector<16x16x8xf32>
    %107 = vector.shape_cast %106 : vector<16x16x8xf32> to vector<256x8xf32>
    %c6_117 = arith.constant 6 : index
    %c0_118 = arith.constant 0 : index
    %c0_119 = arith.constant 0 : index
    %108 = vector.load %arg4[%c6_117, %c0_118, %c0_119] : memref<9x8x128xf32, #tpu.memory_space<vmem>>, vector<1x8x128xf32>
    %109 = vector.shape_cast %108 : vector<1x8x128xf32> to vector<8x128xf32>
    %cst_120 = arith.constant dense<0.000000e+00> : vector<256x128xf32>
    %110 = tpu.matmul %107, %109, %cst_120 {dimension_numbers = #tpu.dot_dimension_numbers<[1], [0], [0], [1], [0, 0, 1, 1], [], []>} : vector<256x8xf32>, vector<8x128xf32>, vector<256x128xf32> -> vector<256x128xf32>
    %111 = arith.addf %105, %110 : vector<256x128xf32>
    %c2_121 = arith.constant 2 : index
    %c1_122 = arith.constant 1 : index
    %c0_123 = arith.constant 0 : index
    %112 = vector.load %arg8[%c2_121, %c1_122, %c0_123] : memref<18x18x8xf32, #tpu.memory_space<vmem>>, vector<16x16x8xf32>
    %113 = vector.shape_cast %112 : vector<16x16x8xf32> to vector<256x8xf32>
    %c7_124 = arith.constant 7 : index
    %c0_125 = arith.constant 0 : index
    %c0_126 = arith.constant 0 : index
    %114 = vector.load %arg4[%c7_124, %c0_125, %c0_126] : memref<9x8x128xf32, #tpu.memory_space<vmem>>, vector<1x8x128xf32>
    %115 = vector.shape_cast %114 : vector<1x8x128xf32> to vector<8x128xf32>
    %cst_127 = arith.constant dense<0.000000e+00> : vector<256x128xf32>
    %116 = tpu.matmul %113, %115, %cst_127 {dimension_numbers = #tpu.dot_dimension_numbers<[1], [0], [0], [1], [0, 0, 1, 1], [], []>} : vector<256x8xf32>, vector<8x128xf32>, vector<256x128xf32> -> vector<256x128xf32>
    %117 = arith.addf %111, %116 : vector<256x128xf32>
    %c2_128 = arith.constant 2 : index
    %c2_129 = arith.constant 2 : index
    %c0_130 = arith.constant 0 : index
    %118 = vector.load %arg8[%c2_128, %c2_129, %c0_130] : memref<18x18x8xf32, #tpu.memory_space<vmem>>, vector<16x16x8xf32>
    %119 = vector.shape_cast %118 : vector<16x16x8xf32> to vector<256x8xf32>
    %c8_131 = arith.constant 8 : index
    %c0_132 = arith.constant 0 : index
    %c0_133 = arith.constant 0 : index
    %120 = vector.load %arg4[%c8_131, %c0_132, %c0_133] : memref<9x8x128xf32, #tpu.memory_space<vmem>>, vector<1x8x128xf32>
    %121 = vector.shape_cast %120 : vector<1x8x128xf32> to vector<8x128xf32>
    %cst_134 = arith.constant dense<0.000000e+00> : vector<256x128xf32>
    %122 = tpu.matmul %119, %121, %cst_134 {dimension_numbers = #tpu.dot_dimension_numbers<[1], [0], [0], [1], [0, 0, 1, 1], [], []>} : vector<256x8xf32>, vector<8x128xf32>, vector<256x128xf32> -> vector<256x128xf32>
    %123 = arith.addf %117, %122 : vector<256x128xf32>
    %c0_135 = arith.constant 0 : index
    %c0_136 = arith.constant 0 : index
    %124 = vector.load %arg5[%c0_135, %c0_136] : memref<1x128xf32, #tpu.memory_space<vmem>>, vector<1x128xf32>
    %125 = vector.broadcast %124 : vector<1x128xf32> to vector<256x128xf32>
    %126 = arith.addf %123, %125 : vector<256x128xf32>
    %cst_137 = arith.constant 0.000000e+00 : f32
    %127 = vector.broadcast %cst_137 : f32 to vector<256x128xf32>
    %128 = arith.maximumf %126, %127 : vector<256x128xf32>
    %129 = tpu.transpose %128, [1, 0] : vector<256x128xf32> -> vector<128x256xf32>
    %130 = vector.extract_strided_slice %129 {offsets = [0, 0], sizes = [8, 256], strides = [1, 1]} : vector<128x256xf32> to vector<8x256xf32>
    %c0_138 = arith.constant 0 : index
    %c0_139 = arith.constant 0 : index
    %131 = vector.load %arg6[%c0_138, %c0_139] : memref<256x1024xf32, #tpu.memory_space<vmem>>, vector<256x1024xf32>
    %cst_140 = arith.constant dense<0.000000e+00> : vector<8x1024xf32>
    %132 = tpu.matmul %130, %131, %cst_140 {dimension_numbers = #tpu.dot_dimension_numbers<[1], [0], [0], [1], [0, 0, 1, 1], [], []>} : vector<8x256xf32>, vector<256x1024xf32>, vector<8x1024xf32> -> vector<8x1024xf32>
    %c0_141 = arith.constant 0 : index
    %c0_142 = arith.constant 0 : index
    %c0_143 = arith.constant 0 : index
    %133 = vector.load %arg7[%c0_141, %c0_142, %c0_143] : memref<1x8x1024xf32, #tpu.memory_space<vmem>>, vector<1x8x1024xf32>
    %134 = vector.shape_cast %133 : vector<1x8x1024xf32> to vector<8x1024xf32>
    %135 = vector.shape_cast %132 : vector<8x1024xf32> to vector<1x8x1024xf32>
    tpu.vector_store %arg7[%c0_141, %c0_142, %c0_143], %135 {strides = array<i32>} : memref<1x8x1024xf32, #tpu.memory_space<vmem>>, vector<1x8x1024xf32>,
    return
  }
  func.func @transform_0(%arg0: i32) -> (i32, i32, i32, i32) {
    %c0_i32 = arith.constant 0 : i32
    %c0_i32_0 = arith.constant 0 : i32
    %c0_i32_1 = arith.constant 0 : i32
    %c0_i32_2 = arith.constant 0 : i32
    return %arg0, %c0_i32, %c0_i32_0, %c0_i32_1 : i32, i32, i32, i32
  }
  func.func @transform_1(%arg0: i32) -> (i32, i32, i32) {
    %c0_i32 = arith.constant 0 : i32
    %c0_i32_0 = arith.constant 0 : i32
    %c0_i32_1 = arith.constant 0 : i32
    %c0_i32_2 = arith.constant 0 : i32
    return %c0_i32, %c0_i32_0, %c0_i32_1 : i32, i32, i32
  }
  func.func @transform_2(%arg0: i32) -> (i32, i32) {
    %c0_i32 = arith.constant 0 : i32
    %c0_i32_0 = arith.constant 0 : i32
    %c0_i32_1 = arith.constant 0 : i32
    return %c0_i32, %c0_i32_0 : i32, i32
  }
  func.func @transform_3(%arg0: i32) -> (i32, i32, i32) {
    %c0_i32 = arith.constant 0 : i32
    %c0_i32_0 = arith.constant 0 : i32
    %c0_i32_1 = arith.constant 0 : i32
    %c0_i32_2 = arith.constant 0 : i32
    return %c0_i32, %c0_i32_0, %c0_i32_1 : i32, i32, i32
  }
  func.func @transform_4(%arg0: i32) -> (i32, i32) {
    %c0_i32 = arith.constant 0 : i32
    %c0_i32_0 = arith.constant 0 : i32
    %c0_i32_1 = arith.constant 0 : i32
    return %c0_i32, %c0_i32_0 : i32, i32
  }
  func.func @transform_5(%arg0: i32) -> (i32, i32) {
    %c0_i32 = arith.constant 0 : i32
    %c0_i32_0 = arith.constant 0 : i32
    %c0_i32_1 = arith.constant 0 : i32
    return %c0_i32, %c0_i32_0 : i32, i32
  }
  func.func @transform_6(%arg0: i32) -> (i32, i32, i32) {
    %c0_i32 = arith.constant 0 : i32
    %c0_i32_0 = arith.constant 0 : i32
    %c0_i32_1 = arith.constant 0 : i32
    return %arg0, %c0_i32, %c0_i32_0 : i32, i32, i32
  }
}

</mosaic_0001>

<bundles_post_ra>
// kernel: tpu_custom_call.1
= control target key start
LH: loop header
LB: loop body
LE: loop exit
PB: predicated region body
PF: predicated region fallthrough
CT: control target
= control target key end

     0   :  { %11 = vsyncpa [#allocation4], 0  ;;  %s13806_s0 = inlined_call_operand.vmem [shape: f32[2,18,18,6], index: 0, kind: input, shape index: {}]   ;;  %s13807_s1 = inlined_call_operand.vmem [shape: f32[9,6,8], index: 1, kind: input, shape index: {}]   ;;  %s13808_s2 = inlined_call_operand.vmem [shape: f32[1,8], index: 2, kind: input, shape index: {}]   ;;  %s13809_s3 = inlined_call_operand.vmem [shape: f32[9,8,128], index: 3, kind: input, shape index: {}]   ;;  %s13810_s4 = inlined_call_operand.vmem [shape: f32[1,128], index: 4, kind: input, shape index: {}]   ;;  %s13811_s5 = inlined_call_operand.hbm [shape: f32[256,1024], index: 5, kind: input, shape index: {}]   ;;  %s13812_s6 = inlined_call_operand.hbm [shape: f32[2,8,1024], index: 6, kind: output, shape index: {}]  }
   0x1   :  { %12 = vsyncpa [#allocation5], 0 }
   0x2   :  { %14 = vsyncpa [#allocation5 + $0x1], 0  ;;  %s10588_s21 = smov 0   ;;  %s10590_s22 = smov 0  }
   0x3   :  { %s10592_s23 = smov 0   ;;  %s10594_s24 = smov 0  }
   0x4 LB: > { %s10609_s25 = sadd.s32 4294967295, %s10546_s24   ;;  %s8062_s26 = sadd.s32 4294967294, %s10546_s24   ;;  %s10546_s24 = sphi %s10594_s24, %s14249_s24   ;;  %s10542_s23 = sphi %s10592_s23, %s14248_s23   ;;  %s10538_s22 = sphi %s10590_s22, %s14247_s22   ;;  %s10534_s21 = sphi %s10588_s21, %s14246_s21  }
   0x5   : > { %s10613_s27 = sadd.s32 1, %s10546_s24   ;;  %s158_s28 = sadd.s32 1, %s10542_s23 }
   0x6   : > { %s155_s29 = ssub.s32 %s10546_s24, %s10613_s27  ;;  %p168_p0 = scmp.ne.s32.totalorder %s10542_s23, %s10538_s22 }
   0x7   : > { %p156_p1 = scmp.eq.s32.totalorder %s155_s29, 0  ;;  %p169_p2 = scmp.eq.s32.totalorder %s10609_s25, 1 }
   0x8   : > { %p174_p3 = scmp.ne.s32.totalorder %s10538_s22, %s10534_s21  ;;  %p175_p4 = scmp.eq.s32.totalorder %s8062_s26, 1 }
   0x9   : > { %s10624_s30 = scalar_select %p156_p1, %s10542_s23, %s158_s28  }
   0xa   : > { %p10626_p5 = por %p169_p2, %p168_p0  ;;  %p10630_p6 = por %p175_p4, %p174_p3 }
   0xb   : > { %p8063_p7 = scmp.ge.s32.totalorder %s10546_s24, 1  ;;  %p182_p8 = scmp.lt.s32.totalorder %s10546_s24, 3 }
   0xc   : > { %s13881_s8 = scalar_select %p10630_p6, 1, 0 }
   0xd   : > { %p10380_p9 = scmp.eq.s32.totalorder %s10609_s25, 0  ;;  %p10637_p10 = pnand %p8063_p7, %p182_p8 }
   0xe   : > { %s10548_s10 = smov [#allocation3]  }
   0xf   : > { %s206_s11 = sshll.u32 %s10548_s10, 4  ;;  %p10372_p11 = pneg %p10637_p10  ;;  %s207_s11 = int_to_ptr.vmem [resolvable:$true] %s206_s11 }
  0x10   : > { %s10467_s12 = scalar_lea.vmem %s207_s11, 32768  ;;  %p10475_p3 = scmp.lt.s32.totalorder %s207_s11, %s207_s11 }
  0x11   : > { %p10373_p12 = pnand %p10380_p9, %p10372_p11  ;;  %p10468_p0 = scmp.ne.s32.totalorder %s207_s11, %s10467_s12 }
  0x12   : > { %p10476_p4 = scmp.lt.s32.totalorder %s10467_s12, %s10467_s12 }
  0x13   : > { %p10458_p13 = pneg %p10373_p12 }
  0x14   : > { %p10477_p6 = por %p10476_p4, %p10475_p3 }
  0x15   : > { %p10470_p1 = pnand %p10468_p0, %p10458_p13 }
  0x17   : > { %p10471_p2 = pneg %p10470_p1 }
  0x19   : > { %p10478_p7 = pnand %p10477_p6, %p10471_p2 }
  0x1b   : > { %10481 = shalt.err (!%p10478_p7)
}
  0x1c   : > { %s10549_s13 = smov 1024   ;;  %s10550_s14 = smov 64  }
  0x1d   : > { %10375 = dma.hbm_to_vmem [thread:$0]  (!%p10373_p12), %s13811_s5, 32768, %s207_s11, [#allocation4], %s10549_s13, %s10549_s13, %s10550_s14  }
  0x1e   : > { %230 = sbr.rel (%p10637_p10) target bundleno = 1408 (0x580), region = 44 }
  0x23   : > { %10525 = dma.done.wait (%p10380_p9), [#allocation4], 32768  }
  0x24   : > { %10527 = vsyncadd (%p10380_p9), [#allocation4], 4294934528  ;;  %p260_p8 = scmp.lt.s32.totalorder %s10609_s25, 1  ;;  %vm429_vm0 = vcmask 1045504   ;;  %vm332_vm1 = vcmask 48128   ;;  %vm3785_vm2 = vcmask 64512  }
  0x25   : > { %v8070_v0 = vld [vmem:[%s13807_s1 + $0x8] sm:$0x3f]  ;;  %v297_v1 = vld [vmem:[%s13807_s1] sm:$0x3f]  ;;  %v8137_v6 = vld [vmem:[%s13807_s1 + $0x10] sm:$0x3f] }
  0x26   : > { %s261_s17 = scalar_select %p260_p8, %s10609_s25, 1  ;;  %9465 = vmatprep.subr.msk.mxu0 %vm429_vm0, %v8070_v0  ;;  %9515 = vmatprep.subr.msk.mxu1 %vm429_vm0, %v297_v1  ;;  %v8203_v29 = vld [vmem:[%s13807_s1 + $0x18] sm:$0x3f]  ;;  %v10793_v30 = vld [vmem:[%s13807_s1 + $0x20] sm:$0x3f]  ;;  %vm3788_vm3 = vcmask 58368  }
  0x27   : > { %9466 = vmatpush3.msk.msra.mxu0 %vm429_vm0, %v8070_v0  ;;  %9516 = vmatpush3.msk.msra.mxu1 %vm429_vm0, %v297_v1  ;;  %v10861_v43 = vld [vmem:[%s13807_s1 + $0x28] sm:$0x3f]  ;;  %s8870_s20 = sshll.u32 %s10609_s25, 10  ;;  %s10552_s12 = smov [#allocation6]  }
  0x28   : > { %s10365_s18 = smul.u32 432, %s261_s17  ;;  %9565 = vmatprep.subr.msk.mxu0 %vm429_vm0, %v8137_v6  ;;  %9615 = vmatprep.subr.msk.mxu1 %vm429_vm0, %v8203_v29  ;;  %s257_s17 = sand.u32 1, %s10538_s22  }
  0x29   : > { %s13765_s10 = scalar_lea.hbm %s13812_s6, %s8870_s20  ;;  %s7977_s25 = scalar_lea.sflag [#allocation5], %s257_s17 }
  0x2a   : > { %s10659_s26 = scalar_lea.vmem %s13806_s0, %s10365_s18  ;;  %s8068_s18 = sshll.u32 %s257_s17, 6 }
  0x2b   : > { %v298_v2 = vld [vmem:[%s10659_s26 + $0x1] sm:$0xff]  ;;  %v299_v4 = vld [vmem:[%s10659_s26 + $0x9] sm:$0xff]  ;;  %v10679_v7 = vld [vmem:[%s10659_s26 + $0x19] sm:$0xff]  ;;  %s259_s19 = scalar_lea.vmem [#allocation6], %s8068_s18 }
  0x2c   : > { %v265_v3 = vld [vmem:[%s10659_s26] sm:$0xff]  ;;  %v266_v5 = vld [vmem:[%s10659_s26 + $0x8] sm:$0xff]  ;;  %9467 = vmatprep.mubr.msk.f32.mxu0 %vm332_vm1, %v298_v2  ;;  %v10684_v8 = vld [vmem:[%s10659_s26 + $0x18] sm:$0xff]  ;;  %s7991_s28 = sshll.u32 %s259_s19, 4  ;;  %s13767_s28 = int_to_ptr.vmem [resolvable:$true] %s7991_s28 }
  0x2d   : > { %9517 = vmatprep.mubr.msk.f32.mxu1 %vm332_vm1, %v265_v3  ;;  %9468 = vmatmul.mubr.msk.f32.vlgmr.msra.gmra.mxu0 %vm332_vm1, %v299_v4  ;;  %v10692_v9 = vld [vmem:[%s10659_s26 + $0x21] sm:$0xff]  ;;  %v10701_v11 = vld [vmem:[%s10659_s26 + $0x31] sm:$0xff]  ;;  %v10715_v13 = vld [vmem:[%s10659_s26 + $0x39] sm:$0xff]  ;;  %s10482_s11 = scalar_lea.vmem %s13767_s28, 1024 }
  0x2e   : > { %9518 = vmatmul.mubr.msk.f32.vlgmr.msra.gmra.mxu1 %vm332_vm1, %v266_v5  ;;  %9470 = vmatprep.mubr.msk.f32.mxu0 %vm332_vm1, %v10679_v7  ;;  %v10695_v10 = vld [vmem:[%s10659_s26 + $0x20] sm:$0xff]  ;;  %v10704_v12 = vld [vmem:[%s10659_s26 + $0x30] sm:$0xff]  ;;  %v10718_v14 = vld [vmem:[%s10659_s26 + $0x38] sm:$0xff]  ;;  %p10483_p6 = scmp.ne.s32.totalorder %s13767_s28, %s10482_s11 }
  0x2f   : > { %9566 = vmatpush3.msk.msra.mxu0 %vm429_vm0, %v8137_v6  ;;  %9520 = vmatprep.mubr.msk.f32.mxu1 %vm332_vm1, %v10684_v8  ;;  %13883 = vst [vmem:[#allocation9_spill] sm:$0xff] %v10704_v12  ;;  %13884 = vst [vmem:[#allocation10_spill] sm:$0xff] %v10718_v14  ;;  %v10721_v15 = vld [vmem:[%s10659_s26 + $0x49] sm:$0xff]  ;;  %v10735_v17 = vld [vmem:[%s10659_s26 + $0x51] sm:$0xff] }
  0x30   : > { %v10724_v16 = vld [vmem:[%s10659_s26 + $0x48] sm:$0xff]  ;;  %v10738_v18 = vld [vmem:[%s10659_s26 + $0x50] sm:$0xff]  ;;  %v10744_v20 = vld [vmem:[%s10659_s26 + $0x60] sm:$0xff]  ;;  %9616 = vmatpush3.msk.msra.mxu1 %vm429_vm0, %v8203_v29  ;;  %9665 = vmatprep.subr.msk.mxu0 %vm429_vm0, %v10793_v30  ;;  %p10484_p9 = pnand %p10483_p6, %p10626_p5 }
  0x31   : > { %9471 = vmatmul.mubr.msk.f32.gmra.mxu0 %vm332_vm1, %v10692_v9  ;;  %13885 = vst [vmem:[#allocation11_spill] sm:$0xff] %v10724_v16  ;;  %13886 = vst [vmem:[#allocation12_spill] sm:$0xff] %v10738_v18  ;;  %v10741_v19 = vld [vmem:[%s10659_s26 + $0x61] sm:$0xff]  ;;  %v10755_v21 = vld [vmem:[%s10659_s26 + $0x69] sm:$0xff]  ;;  %9715 = vmatprep.subr.msk.mxu1 %vm429_vm0, %v10861_v43 }
  0x32   : > { %9521 = vmatmul.mubr.msk.f32.gmra.mxu1 %vm332_vm1, %v10695_v10  ;;  %9473 = vmatprep.mubr.msk.f32.mxu0 %vm332_vm1, %v10701_v11  ;;  %13887 = vst [vmem:[#allocation13_spill] sm:$0xff] %v10744_v20  ;;  %v10758_v22 = vld [vmem:[%s10659_s26 + $0x68] sm:$0xff]  ;;  %v10761_v23 = vld [vmem:[%s10659_s26 + $0x79] sm:$0xff]  ;;  %v10781_v27 = vld [vmem:[%s10659_s26 + $0x91] sm:$0xff]  ;;  %p10485_p10 = pneg %p10484_p9 }
  0x33   : > { %9523 = vmatprep.mubr.msk.f32.mxu1 %vm332_vm1, %v10704_v12  ;;  %13888 = vst [vmem:[#allocation14_spill] sm:$0xff] %v10758_v22  ;;  %v10764_v24 = vld [vmem:[%s10659_s26 + $0x78] sm:$0xff]  ;;  %v10775_v25 = vld [vmem:[%s10659_s26 + $0x81] sm:$0xff]  ;;  %v10784_v28 = vld [vmem:[%s10659_s26 + $0x90] sm:$0xff] }
  0x34   : > { %13889 = vst [vmem:[#allocation15_spill] sm:$0xff] %v10764_v24  ;;  %v10778_v26 = vld [vmem:[%s10659_s26 + $0x80] sm:$0xff]  ;;  %13891 = vst [vmem:[#allocation17_spill] sm:$0xff] %v10784_v28  ;;  %v10807_v32 = vld [vmem:[%s10659_s26 + $0x98] sm:$0xff] }
  0x35   : > { %9474 = vmatmul.mubr.msk.f32.gmra.mxu0 %vm332_vm1, %v10715_v13  ;;  %13890 = vst [vmem:[#allocation16_spill] sm:$0xff] %v10778_v26  ;;  %v10804_v31 = vld [vmem:[%s10659_s26 + $0x99] sm:$0xff]  ;;  %13892 = vst [vmem:[#allocation18_spill] sm:$0xff] %v10807_v32  ;;  %v10810_v33 = vld [vmem:[%s10659_s26 + $0xa9] sm:$0xff] }
  0x36   : > { %9524 = vmatmul.mubr.msk.f32.gmra.mxu1 %vm332_vm1, %v10718_v14  ;;  %9476 = vmatprep.mubr.msk.f32.mxu0 %vm332_vm1, %v10721_v15  ;;  %v10813_v34 = vld [vmem:[%s10659_s26 + $0xa8] sm:$0xff]  ;;  %v10827_v35 = vld [vmem:[%s10659_s26 + $0xb1] sm:$0xff]  ;;  %v10836_v38 = vld [vmem:[%s10659_s26 + $0xc0] sm:$0xff] }
  0x37   : > { %9526 = vmatprep.mubr.msk.f32.mxu1 %vm332_vm1, %v10724_v16  ;;  %13893 = vst [vmem:[#allocation19_spill] sm:$0xff] %v10813_v34  ;;  %v10830_v36 = vld [vmem:[%s10659_s26 + $0xb0] sm:$0xff]  ;;  %v10833_v37 = vld [vmem:[%s10659_s26 + $0xc1] sm:$0xff]  ;;  %13895 = vst [vmem:[#allocation21_spill] sm:$0xff] %v10836_v38 }
  0x38   : > { %13894 = vst [vmem:[#allocation20_spill] sm:$0xff] %v10830_v36  ;;  %v10847_v39 = vld [vmem:[%s10659_s26 + $0xc9] sm:$0xff]  ;;  %v10853_v41 = vld [vmem:[%s10659_s26 + $0xd9] sm:$0xff]  ;;  %v10874_v44 = vld [vmem:[%s10659_s26 + $0xe1] sm:$0xff] }
  0x39   : > { %9477 = vmatmul.mubr.msk.f32.gmra.mxu0 %vm332_vm1, %v10735_v17  ;;  %v10850_v40 = vld [vmem:[%s10659_s26 + $0xc8] sm:$0xff]  ;;  %v10856_v42 = vld [vmem:[%s10659_s26 + $0xd8] sm:$0xff]  ;;  %v10877_v45 = vld [vmem:[%s10659_s26 + $0xe0] sm:$0xff] }
  0x3a   : > { %9527 = vmatmul.mubr.msk.f32.gmra.mxu1 %vm332_vm1, %v10738_v18  ;;  %9479 = vmatprep.mubr.msk.f32.mxu0 %vm332_vm1, %v10741_v19  ;;  %13896 = vst [vmem:[#allocation22_spill] sm:$0xff] %v10850_v40  ;;  %13897 = vst [vmem:[#allocation23_spill] sm:$0xff] %v10856_v42  ;;  %v10880_v46 = vld [vmem:[%s10659_s26 + $0xf1] sm:$0xff]  ;;  %v10894_v48 = vld [vmem:[%s10659_s26 + $0xf9] sm:$0xff] }
  0x3b   : > { %9529 = vmatprep.mubr.msk.f32.mxu1 %vm332_vm1, %v10744_v20  ;;  %13898 = vst [vmem:[#allocation24_spill] sm:$0xff] %v10877_v45  ;;  %v10883_v47 = vld [vmem:[%s10659_s26 + $0xf0] sm:$0xff]  ;;  %v10897_v49 = vld [vmem:[%s10659_s26 + $0xf8] sm:$0xff]  ;;  %v10903_v51 = vld [vmem:[%s10659_s26 + $0x108] sm:$0xff] }
  0x3c   : > { %13899 = vst [vmem:[#allocation25_spill] sm:$0xff] %v10883_v47  ;;  %13900 = vst [vmem:[#allocation26_spill] sm:$0xff] %v10897_v49  ;;  %v10900_v50 = vld [vmem:[%s10659_s26 + $0x109] sm:$0xff]  ;;  %v10914_v52 = vld [vmem:[%s10659_s26 + $0x111] sm:$0xff] }
  0x3d   : > { %9480 = vmatmul.mubr.msk.f32.gmra.mxu0 %vm332_vm1, %v10755_v21  ;;  %13901 = vst [vmem:[#allocation27_spill] sm:$0xff] %v10903_v51  ;;  %v10917_v53 = vld [vmem:[%s10659_s26 + $0x110] sm:$0xff]  ;;  %v10920_v54 = vld [vmem:[%s10659_s26 + $0x121] sm:$0xff]  ;;  %v10940_v58 = vld [vmem:[%s10659_s26 + $0x139] sm:$0xff] }
  0x3e   : > { %9530 = vmatmul.mubr.msk.f32.gmra.mxu1 %vm332_vm1, %v10758_v22  ;;  %9482 = vmatprep.mubr.msk.f32.mxu0 %vm332_vm1, %v10761_v23  ;;  %13902 = vst [vmem:[#allocation28_spill] sm:$0xff] %v10917_v53  ;;  %v10923_v55 = vld [vmem:[%s10659_s26 + $0x120] sm:$0xff]  ;;  %v10934_v56 = vld [vmem:[%s10659_s26 + $0x129] sm:$0xff]  ;;  %v10943_v59 = vld [vmem:[%s10659_s26 + $0x138] sm:$0xff] }
  0x3f   : > { %9532 = vmatprep.mubr.msk.f32.mxu1 %vm332_vm1, %v10764_v24  ;;  %13903 = vst [vmem:[#allocation29_spill] sm:$0xff] %v10923_v55  ;;  %v10937_v57 = vld [vmem:[%s10659_s26 + $0x128] sm:$0xff]  ;;  %13905 = vst [vmem:[#allocation31_spill] sm:$0xff] %v10943_v59  ;;  %v10957_v61 = vld [vmem:[%s10659_s26 + $0x140] sm:$0xff] }
  0x40   : > { %13904 = vst [vmem:[#allocation30_spill] sm:$0xff] %v10937_v57  ;;  %v10954_v60 = vld [vmem:[%s10659_s26 + $0x141] sm:$0xff]  ;;  %13906 = vst [vmem:[#allocation32_spill] sm:$0xff] %v10957_v61  ;;  %v10960_v62 = vld [vmem:[%s10659_s26 + $0x151] sm:$0xff] }
  0x41   : > { %9483 = vmatmul.mubr.msk.f32.gmra.mxu0 %vm332_vm1, %v10775_v25  ;;  %v10963_v63 = vld [vmem:[%s10659_s26 + $0x150] sm:$0xff]  ;;  %v10974_v0 = vld [vmem:[%s10659_s26 + $0x159] sm:$0xff]  ;;  %v10983_v3 = vld [vmem:[%s10659_s26 + $0x168] sm:$0xff] }
  0x42   : > { %9533 = vmatmul.mubr.msk.f32.gmra.mxu1 %vm332_vm1, %v10778_v26  ;;  %9485 = vmatprep.mubr.msk.f32.mxu0 %vm332_vm1, %v10781_v27  ;;  %13907 = vst [vmem:[#allocation33_spill] sm:$0xff] %v10963_v63  ;;  %v10977_v1 = vld [vmem:[%s10659_s26 + $0x158] sm:$0xff]  ;;  %v10980_v2 = vld [vmem:[%s10659_s26 + $0x169] sm:$0xff] }
  0x43   : > { %9535 = vmatprep.mubr.msk.f32.mxu1 %vm332_vm1, %v10784_v28  ;;  %13908 = vst [vmem:[#allocation34_spill] sm:$0xff] %v10977_v1  ;;  %13909 = vst [vmem:[#allocation35_spill] sm:$0xff] %v10980_v2  ;;  %v10994_v4 = vld [vmem:[%s10659_s26 + $0x171] sm:$0xff]  ;;  %v982_v6 = vld [vmem:[%s10659_s26 + $0x2] sm:$0xff] }
  0x44   : > { %13910 = vst [vmem:[#allocation36_spill] sm:$0xff] %v10994_v4  ;;  %v10997_v5 = vld [vmem:[%s10659_s26 + $0x170] sm:$0xff] }
  0x45   : > { %9486 = vmatmul.mubr.msk.f32.gmra.mxu0 %vm332_vm1, %v10804_v31  ;;  %v983_v29 = vld [vmem:[%s10659_s26 + $0xa] sm:$0xff] }
  0x46   : > { %9536 = vmatmul.mubr.msk.f32.gmra.mxu1 %vm332_vm1, %v10807_v32  ;;  %9488 = vmatprep.mubr.msk.f32.mxu0 %vm332_vm1, %v10810_v33 }
  0x47   : > { %9538 = vmatprep.mubr.msk.f32.mxu1 %vm332_vm1, %v10813_v34 }
  0x49   : > { %9489 = vmatmul.mubr.msk.f32.gmra.mxu0 %vm332_vm1, %v10827_v35 }
  0x4a   : > { %9539 = vmatmul.mubr.msk.f32.gmra.mxu1 %vm332_vm1, %v10830_v36  ;;  %9491 = vmatprep.mubr.msk.f32.mxu0 %vm332_vm1, %v10833_v37 }
  0x4b   : > { %9541 = vmatprep.mubr.msk.f32.mxu1 %vm332_vm1, %v10836_v38 }
  0x4d   : > { %9492 = vmatmul.mubr.msk.f32.gmra.mxu0 %vm332_vm1, %v10847_v39 }
  0x4e   : > { %9542 = vmatmul.mubr.msk.f32.gmra.mxu1 %vm332_vm1, %v10850_v40  ;;  %9494 = vmatprep.mubr.msk.f32.mxu0 %vm332_vm1, %v10853_v41 }
  0x4f   : > { %9544 = vmatprep.mubr.msk.f32.mxu1 %vm332_vm1, %v10856_v42 }
  0x51   : > { %9495 = vmatmul.mubr.msk.f32.gmra.mxu0 %vm332_vm1, %v10874_v44 }
  0x52   : > { %9545 = vmatmul.mubr.msk.f32.gmra.mxu1 %vm332_vm1, %v10877_v45  ;;  %9497 = vmatprep.mubr.msk.f32.mxu0 %vm332_vm1, %v10880_v46 }
  0x53   : > { %9547 = vmatprep.mubr.msk.f32.mxu1 %vm332_vm1, %v10883_v47 }
  0x55   : > { %9498 = vmatmul.mubr.msk.f32.gmra.mxu0 %vm332_vm1, %v10894_v48 }
  0x56   : > { %9548 = vmatmul.mubr.msk.f32.gmra.mxu1 %vm332_vm1, %v10897_v49  ;;  %9500 = vmatprep.mubr.msk.f32.mxu0 %vm332_vm1, %v10900_v50 }
  0x57   : > { %9550 = vmatprep.mubr.msk.f32.mxu1 %vm332_vm1, %v10903_v51 }
  0x59   : > { %9501 = vmatmul.mubr.msk.f32.gmra.mxu0 %vm332_vm1, %v10914_v52 }
  0x5a   : > { %9551 = vmatmul.mubr.msk.f32.gmra.mxu1 %vm332_vm1, %v10917_v53  ;;  %9503 = vmatprep.mubr.msk.f32.mxu0 %vm332_vm1, %v10920_v54 }
  0x5b   : > { %9553 = vmatprep.mubr.msk.f32.mxu1 %vm332_vm1, %v10923_v55 }
  0x5d   : > { %9504 = vmatmul.mubr.msk.f32.gmra.mxu0 %vm332_vm1, %v10934_v56 }
  0x5e   : > { %9554 = vmatmul.mubr.msk.f32.gmra.mxu1 %vm332_vm1, %v10937_v57  ;;  %9506 = vmatprep.mubr.msk.f32.mxu0 %vm332_vm1, %v10940_v58 }
  0x5f   : > { %9556 = vmatprep.mubr.msk.f32.mxu1 %vm332_vm1, %v10943_v59 }
  0x61   : > { %9507 = vmatmul.mubr.msk.f32.gmra.mxu0 %vm332_vm1, %v10954_v60 }
  0x62   : > { %9557 = vmatmul.mubr.msk.f32.gmra.mxu1 %vm332_vm1, %v10957_v61  ;;  %9509 = vmatprep.mubr.msk.f32.mxu0 %vm332_vm1, %v10960_v62 }
  0x63   : > { %9559 = vmatprep.mubr.msk.f32.mxu1 %vm332_vm1, %v10963_v63 }
  0x65   : > { %9510 = vmatmul.mubr.msk.f32.gmra.mxu0 %vm332_vm1, %v10974_v0 }
  0x66   : > { %9560 = vmatmul.mubr.msk.f32.gmra.mxu1 %vm332_vm1, %v10977_v1  ;;  %9512 = vmatprep.mubr.msk.f32.mxu0 %vm332_vm1, %v10980_v2  ;;  %v11009_v2 = vld [vmem:[%s10659_s26 + $0x1a] sm:$0xff] }
  0x67   : > { %9562 = vmatprep.mubr.msk.f32.mxu1 %vm332_vm1, %v10983_v3 }
  0x69   : > { %9513 = vmatmul.mubr.msk.f32.gmra.mxu0 %vm332_vm1, %v10994_v4  ;;  %v11017_v4 = vld [vmem:[%s13807_s1 + $0x30] sm:$0x3f] }
  0x6a   : > { %9563 = vmatmul.mubr.msk.f32.gmra.mxu1 %vm332_vm1, %v10997_v5  ;;  %9567 = vmatprep.mubr.msk.f32.mxu0 %vm332_vm1, %v982_v6  ;;  %v11022_v6 = vld [vmem:[%s13807_s1 + $0x38] sm:$0x3f] }
  0x6b   : > { %9617 = vmatprep.mubr.msk.f32.mxu1 %vm332_vm1, %v10684_v8  ;;  %v11029_v8 = vld [vmem:[%s10659_s26 + $0x22] sm:$0xff] }
  0x6d   : > { %9568 = vmatmul.mubr.msk.f32.vlgmr.msra.gmra.mxu0 %vm332_vm1, %v983_v29  ;;  %v11063_v29 = vld [vmem:[%s10659_s26 + $0x52] sm:$0xff] }
  0x6e   : > { %9618 = vmatmul.mubr.msk.f32.vlgmr.msra.gmra.mxu1 %vm332_vm1, %v10695_v10  ;;  %9666 = vmatpush3.msk.msra.mxu0 %vm429_vm0, %v10793_v30  ;;  %v11034_v10 = vld [vmem:[%s10659_s26 + $0x32] sm:$0xff]  ;;  %v11049_v30 = vld [vmem:[%s10659_s26 + $0x3a] sm:$0xff] }
  0x6f   : > { %9570 = vmatprep.mubr.msk.f32.mxu0 %vm332_vm1, %v11009_v2  ;;  %9620 = vmatprep.mubr.msk.f32.mxu1 %vm332_vm1, %v10704_v12  ;;  %v11225_v12 = vld [vmem:[%s10659_s26 + $0x180] sm:$0xff] }
  0x70   : > { %9716 = vmatpush3.msk.msra.mxu1 %vm429_vm0, %v10861_v43  ;;  %9765 = vmatprep.subr.msk.mxu0 %vm429_vm0, %v11017_v4  ;;  %v11054_v43 = vld [vmem:[%s10659_s26 + $0x4a] sm:$0xff]  ;;  %13911 = vst [vmem:[#allocation37_spill] sm:$0xff] %v11225_v12 }
  0x71   : > { %9815 = vmatprep.subr.msk.mxu1 %vm429_vm0, %v11022_v6  ;;  %9571 = vmatmul.mubr.msk.f32.gmra.mxu0 %vm332_vm1, %v11029_v8 }
  0x72   : > { %9621 = vmatmul.mubr.msk.f32.gmra.mxu1 %vm332_vm1, %v10718_v14  ;;  %9573 = vmatprep.mubr.msk.f32.mxu0 %vm332_vm1, %v11034_v10  ;;  %v11068_v14 = vld [vmem:[%s10659_s26 + $0x62] sm:$0xff] }
  0x73   : > { %9623 = vmatprep.mubr.msk.f32.mxu1 %vm332_vm1, %v10724_v16  ;;  %v11082_v16 = vld [vmem:[%s10659_s26 + $0x7a] sm:$0xff] }
  0x75   : > { %9574 = vmatmul.mubr.msk.f32.gmra.mxu0 %vm332_vm1, %v11049_v30 }
  0x76   : > { %9624 = vmatmul.mubr.msk.f32.gmra.mxu1 %vm332_vm1, %v10738_v18  ;;  %9576 = vmatprep.mubr.msk.f32.mxu0 %vm332_vm1, %v11054_v43  ;;  %v11077_v18 = vld [vmem:[%s10659_s26 + $0x6a] sm:$0xff] }
  0x77   : > { %9626 = vmatprep.mubr.msk.f32.mxu1 %vm332_vm1, %v10744_v20  ;;  %v11096_v20 = vld [vmem:[%s10659_s26 + $0x92] sm:$0xff] }
  0x79   : > { %9577 = vmatmul.mubr.msk.f32.gmra.mxu0 %vm332_vm1, %v11063_v29 }
  0x7a   : > { %9627 = vmatmul.mubr.msk.f32.gmra.mxu1 %vm332_vm1, %v10758_v22  ;;  %9579 = vmatprep.mubr.msk.f32.mxu0 %vm332_vm1, %v11068_v14  ;;  %v11091_v22 = vld [vmem:[%s10659_s26 + $0x82] sm:$0xff] }
  0x7b   : > { %9629 = vmatprep.mubr.msk.f32.mxu1 %vm332_vm1, %v10764_v24  ;;  %v11110_v24 = vld [vmem:[%s10659_s26 + $0xaa] sm:$0xff] }
  0x7d   : > { %9580 = vmatmul.mubr.msk.f32.gmra.mxu0 %vm332_vm1, %v11077_v18 }
  0x7e   : > { %9630 = vmatmul.mubr.msk.f32.gmra.mxu1 %vm332_vm1, %v10778_v26  ;;  %9582 = vmatprep.mubr.msk.f32.mxu0 %vm332_vm1, %v11082_v16  ;;  %v11105_v26 = vld [vmem:[%s10659_s26 + $0x9a] sm:$0xff] }
  0x7f   : > { %9632 = vmatprep.mubr.msk.f32.mxu1 %vm332_vm1, %v10784_v28  ;;  %v11124_v28 = vld [vmem:[%s10659_s26 + $0xc2] sm:$0xff] }
  0x81   : > { %9583 = vmatmul.mubr.msk.f32.gmra.mxu0 %vm332_vm1, %v11091_v22 }
  0x82   : > { %9633 = vmatmul.mubr.msk.f32.gmra.mxu1 %vm332_vm1, %v10807_v32  ;;  %9585 = vmatprep.mubr.msk.f32.mxu0 %vm332_vm1, %v11096_v20  ;;  %v11119_v32 = vld [vmem:[%s10659_s26 + $0xb2] sm:$0xff] }
  0x83   : > { %9635 = vmatprep.mubr.msk.f32.mxu1 %vm332_vm1, %v10813_v34  ;;  %v11138_v34 = vld [vmem:[%s10659_s26 + $0xda] sm:$0xff] }
  0x85   : > { %9586 = vmatmul.mubr.msk.f32.gmra.mxu0 %vm332_vm1, %v11105_v26 }
  0x86   : > { %9636 = vmatmul.mubr.msk.f32.gmra.mxu1 %vm332_vm1, %v10830_v36  ;;  %9588 = vmatprep.mubr.msk.f32.mxu0 %vm332_vm1, %v11110_v24  ;;  %v11133_v36 = vld [vmem:[%s10659_s26 + $0xca] sm:$0xff] }
  0x87   : > { %9638 = vmatprep.mubr.msk.f32.mxu1 %vm332_vm1, %v10836_v38  ;;  %v11152_v38 = vld [vmem:[%s10659_s26 + $0xf2] sm:$0xff] }
  0x89   : > { %9589 = vmatmul.mubr.msk.f32.gmra.mxu0 %vm332_vm1, %v11119_v32 }
  0x8a   : > { %9639 = vmatmul.mubr.msk.f32.gmra.mxu1 %vm332_vm1, %v10850_v40  ;;  %9591 = vmatprep.mubr.msk.f32.mxu0 %vm332_vm1, %v11124_v28  ;;  %v11147_v40 = vld [vmem:[%s10659_s26 + $0xe2] sm:$0xff] }
  0x8b   : > { %9641 = vmatprep.mubr.msk.f32.mxu1 %vm332_vm1, %v10856_v42  ;;  %v11166_v42 = vld [vmem:[%s10659_s26 + $0x10a] sm:$0xff] }
  0x8d   : > { %9592 = vmatmul.mubr.msk.f32.gmra.mxu0 %vm332_vm1, %v11133_v36 }
  0x8e   : > { %9642 = vmatmul.mubr.msk.f32.gmra.mxu1 %vm332_vm1, %v10877_v45  ;;  %9594 = vmatprep.mubr.msk.f32.mxu0 %vm332_vm1, %v11138_v34  ;;  %v11161_v45 = vld [vmem:[%s10659_s26 + $0xfa] sm:$0xff] }
  0x8f   : > { %9644 = vmatprep.mubr.msk.f32.mxu1 %vm332_vm1, %v10883_v47  ;;  %v11180_v47 = vld [vmem:[%s10659_s26 + $0x122] sm:$0xff] }
  0x91   : > { %9595 = vmatmul.mubr.msk.f32.gmra.mxu0 %vm332_vm1, %v11147_v40 }
  0x92   : > { %9645 = vmatmul.mubr.msk.f32.gmra.mxu1 %vm332_vm1, %v10897_v49  ;;  %9597 = vmatprep.mubr.msk.f32.mxu0 %vm332_vm1, %v11152_v38  ;;  %v11175_v49 = vld [vmem:[%s10659_s26 + $0x112] sm:$0xff] }
  0x93   : > { %9647 = vmatprep.mubr.msk.f32.mxu1 %vm332_vm1, %v10903_v51  ;;  %v11208_v51 = vld [vmem:[%s10659_s26 + $0x152] sm:$0xff] }
  0x95   : > { %9598 = vmatmul.mubr.msk.f32.gmra.mxu0 %vm332_vm1, %v11161_v45 }
  0x96   : > { %9648 = vmatmul.mubr.msk.f32.gmra.mxu1 %vm332_vm1, %v10917_v53  ;;  %9600 = vmatprep.mubr.msk.f32.mxu0 %vm332_vm1, %v11166_v42  ;;  %v11189_v53 = vld [vmem:[%s10659_s26 + $0x12a] sm:$0xff] }
  0x97   : > { %9650 = vmatprep.mubr.msk.f32.mxu1 %vm332_vm1, %v10923_v55  ;;  %v11194_v55 = vld [vmem:[%s10659_s26 + $0x13a] sm:$0xff] }
  0x99   : > { %9601 = vmatmul.mubr.msk.f32.gmra.mxu0 %vm332_vm1, %v11175_v49 }
  0x9a   : > { %9651 = vmatmul.mubr.msk.f32.gmra.mxu1 %vm332_vm1, %v10937_v57  ;;  %9603 = vmatprep.mubr.msk.f32.mxu0 %vm332_vm1, %v11180_v47  ;;  %v11203_v57 = vld [vmem:[%s10659_s26 + $0x142] sm:$0xff] }
  0x9b   : > { %9653 = vmatprep.mubr.msk.f32.mxu1 %vm332_vm1, %v10943_v59  ;;  %v11222_v59 = vld [vmem:[%s10659_s26 + $0x16a] sm:$0xff] }
  0x9d   : > { %9604 = vmatmul.mubr.msk.f32.gmra.mxu0 %vm332_vm1, %v11189_v53 }
  0x9e   : > { %9654 = vmatmul.mubr.msk.f32.gmra.mxu1 %vm332_vm1, %v10957_v61  ;;  %9606 = vmatprep.mubr.msk.f32.mxu0 %vm332_vm1, %v11194_v55  ;;  %v11217_v61 = vld [vmem:[%s10659_s26 + $0x15a] sm:$0xff] }
  0x9f   : > { %9656 = vmatprep.mubr.msk.f32.mxu1 %vm332_vm1, %v10963_v63  ;;  %v11239_v63 = vld [vmem:[%s10659_s26 + $0x188] sm:$0xff] }
  0xa1   : > { %9607 = vmatmul.mubr.msk.f32.gmra.mxu0 %vm332_vm1, %v11203_v57 }
  0xa2   : > { %9657 = vmatmul.mubr.msk.f32.gmra.mxu1 %vm332_vm1, %v10977_v1  ;;  %9609 = vmatprep.mubr.msk.f32.mxu0 %vm332_vm1, %v11208_v51  ;;  %v11234_v1 = vld [vmem:[%s10659_s26 + $0x172] sm:$0xff] }
  0xa3   : > { %9659 = vmatprep.mubr.msk.f32.mxu1 %vm332_vm1, %v10983_v3 }
  0xa5   : > { %9610 = vmatmul.mubr.msk.f32.gmra.mxu0 %vm332_vm1, %v11217_v61 }
  0xa6   : > { %9660 = vmatmul.mubr.msk.f32.gmra.mxu1 %vm332_vm1, %v10997_v5  ;;  %9612 = vmatprep.mubr.msk.f32.mxu0 %vm332_vm1, %v11222_v59 }
  0xa7   : > { %9662 = vmatprep.mubr.msk.f32.mxu1 %vm332_vm1, %v11225_v12  ;;  %v11256_v12 = vld [vmem:[%s13807_s1 + $0x40] sm:$0x3f] }
  0xa9   : > { %9613 = vmatmul.mubr.msk.f32.gmra.mxu0 %vm332_vm1, %v11234_v1 }
  0xaa   : > { %9663 = vmatmul.mubr.msk.f32.gmra.mxu1 %vm332_vm1, %v11239_v63  ;;  %9667 = vmatprep.mubr.msk.f32.mxu0 %vm332_vm1, %v10679_v7  ;;  %v13912_v7 = vld [vmem:[#allocation35_spill] sm:$0xff] }
  0xab   : > { %9717 = vmatprep.mubr.msk.f32.mxu1 %vm332_vm1, %v11009_v2  ;;  %v13916_v2 = vld [vmem:[#allocation11_spill] sm:$0xff] }
  0xad   : > { %9668 = vmatmul.mubr.msk.f32.vlgmr.msra.gmra.mxu0 %vm332_vm1, %v10692_v9  ;;  %v11373_v9 = vld [vmem:[%s10659_s26 + $0x181] sm:$0xff] }
  0xae   : > { %9718 = vmatmul.mubr.msk.f32.vlgmr.msra.gmra.mxu1 %vm332_vm1, %v11029_v8  ;;  %9766 = vmatpush3.msk.msra.mxu0 %vm429_vm0, %v11017_v4 }
  0xaf   : > { %9670 = vmatprep.mubr.msk.f32.mxu0 %vm332_vm1, %v10701_v11  ;;  %9720 = vmatprep.mubr.msk.f32.mxu1 %vm332_vm1, %v11034_v10 }
  0xb0   : > { %9816 = vmatpush3.msk.msra.mxu1 %vm429_vm0, %v11022_v6  ;;  %9865 = vmatprep.subr.msk.mxu0 %vm429_vm0, %v11256_v12 }
  0xb1   : > { %9671 = vmatmul.mubr.msk.f32.gmra.mxu0 %vm332_vm1, %v10715_v13 }
  0xb2   : > { %9721 = vmatmul.mubr.msk.f32.gmra.mxu1 %vm332_vm1, %v11049_v30  ;;  %9673 = vmatprep.mubr.msk.f32.mxu0 %vm332_vm1, %v10721_v15 }
  0xb3   : > { %9723 = vmatprep.mubr.msk.f32.mxu1 %vm332_vm1, %v11054_v43 }
  0xb5   : > { %9674 = vmatmul.mubr.msk.f32.gmra.mxu0 %vm332_vm1, %v10735_v17 }
  0xb6   : > { %9724 = vmatmul.mubr.msk.f32.gmra.mxu1 %vm332_vm1, %v11063_v29  ;;  %9676 = vmatprep.mubr.msk.f32.mxu0 %vm332_vm1, %v10741_v19 }
  0xb7   : > { %9726 = vmatprep.mubr.msk.f32.mxu1 %vm332_vm1, %v11068_v14 }
  0xb9   : > { %9677 = vmatmul.mubr.msk.f32.gmra.mxu0 %vm332_vm1, %v10755_v21 }
  0xba   : > { %9727 = vmatmul.mubr.msk.f32.gmra.mxu1 %vm332_vm1, %v11077_v18  ;;  %9679 = vmatprep.mubr.msk.f32.mxu0 %vm332_vm1, %v10761_v23 }
  0xbb   : > { %9729 = vmatprep.mubr.msk.f32.mxu1 %vm332_vm1, %v11082_v16 }
  0xbd   : > { %9680 = vmatmul.mubr.msk.f32.gmra.mxu0 %vm332_vm1, %v10775_v25 }
  0xbe   : > { %9730 = vmatmul.mubr.msk.f32.gmra.mxu1 %vm332_vm1, %v11091_v22  ;;  %9682 = vmatprep.mubr.msk.f32.mxu0 %vm332_vm1, %v10781_v27 }
  0xbf   : > { %9732 = vmatprep.mubr.msk.f32.mxu1 %vm332_vm1, %v11096_v20 }
  0xc1   : > { %9683 = vmatmul.mubr.msk.f32.gmra.mxu0 %vm332_vm1, %v10804_v31 }
  0xc2   : > { %9733 = vmatmul.mubr.msk.f32.gmra.mxu1 %vm332_vm1, %v11105_v26  ;;  %9685 = vmatprep.mubr.msk.f32.mxu0 %vm332_vm1, %v10810_v33 }
  0xc3   : > { %9735 = vmatprep.mubr.msk.f32.mxu1 %vm332_vm1, %v11110_v24 }
  0xc5   : > { %9686 = vmatmul.mubr.msk.f32.gmra.mxu0 %vm332_vm1, %v10827_v35 }
  0xc6   : > { %9736 = vmatmul.mubr.msk.f32.gmra.mxu1 %vm332_vm1, %v11119_v32  ;;  %9688 = vmatprep.mubr.msk.f32.mxu0 %vm332_vm1, %v10833_v37 }
  0xc7   : > { %9738 = vmatprep.mubr.msk.f32.mxu1 %vm332_vm1, %v11124_v28 }
  0xc9   : > { %9689 = vmatmul.mubr.msk.f32.gmra.mxu0 %vm332_vm1, %v10847_v39 }
  0xca   : > { %9739 = vmatmul.mubr.msk.f32.gmra.mxu1 %vm332_vm1, %v11133_v36  ;;  %9691 = vmatprep.mubr.msk.f32.mxu0 %vm332_vm1, %v10853_v41 }
  0xcb   : > { %9741 = vmatprep.mubr.msk.f32.mxu1 %vm332_vm1, %v11138_v34 }
  0xcd   : > { %9692 = vmatmul.mubr.msk.f32.gmra.mxu0 %vm332_vm1, %v10874_v44 }
  0xce   : > { %9742 = vmatmul.mubr.msk.f32.gmra.mxu1 %vm332_vm1, %v11147_v40  ;;  %9694 = vmatprep.mubr.msk.f32.mxu0 %vm332_vm1, %v10880_v46 }
  0xcf   : > { %9744 = vmatprep.mubr.msk.f32.mxu1 %vm332_vm1, %v11152_v38 }
  0xd1   : > { %9695 = vmatmul.mubr.msk.f32.gmra.mxu0 %vm332_vm1, %v10894_v48 }
  0xd2   : > { %9745 = vmatmul.mubr.msk.f32.gmra.mxu1 %vm332_vm1, %v11161_v45  ;;  %9697 = vmatprep.mubr.msk.f32.mxu0 %vm332_vm1, %v10900_v50 }
  0xd3   : > { %9747 = vmatprep.mubr.msk.f32.mxu1 %vm332_vm1, %v11166_v42 }
  0xd5   : > { %9698 = vmatmul.mubr.msk.f32.gmra.mxu0 %vm332_vm1, %v10914_v52 }
  0xd6   : > { %9748 = vmatmul.mubr.msk.f32.gmra.mxu1 %vm332_vm1, %v11175_v49  ;;  %9700 = vmatprep.mubr.msk.f32.mxu0 %vm332_vm1, %v10920_v54  ;;  %v13913_v49 = vld [vmem:[#allocation36_spill] sm:$0xff] }
  0xd7   : > { %9750 = vmatprep.mubr.msk.f32.mxu1 %vm332_vm1, %v11180_v47  ;;  %v11376_v47 = vld [vmem:[%s10659_s26 + $0x182] sm:$0xff] }
  0xd9   : > { %9701 = vmatmul.mubr.msk.f32.gmra.mxu0 %vm332_vm1, %v10934_v56 }
  0xda   : > { %9751 = vmatmul.mubr.msk.f32.gmra.mxu1 %vm332_vm1, %v11189_v53  ;;  %9703 = vmatprep.mubr.msk.f32.mxu0 %vm332_vm1, %v10940_v58  ;;  %v11390_v53 = vld [vmem:[%s10659_s26 + $0x18a] sm:$0xff] }
  0xdb   : > { %9753 = vmatprep.mubr.msk.f32.mxu1 %vm332_vm1, %v11194_v55  ;;  %v13914_v55 = vld [vmem:[#allocation9_spill] sm:$0xff] }
  0xdd   : > { %9704 = vmatmul.mubr.msk.f32.gmra.mxu0 %vm332_vm1, %v10954_v60 }
  0xde   : > { %9754 = vmatmul.mubr.msk.f32.gmra.mxu1 %vm332_vm1, %v11203_v57  ;;  %9706 = vmatprep.mubr.msk.f32.mxu0 %vm332_vm1, %v10960_v62 }
  0xdf   : > { %9756 = vmatprep.mubr.msk.f32.mxu1 %vm332_vm1, %v11208_v51  ;;  %v11385_v51 = vld [vmem:[%s10659_s26 + $0x189] sm:$0xff] }
  0xe1   : > { %9707 = vmatmul.mubr.msk.f32.gmra.mxu0 %vm332_vm1, %v10974_v0 }
  0xe2   : > { %9757 = vmatmul.mubr.msk.f32.gmra.mxu1 %vm332_vm1, %v11217_v61  ;;  %9709 = vmatprep.mubr.msk.f32.mxu0 %vm332_vm1, %v13912_v7  ;;  %v13915_v61 = vld [vmem:[#allocation10_spill] sm:$0xff] }
  0xe3   : > { %9759 = vmatprep.mubr.msk.f32.mxu1 %vm332_vm1, %v11222_v59 }
  0xe5   : > { %9710 = vmatmul.mubr.msk.f32.gmra.mxu0 %vm332_vm1, %v13913_v49 }
  0xe6   : > { %9760 = vmatmul.mubr.msk.f32.gmra.mxu1 %vm332_vm1, %v11234_v1  ;;  %9712 = vmatprep.mubr.msk.f32.mxu0 %vm332_vm1, %v11373_v9 }
  0xe7   : > { %9762 = vmatprep.mubr.msk.f32.mxu1 %vm332_vm1, %v11376_v47 }
  0xe9   : > { %9713 = vmatmul.mubr.msk.f32.gmra.mxu0 %vm332_vm1, %v11385_v51 }
  0xea   : > { %9763 = vmatmul.mubr.msk.f32.gmra.mxu1 %vm332_vm1, %v11390_v53  ;;  %9767 = vmatprep.mubr.msk.f32.mxu0 %vm332_vm1, %v13914_v55 }
  0xeb   : > { %9817 = vmatprep.mubr.msk.f32.mxu1 %vm332_vm1, %v10701_v11 }
  0xed   : > { %v9469_v57 = vpop.f32.mrf.mxu0  ;;  %9768 = vmatmul.mubr.msk.f32.vlgmr.msra.gmra.mxu0 %vm332_vm1, %v13915_v61  ;;  %v13917_v61 = vld [vmem:[#allocation12_spill] sm:$0xff] }
  0xee   : > { %v9519_v59 = vpop.f32.mrf.mxu1  ;;  %9818 = vmatmul.mubr.msk.f32.vlgmr.msra.gmra.mxu1 %vm332_vm1, %v10715_v13  ;;  %9866 = vmatpush3.msk.msra.mxu0 %vm429_vm0, %v11256_v12  ;;  %v13918_v12 = vld [vmem:[#allocation13_spill] sm:$0xff] }
  0xef   : > { %v11404_v1 = vadd.f32 %v9519_v59, %v9469_v57  ;;  %9770 = vmatprep.mubr.msk.f32.mxu0 %vm332_vm1, %v13916_v2  ;;  %v499_v4 = vpop.f32.mrf.mxu0  ;;  %9820 = vmatprep.mubr.msk.f32.mxu1 %vm332_vm1, %v10721_v15 }
  0xf0   : > { %v823_v6 = vpop.f32.mrf.mxu1 }
  0xf1   : > { %v11412_v11 = vadd.f32 %v823_v6, %v499_v4  ;;  %v9472_v8 = vpop.f32.mrf.mxu0  ;;  %9771 = vmatmul.mubr.msk.f32.gmra.mxu0 %vm332_vm1, %v13917_v61  ;;  %v13919_v6 = vld [vmem:[#allocation14_spill] sm:$0xff] }
  0xf2   : > { %v9522_v55 = vpop.f32.mrf.mxu1  ;;  %9821 = vmatmul.mubr.msk.f32.gmra.mxu1 %vm332_vm1, %v10735_v17  ;;  %9773 = vmatprep.mubr.msk.f32.mxu0 %vm332_vm1, %v13918_v12 }
  0xf3   : > { %v11418_v13 = vadd.f32 %v9522_v55, %v9472_v8  ;;  %9823 = vmatprep.mubr.msk.f32.mxu1 %vm332_vm1, %v10741_v19  ;;  %v509_v57 = vpop.f32.mrf.mxu0  ;;  %v13920_v8 = vld [vmem:[#allocation15_spill] sm:$0xff] }
  0xf4   : > { %v833_v15 = vpop.f32.mrf.mxu1 }
  0xf5   : > { %v11424_v59 = vadd.f32 %v833_v15, %v509_v57  ;;  %v9475_v2 = vpop.f32.mrf.mxu0  ;;  %9774 = vmatmul.mubr.msk.f32.gmra.mxu0 %vm332_vm1, %v13919_v6  ;;  %v13921_v15 = vld [vmem:[#allocation16_spill] sm:$0xff] }
  0xf6   : > { %v9525_v4 = vpop.f32.mrf.mxu1  ;;  %9824 = vmatmul.mubr.msk.f32.gmra.mxu1 %vm332_vm1, %v10755_v21  ;;  %9776 = vmatprep.mubr.msk.f32.mxu0 %vm332_vm1, %v13920_v8 }
  0xf7   : > { %v11430_v17 = vadd.f32 %v9525_v4, %v9475_v2  ;;  %9826 = vmatprep.mubr.msk.f32.mxu1 %vm332_vm1, %v10761_v23  ;;  %v519_v19 = vpop.f32.mrf.mxu0  ;;  %v13922_v2 = vld [vmem:[#allocation17_spill] sm:$0xff] }
  0xf8   : > { %v843_v55 = vpop.f32.mrf.mxu1 }
  0xf9   : > { %v11436_v61 = vadd.f32 %v843_v55, %v519_v19  ;;  %v9478_v12 = vpop.f32.mrf.mxu0  ;;  %9777 = vmatmul.mubr.msk.f32.gmra.mxu0 %vm332_vm1, %v13921_v15  ;;  %v13923_v55 = vld [vmem:[#allocation18_spill] sm:$0xff] }
  0xfa   : > { %v9528_v57 = vpop.f32.mrf.mxu1  ;;  %9827 = vmatmul.mubr.msk.f32.gmra.mxu1 %vm332_vm1, %v10775_v25  ;;  %9779 = vmatprep.mubr.msk.f32.mxu0 %vm332_vm1, %v13922_v2 }
  0xfb   : > { %v11442_v21 = vadd.f32 %v9528_v57, %v9478_v12  ;;  %9829 = vmatprep.mubr.msk.f32.mxu1 %vm332_vm1, %v10781_v27  ;;  %v529_v23 = vpop.f32.mrf.mxu0  ;;  %v13924_v12 = vld [vmem:[#allocation19_spill] sm:$0xff] }
  0xfc   : > { %v853_v4 = vpop.f32.mrf.mxu1 }
  0xfd   : > { %v11448_v6 = vadd.f32 %v853_v4, %v529_v23  ;;  %v9481_v8 = vpop.f32.mrf.mxu0  ;;  %9780 = vmatmul.mubr.msk.f32.gmra.mxu0 %vm332_vm1, %v13923_v55  ;;  %v13925_v4 = vld [vmem:[#allocation20_spill] sm:$0xff] }
  0xfe   : > { %v9531_v19 = vpop.f32.mrf.mxu1  ;;  %9830 = vmatmul.mubr.msk.f32.gmra.mxu1 %vm332_vm1, %v10804_v31  ;;  %9782 = vmatprep.mubr.msk.f32.mxu0 %vm332_vm1, %v13924_v12 }
  0xff   : > { %v11454_v25 = vadd.f32 %v9531_v19, %v9481_v8  ;;  %9832 = vmatprep.mubr.msk.f32.mxu1 %vm332_vm1, %v10810_v33  ;;  %v539_v27 = vpop.f32.mrf.mxu0  ;;  %v13926_v8 = vld [vmem:[#allocation21_spill] sm:$0xff] }
 0x100   : > { %v863_v57 = vpop.f32.mrf.mxu1 }
 0x101   : > { %v11460_v15 = vadd.f32 %v863_v57, %v539_v27  ;;  %v9484_v2 = vpop.f32.mrf.mxu0  ;;  %9783 = vmatmul.mubr.msk.f32.gmra.mxu0 %vm332_vm1, %v13925_v4  ;;  %v13927_v57 = vld [vmem:[#allocation22_spill] sm:$0xff] }
 0x102   : > { %v9534_v23 = vpop.f32.mrf.mxu1  ;;  %9833 = vmatmul.mubr.msk.f32.gmra.mxu1 %vm332_vm1, %v10827_v35  ;;  %9785 = vmatprep.mubr.msk.f32.mxu0 %vm332_vm1, %v13926_v8 }
 0x103   : > { %v11466_v31 = vadd.f32 %v9534_v23, %v9484_v2  ;;  %9835 = vmatprep.mubr.msk.f32.mxu1 %vm332_vm1, %v10833_v37  ;;  %v549_v33 = vpop.f32.mrf.mxu0  ;;  %v13928_v2 = vld [vmem:[#allocation23_spill] sm:$0xff] }
 0x104   : > { %v873_v19 = vpop.f32.mrf.mxu1 }
 0x105   : > { %v11472_v55 = vadd.f32 %v873_v19, %v549_v33  ;;  %v9487_v12 = vpop.f32.mrf.mxu0  ;;  %9786 = vmatmul.mubr.msk.f32.gmra.mxu0 %vm332_vm1, %v13927_v57  ;;  %v13929_v19 = vld [vmem:[#allocation24_spill] sm:$0xff] }
 0x106   : > { %v9537_v27 = vpop.f32.mrf.mxu1  ;;  %9836 = vmatmul.mubr.msk.f32.gmra.mxu1 %vm332_vm1, %v10847_v39  ;;  %9788 = vmatprep.mubr.msk.f32.mxu0 %vm332_vm1, %v13928_v2 }
 0x107   : > { %v11478_v35 = vadd.f32 %v9537_v27, %v9487_v12  ;;  %9838 = vmatprep.mubr.msk.f32.mxu1 %vm332_vm1, %v10853_v41  ;;  %v559_v37 = vpop.f32.mrf.mxu0  ;;  %v13930_v12 = vld [vmem:[#allocation25_spill] sm:$0xff] }
 0x108   : > { %v883_v23 = vpop.f32.mrf.mxu1 }
 0x109   : > { %v11484_v4 = vadd.f32 %v883_v23, %v559_v37  ;;  %v9490_v8 = vpop.f32.mrf.mxu0  ;;  %9789 = vmatmul.mubr.msk.f32.gmra.mxu0 %vm332_vm1, %v13929_v19  ;;  %v13931_v23 = vld [vmem:[#allocation26_spill] sm:$0xff] }
 0x10a   : > { %v9540_v33 = vpop.f32.mrf.mxu1  ;;  %9839 = vmatmul.mubr.msk.f32.gmra.mxu1 %vm332_vm1, %v10874_v44  ;;  %9791 = vmatprep.mubr.msk.f32.mxu0 %vm332_vm1, %v13930_v12 }
 0x10b   : > { %v11490_v39 = vadd.f32 %v9540_v33, %v9490_v8  ;;  %9841 = vmatprep.mubr.msk.f32.mxu1 %vm332_vm1, %v10880_v46  ;;  %v569_v41 = vpop.f32.mrf.mxu0  ;;  %v13932_v8 = vld [vmem:[#allocation27_spill] sm:$0xff] }
 0x10c   : > { %v893_v27 = vpop.f32.mrf.mxu1 }
 0x10d   : > { %v11496_v57 = vadd.f32 %v893_v27, %v569_v41  ;;  %v9493_v2 = vpop.f32.mrf.mxu0  ;;  %9792 = vmatmul.mubr.msk.f32.gmra.mxu0 %vm332_vm1, %v13931_v23  ;;  %v13933_v41 = vld [vmem:[#allocation28_spill] sm:$0xff]  ;;  %v13934_v27 = vld [vmem:[#allocation29_spill] sm:$0xff] }
 0x10e   : > { %v9543_v37 = vpop.f32.mrf.mxu1  ;;  %9842 = vmatmul.mubr.msk.f32.gmra.mxu1 %vm332_vm1, %v10894_v48  ;;  %9794 = vmatprep.mubr.msk.f32.mxu0 %vm332_vm1, %v13932_v8  ;;  %v13936_v8 = vld [vmem:[#allocation30_spill] sm:$0xff] }
 0x10f   : > { %v11502_v44 = vadd.f32 %v9543_v37, %v9493_v2  ;;  %9844 = vmatprep.mubr.msk.f32.mxu1 %vm332_vm1, %v10900_v50  ;;  %v11508_v46 = vpop.f32.mrf.mxu0 }
 0x110   : > { %v11510_v33 = vpop.f32.mrf.mxu1 }
 0x111   : > { %v9496_v19 = vpop.f32.mrf.mxu0  ;;  %9795 = vmatmul.mubr.msk.f32.gmra.mxu0 %vm332_vm1, %v13933_v41 }
 0x112   : > { %v9546_v12 = vpop.f32.mrf.mxu1  ;;  %9845 = vmatmul.mubr.msk.f32.gmra.mxu1 %vm332_vm1, %v10914_v52  ;;  %9797 = vmatprep.mubr.msk.f32.mxu0 %vm332_vm1, %v13934_v27 }
 0x113   : > { %v11516_v48 = vadd.f32 %v9546_v12, %v9496_v19  ;;  %9847 = vmatprep.mubr.msk.f32.mxu1 %vm332_vm1, %v10920_v54  ;;  %v11522_v50 = vpop.f32.mrf.mxu0  ;;  %v13937_v19 = vld [vmem:[#allocation31_spill] sm:$0xff] }
 0x114   : > { %v11524_v2 = vpop.f32.mrf.mxu1 }
 0x115   : > { %13935 = vst [vmem:[#allocation35_spill] sm:$0xff] %v11524_v2  ;;  %v9499_v37 = vpop.f32.mrf.mxu0  ;;  %9798 = vmatmul.mubr.msk.f32.gmra.mxu0 %vm332_vm1, %v13936_v8  ;;  %v13939_v2 = vld [vmem:[#allocation32_spill] sm:$0xff] }
 0x116   : > { %v9549_v23 = vpop.f32.mrf.mxu1  ;;  %9848 = vmatmul.mubr.msk.f32.gmra.mxu1 %vm332_vm1, %v10934_v56  ;;  %9800 = vmatprep.mubr.msk.f32.mxu0 %vm332_vm1, %v13937_v19 }
 0x117   : > { %v11530_v52 = vadd.f32 %v9549_v23, %v9499_v37  ;;  %9850 = vmatprep.mubr.msk.f32.mxu1 %vm332_vm1, %v10940_v58  ;;  %v11536_v54 = vpop.f32.mrf.mxu0  ;;  %v13940_v37 = vld [vmem:[#allocation33_spill] sm:$0xff] }
 0x118   : > { %v11538_v12 = vpop.f32.mrf.mxu1 }
 0x119   : > { %13938 = vst [vmem:[#allocation36_spill] sm:$0xff] %v11538_v12  ;;  %v9502_v41 = vpop.f32.mrf.mxu0  ;;  %9801 = vmatmul.mubr.msk.f32.gmra.mxu0 %vm332_vm1, %v13939_v2  ;;  %v13941_v12 = vld [vmem:[#allocation34_spill] sm:$0xff] }
 0x11a   : > { %v9552_v27 = vpop.f32.mrf.mxu1  ;;  %9851 = vmatmul.mubr.msk.f32.gmra.mxu1 %vm332_vm1, %v10954_v60  ;;  %9803 = vmatprep.mubr.msk.f32.mxu0 %vm332_vm1, %v13940_v37  ;;  %v8399_v37 = vld [vmem:[%s10659_s26 + $0x198] sm:$0xff] }
 0x11b   : > { %v11544_v56 = vadd.f32 %v9552_v27, %v9502_v41  ;;  %9853 = vmatprep.mubr.msk.f32.mxu1 %vm332_vm1, %v10960_v62  ;;  %v11550_v58 = vpop.f32.mrf.mxu0 }
 0x11c   : > { %v11552_v23 = vpop.f32.mrf.mxu1 }
 0x11d   : > { %v9505_v8 = vpop.f32.mrf.mxu0  ;;  %9804 = vmatmul.mubr.msk.f32.gmra.mxu0 %vm332_vm1, %v13941_v12 }
 0x11e   : > { %v9555_v19 = vpop.f32.mrf.mxu1  ;;  %9854 = vmatmul.mubr.msk.f32.gmra.mxu1 %vm332_vm1, %v10974_v0  ;;  %9806 = vmatprep.mubr.msk.f32.mxu0 %vm332_vm1, %v10983_v3  ;;  %v13942_v3 = vld [vmem:[#allocation37_spill] sm:$0xff] }
 0x11f   : > { %v11558_v60 = vadd.f32 %v9555_v19, %v9505_v8  ;;  %9856 = vmatprep.mubr.msk.f32.mxu1 %vm332_vm1, %v13912_v7  ;;  %v11564_v62 = vpop.f32.mrf.mxu0  ;;  %v8465_v8 = vld [vmem:[%s10659_s26 + $0x199] sm:$0xff] }
 0x120   : > { %v11566_v2 = vpop.f32.mrf.mxu1 }
 0x121   : > { %v9508_v41 = vpop.f32.mrf.mxu0  ;;  %9807 = vmatmul.mubr.msk.f32.gmra.mxu0 %vm332_vm1, %v10997_v5 }
 0x122   : > { %v9558_v27 = vpop.f32.mrf.mxu1  ;;  %9857 = vmatmul.mubr.msk.f32.gmra.mxu1 %vm332_vm1, %v13913_v49  ;;  %9809 = vmatprep.mubr.msk.f32.mxu0 %vm332_vm1, %v13942_v3 }
 0x123   : > { %v11572_v0 = vadd.f32 %v9558_v27, %v9508_v41  ;;  %9859 = vmatprep.mubr.msk.f32.mxu1 %vm332_vm1, %v11373_v9  ;;  %v11578_v7 = vpop.f32.mrf.mxu0  ;;  %v8400_v41 = vld [vmem:[%s10659_s26 + $0x1a0] sm:$0xff] }
 0x124   : > { %13943 = vst [vmem:[#allocation9_spill] sm:$0xff] %v11578_v7  ;;  %v11580_v12 = vpop.f32.mrf.mxu1  ;;  %v8466_v9 = vld [vmem:[%s10659_s26 + $0x1a1] sm:$0xff] }
 0x125   : > { %13944 = vst [vmem:[#allocation10_spill] sm:$0xff] %v11580_v12  ;;  %v9511_v19 = vpop.f32.mrf.mxu0  ;;  %9810 = vmatmul.mubr.msk.f32.gmra.mxu0 %vm332_vm1, %v11239_v63 }
 0x126   : > { %v9561_v5 = vpop.f32.mrf.mxu1  ;;  %9860 = vmatmul.mubr.msk.f32.gmra.mxu1 %vm332_vm1, %v11385_v51  ;;  %9812 = vmatprep.mubr.msk.f32.mxu0 %vm332_vm1, %v8399_v37 }
 0x127   : > { %v11588_v49 = vadd.f32 %v9561_v5, %v9511_v19  ;;  %9862 = vmatprep.mubr.msk.f32.mxu1 %vm332_vm1, %v8465_v8  ;;  %v11594_v27 = vpop.f32.mrf.mxu0 }
 0x128   : > { %13945 = vst [vmem:[#allocation11_spill] sm:$0xff] %v11594_v27  ;;  %v11596_v3 = vpop.f32.mrf.mxu1 }
 0x129   : > { %13946 = vst [vmem:[#allocation12_spill] sm:$0xff] %v11596_v3  ;;  %v9514_v12 = vpop.f32.mrf.mxu0  ;;  %9813 = vmatmul.mubr.msk.f32.gmra.mxu0 %vm332_vm1, %v8400_v41 }
 0x12a   : > { %v9564_v7 = vpop.f32.mrf.mxu1  ;;  %9863 = vmatmul.mubr.msk.f32.gmra.mxu1 %vm332_vm1, %v8466_v9  ;;  %9867 = vmatprep.mubr.msk.f32.mxu0 %vm332_vm1, %v11034_v10 }
 0x12b   : > { %v11600_v63 = vadd.f32 %v9564_v7, %v9514_v12  ;;  %v11604_v51 = vpop.f32.mrf.mxu0 }
 0x12c   : > { %13947 = vst [vmem:[#allocation13_spill] sm:$0xff] %v11604_v51  ;;  %v11606_v37 = vpop.f32.mrf.mxu1 }
 0x12d   : > { %13948 = vst [vmem:[#allocation14_spill] sm:$0xff] %v11606_v37  ;;  %v9569_v8 = vpop.f32.mrf.mxu0  ;;  %9868 = vmatmul.mubr.msk.f32.vlgmr.msra.gmra.mxu0 %vm332_vm1, %v11049_v30 }
 0x12e   : > { %v9619_v19 = vpop.f32.mrf.mxu1  ;;  %v1341_v5 = vadd.f32 %v9569_v8, %v11404_v1  ;;  %9870 = vmatprep.mubr.msk.f32.mxu0 %vm332_vm1, %v11054_v43 }
 0x12f   : > { %v1181_v41 = vpop.f32.mrf.mxu0 }
 0x130   : > { %v11613_v7 = vpop.f32.mrf.mxu1  ;;  %v11616_v12 = vadd.f32 %v1181_v41, %v11412_v11  ;;  %v11618_v10 = vadd.f32 %v9619_v19, %v1341_v5 }
 0x131   : > { %v9572_v9 = vpop.f32.mrf.mxu0  ;;  %9871 = vmatmul.mubr.msk.f32.gmra.mxu0 %vm332_vm1, %v11063_v29 }
 0x132   : > { %v9622_v37 = vpop.f32.mrf.mxu1  ;;  %v1343_v30 = vadd.f32 %v9572_v9, %v11418_v13  ;;  %9873 = vmatprep.mubr.msk.f32.mxu0 %vm332_vm1, %v11068_v14 }
 0x133   : > { %v1191_v1 = vpop.f32.mrf.mxu0 }
 0x134   : > { %v11625_v43 = vpop.f32.mrf.mxu1  ;;  %v11628_v8 = vadd.f32 %v1191_v1, %v11424_v59  ;;  %v11630_v11 = vadd.f32 %v9622_v37, %v1343_v30  ;;  %v8568_v1 = vld [vmem:[%s13809_s3 + $0x8] sm:$0xff] }
 0x135   : > { %v9575_v19 = vpop.f32.mrf.mxu0  ;;  %9874 = vmatmul.mubr.msk.f32.gmra.mxu0 %vm332_vm1, %v11077_v18  ;;  %9915 = vmatprep.subr.mxu1 %v8568_v1 }
 0x136   : > { %v9625_v5 = vpop.f32.mrf.mxu1  ;;  %v1345_v29 = vadd.f32 %v9575_v19, %v11430_v17  ;;  %9876 = vmatprep.mubr.msk.f32.mxu0 %vm332_vm1, %v11082_v16  ;;  %9916 = vmatpush3.msra.mxu1 %v8568_v1 }
 0x137   : > { %v1201_v13 = vpop.f32.mrf.mxu0 }
 0x138   : > { %v11637_v14 = vpop.f32.mrf.mxu1  ;;  %v11640_v41 = vadd.f32 %v1201_v13, %v11436_v61  ;;  %v11642_v59 = vadd.f32 %v9625_v5, %v1345_v29 }
 0x139   : > { %v9578_v37 = vpop.f32.mrf.mxu0  ;;  %9877 = vmatmul.mubr.msk.f32.gmra.mxu0 %vm332_vm1, %v11091_v22 }
 0x13a   : > { %v9628_v9 = vpop.f32.mrf.mxu1  ;;  %v1347_v18 = vadd.f32 %v9578_v37, %v11442_v21  ;;  %9879 = vmatprep.mubr.msk.f32.mxu0 %vm332_vm1, %v11096_v20 }
 0x13b   : > { %v1211_v17 = vpop.f32.mrf.mxu0 }
 0x13c   : > { %v11649_v16 = vpop.f32.mrf.mxu1  ;;  %v11652_v30 = vadd.f32 %v1211_v17, %v11448_v6  ;;  %v11654_v61 = vadd.f32 %v9628_v9, %v1347_v18 }
 0x13d   : > { %v9581_v19 = vpop.f32.mrf.mxu0  ;;  %9880 = vmatmul.mubr.msk.f32.gmra.mxu0 %vm332_vm1, %v11105_v26 }
 0x13e   : > { %v9631_v22 = vpop.f32.mrf.mxu1  ;;  %v1349_v20 = vadd.f32 %v9581_v19, %v11454_v25  ;;  %9882 = vmatprep.mubr.msk.f32.mxu0 %vm332_vm1, %v11110_v24 }
 0x13f   : > { %v1221_v21 = vpop.f32.mrf.mxu0 }
 0x140   : > { %v11664_v6 = vpop.f32.mrf.mxu1  ;;  %v11667_v5 = vadd.f32 %v1221_v21, %v11460_v15  ;;  %v11669_v29 = vadd.f32 %v9631_v22, %v1349_v20 }
 0x141   : > { %v9584_v13 = vpop.f32.mrf.mxu0  ;;  %9883 = vmatmul.mubr.msk.f32.gmra.mxu0 %vm332_vm1, %v11119_v32 }
 0x142   : > { %v9634_v26 = vpop.f32.mrf.mxu1  ;;  %v1351_v37 = vadd.f32 %v9584_v13, %v11466_v31  ;;  %9885 = vmatprep.mubr.msk.f32.mxu0 %vm332_vm1, %v11124_v28 }
 0x143   : > { %v1231_v24 = vpop.f32.mrf.mxu0 }
 0x144   : > { %v11676_v25 = vpop.f32.mrf.mxu1  ;;  %v11679_v9 = vadd.f32 %v1231_v24, %v11472_v55  ;;  %v11681_v15 = vadd.f32 %v9634_v26, %v1351_v37  ;;  %v8521_v37 = vld [vmem:[%s10659_s26 + $0x122] sm:$0xff] }
 0x145   : > { %v9587_v18 = vpop.f32.mrf.mxu0  ;;  %9886 = vmatmul.mubr.msk.f32.gmra.mxu0 %vm332_vm1, %v11133_v36 }
 0x146   : > { %v9637_v17 = vpop.f32.mrf.mxu1  ;;  %v1353_v32 = vadd.f32 %v9587_v18, %v11478_v35  ;;  %9888 = vmatprep.mubr.msk.f32.mxu0 %vm332_vm1, %v11138_v34 }
 0x147   : > { %v1241_v31 = vpop.f32.mrf.mxu0 }
 0x148   : > { %v11688_v28 = vpop.f32.mrf.mxu1  ;;  %v11691_v1 = vadd.f32 %v1241_v31, %v11484_v4  ;;  %v11693_v55 = vadd.f32 %v9637_v17, %v1353_v32  ;;  %v8523_v32 = vld [vmem:[%s10659_s26 + $0x13a] sm:$0xff] }
 0x149   : > { %13949 = vst [vmem:[#allocation15_spill] sm:$0xff] %v11688_v28  ;;  %v9590_v19 = vpop.f32.mrf.mxu0  ;;  %9889 = vmatmul.mubr.msk.f32.gmra.mxu0 %vm332_vm1, %v11147_v40 }
 0x14a   : > { %13950 = vst [vmem:[#allocation16_spill] sm:$0xff] %v11691_v1  ;;  %v9640_v36 = vpop.f32.mrf.mxu1  ;;  %v1355_v35 = vadd.f32 %v9590_v19, %v11490_v39  ;;  %9891 = vmatprep.mubr.msk.f32.mxu0 %vm332_vm1, %v11152_v38  ;;  %v904_v39 = vadd.f32 %v11510_v33, %v11508_v46  ;;  %v8520_v38 = vld [vmem:[%s10659_s26 + $0x112] sm:$0xff] }
 0x14b   : > { %v1251_v34 = vpop.f32.mrf.mxu0 }
 0x14c   : > { %v11700_v22 = vpop.f32.mrf.mxu1  ;;  %v11703_v4 = vadd.f32 %v1251_v34, %v11496_v57  ;;  %v11705_v20 = vadd.f32 %v9640_v36, %v1355_v35 }
 0x14d   : > { %13951 = vst [vmem:[#allocation17_spill] sm:$0xff] %v11700_v22  ;;  %v9593_v21 = vpop.f32.mrf.mxu0  ;;  %9892 = vmatmul.mubr.msk.f32.gmra.mxu0 %vm332_vm1, %v11161_v45 }
 0x14e   : > { %13952 = vst [vmem:[#allocation18_spill] sm:$0xff] %v11703_v4  ;;  %v9643_v40 = vpop.f32.mrf.mxu1  ;;  %v1357_v13 = vadd.f32 %v9593_v21, %v11502_v44  ;;  %9894 = vmatprep.mubr.msk.f32.mxu0 %vm332_vm1, %v11166_v42  ;;  %v8522_v42 = vld [vmem:[%s10659_s26 + $0x12a] sm:$0xff] }
 0x14f   : > { %v1261_v57 = vpop.f32.mrf.mxu0 }
 0x150   : > { %v11715_v26 = vpop.f32.mrf.mxu1  ;;  %v11718_v24 = vadd.f32 %v1261_v57, %v904_v39  ;;  %v11720_v18 = vadd.f32 %v9643_v40, %v1357_v13  ;;  %v8525_v40 = vld [vmem:[%s10659_s26 + $0x152] sm:$0xff] }
 0x151   : > { %13953 = vst [vmem:[#allocation19_spill] sm:$0xff] %v11715_v26  ;;  %v9596_v45 = vpop.f32.mrf.mxu0  ;;  %9895 = vmatmul.mubr.msk.f32.gmra.mxu0 %vm332_vm1, %v8520_v38 }
 0x152   : > { %13954 = vst [vmem:[#allocation20_spill] sm:$0xff] %v11718_v24  ;;  %v9646_v46 = vpop.f32.mrf.mxu1  ;;  %v1359_v44 = vadd.f32 %v9596_v45, %v11516_v48  ;;  %9897 = vmatprep.mubr.msk.f32.mxu0 %vm332_vm1, %v8521_v37  ;;  %v8524_v48 = vld [vmem:[%s10659_s26 + $0x142] sm:$0xff] }
 0x153   : > { %v11726_v33 = vpop.f32.mrf.mxu0 }
 0x154   : > { %13955 = vst [vmem:[#allocation21_spill] sm:$0xff] %v11726_v33  ;;  %v11728_v17 = vpop.f32.mrf.mxu1  ;;  %v11731_v31 = vadd.f32 %v9646_v46, %v1359_v44  ;;  %v8527_v46 = vld [vmem:[%s10659_s26 + $0x16a] sm:$0xff] }
 0x155   : > { %13956 = vst [vmem:[#allocation22_spill] sm:$0xff] %v11728_v17  ;;  %v9599_v19 = vpop.f32.mrf.mxu0  ;;  %9898 = vmatmul.mubr.msk.f32.gmra.mxu0 %vm332_vm1, %v8522_v42 }
 0x156   : > { %v9649_v36 = vpop.f32.mrf.mxu1  ;;  %v1361_v35 = vadd.f32 %v9599_v19, %v11530_v52  ;;  %9900 = vmatprep.mubr.msk.f32.mxu0 %vm332_vm1, %v8523_v32  ;;  %v8526_v52 = vld [vmem:[%s10659_s26 + $0x15a] sm:$0xff] }
 0x157   : > { %v11737_v34 = vpop.f32.mrf.mxu0 }
 0x158   : > { %13957 = vst [vmem:[#allocation23_spill] sm:$0xff] %v11737_v34  ;;  %v11739_v21 = vpop.f32.mrf.mxu1  ;;  %v11742_v39 = vadd.f32 %v9649_v36, %v1361_v35 }
 0x159   : > { %13958 = vst [vmem:[#allocation24_spill] sm:$0xff] %v11739_v21  ;;  %v9602_v13 = vpop.f32.mrf.mxu0  ;;  %9901 = vmatmul.mubr.msk.f32.gmra.mxu0 %vm332_vm1, %v8524_v48 }
 0x15a   : > { %v9652_v38 = vpop.f32.mrf.mxu1  ;;  %v1363_v57 = vadd.f32 %v9602_v13, %v11544_v56  ;;  %9903 = vmatprep.mubr.msk.f32.mxu0 %vm332_vm1, %v8525_v40  ;;  %v8528_v56 = vld [vmem:[%s10659_s26 + $0x172] sm:$0xff] }
 0x15b   : > { %v11748_v37 = vpop.f32.mrf.mxu0 }
 0x15c   : > { %13959 = vst [vmem:[#allocation25_spill] sm:$0xff] %v11748_v37  ;;  %v11750_v45 = vpop.f32.mrf.mxu1  ;;  %v11753_v44 = vadd.f32 %v9652_v38, %v1363_v57 }
 0x15d   : > { %13960 = vst [vmem:[#allocation26_spill] sm:$0xff] %v11750_v45  ;;  %v9605_v42 = vpop.f32.mrf.mxu0  ;;  %9904 = vmatmul.mubr.msk.f32.gmra.mxu0 %vm332_vm1, %v8526_v52  ;;  %v8531_v52 = vld [vmem:[%s10659_s26 + $0x19a] sm:$0xff] }
 0x15e   : > { %v9655_v32 = vpop.f32.mrf.mxu1  ;;  %v1365_v19 = vadd.f32 %v9605_v42, %v11558_v60  ;;  %9906 = vmatprep.mubr.msk.f32.mxu0 %vm332_vm1, %v8527_v46 }
 0x15f   : > { %v11759_v36 = vpop.f32.mrf.mxu0 }
 0x160   : > { %13961 = vst [vmem:[#allocation27_spill] sm:$0xff] %v11759_v36  ;;  %v11761_v35 = vpop.f32.mrf.mxu1  ;;  %v11763_v48 = vadd.f32 %v9655_v32, %v1365_v19 }
 0x161   : > { %13962 = vst [vmem:[#allocation28_spill] sm:$0xff] %v11761_v35  ;;  %v9608_v40 = vpop.f32.mrf.mxu0  ;;  %9907 = vmatmul.mubr.msk.f32.gmra.mxu0 %vm332_vm1, %v8528_v56 }
 0x162   : > { %v9658_v13 = vpop.f32.mrf.mxu1  ;;  %v1367_v38 = vadd.f32 %v9608_v40, %v11572_v0  ;;  %9909 = vmatprep.mubr.msk.f32.mxu0 %vm332_vm1, %v11376_v47  ;;  %v8532_v0 = vld [vmem:[%s10659_s26 + $0x1a2] sm:$0xff]  ;;  %s10486_s26 = sshll.u32 %s10552_s12, 4  ;;  %s10487_s26 = int_to_ptr.vmem [resolvable:$false] %s10486_s26 }
 0x163   : > { %v11769_v60 = vpop.f32.mrf.mxu0  ;;  %s10488_s13 = scalar_lea.vmem %s10487_s26, 2048  ;;  %p10489_p11 = scmp.lt.s32.totalorder %s13767_s28, %s10487_s26 }
 0x164   : > { %13963 = vst [vmem:[#allocation29_spill] sm:$0xff] %v11769_v60  ;;  %v11771_v57 = vpop.f32.mrf.mxu1  ;;  %v11774_v46 = vadd.f32 %v9658_v13, %v1367_v38  ;;  %p10490_p12 = scmp.lt.s32.totalorder %s10488_s13, %s10482_s11 }
 0x165   : > { %13964 = vst [vmem:[#allocation30_spill] sm:$0xff] %v11771_v57  ;;  %v9611_v42 = vpop.f32.mrf.mxu0  ;;  %9910 = vmatmul.mubr.msk.f32.gmra.mxu0 %vm332_vm1, %v11390_v53 }
 0x166   : > { %v9661_v32 = vpop.f32.mrf.mxu1  ;;  %v1369_v19 = vadd.f32 %v9611_v42, %v11588_v49  ;;  %9912 = vmatprep.mubr.msk.f32.mxu0 %vm332_vm1, %v8531_v52  ;;  %p10491_p13 = por %p10490_p12, %p10489_p11 }
 0x167   : > { %v11781_v56 = vpop.f32.mrf.mxu0 }
 0x168   : > { %13965 = vst [vmem:[#allocation31_spill] sm:$0xff] %v11781_v56  ;;  %v11783_v47 = vpop.f32.mrf.mxu1  ;;  %v11785_v40 = vadd.f32 %v9661_v32, %v1369_v19  ;;  %p10492_p0 = pnand %p10491_p13, %p10485_p10 }
 0x169   : > { %13966 = vst [vmem:[#allocation32_spill] sm:$0xff] %v11783_v47  ;;  %v9614_v57 = vpop.f32.mrf.mxu0  ;;  %9913 = vmatmul.mubr.msk.f32.gmra.mxu0 %vm332_vm1, %v8532_v0  ;;  %v10551_v0 = vmov 0.0   ;;  %v3906_v47 = vld [vmem:[%s13809_s3] sm:$0xff] }
 0x16a   : > { %v9664_v13 = vpop.f32.mrf.mxu1  ;;  %v1371_v38 = vadd.f32 %v9614_v57, %v11600_v63  ;;  %3791 = vst.msk [vmem:[#allocation2 + $0x20] sm:$0xff] %vm3785_vm2, %v10551_v0  ;;  %3786 = vst.msk [vmem:[#allocation2] sm:$0xff] %vm3785_vm2, %v10551_v0  ;;  %9965 = vmatprep.subr.mxu0 %v3906_v47 }
 0x16b   : > { %v11789_v60 = vpop.f32.mrf.mxu0  ;;  %3787 = vst.msk [vmem:[#allocation2 + $0x8] sm:$0xff] %vm3785_vm2, %v10551_v0  ;;  %3790 = vst.msk [vmem:[#allocation2 + $0x18] sm:$0xff] %vm3785_vm2, %v10551_v0  ;;  %9966 = vmatpush3.msra.mxu0 %v3906_v47 }
 0x16c   : > { %13967 = vst [vmem:[#allocation33_spill] sm:$0xff] %v11789_v60  ;;  %v11791_v53 = vpop.f32.mrf.mxu1  ;;  %v11793_v49 = vadd.f32 %v9664_v13, %v1371_v38  ;;  %3793 = vst.msk [vmem:[#allocation2 + $0x30] sm:$0xff] %vm3785_vm2, %v10551_v0 }
 0x16d   : > { %13968 = vst [vmem:[#allocation34_spill] sm:$0xff] %v11791_v53  ;;  %v9669_v52 = vpop.f32.mrf.mxu0  ;;  %3794 = vst.msk [vmem:[#allocation2 + $0x38] sm:$0xff] %vm3785_vm2, %v10551_v0 }
 0x16e   : > { %v11795_v42 = vpop.f32.mrf.mxu1  ;;  %v11798_v56 = vadd.f32 %v9669_v52, %v11618_v10  ;;  %3796 = vst.msk [vmem:[#allocation2 + $0x48] sm:$0xff] %vm3785_vm2, %v10551_v0  ;;  %3797 = vst.msk [vmem:[#allocation2 + $0x50] sm:$0xff] %vm3785_vm2, %v10551_v0 }
 0x16f   : > { %v11800_v32 = vpop.f32.mrf.mxu0  ;;  %3799 = vst.msk [vmem:[#allocation2 + $0x60] sm:$0xff] %vm3785_vm2, %v10551_v0  ;;  %3800 = vst.msk [vmem:[#allocation2 + $0x68] sm:$0xff] %vm3785_vm2, %v10551_v0 }
 0x170   : > { %v11802_v19 = vpop.f32.mrf.mxu1  ;;  %3802 = vst.msk [vmem:[#allocation2 + $0x78] sm:$0xff] %vm3785_vm2, %v10551_v0  ;;  %3803 = vst.msk [vmem:[#allocation2 + $0x80] sm:$0xff] %vm3785_vm2, %v10551_v0 }
 0x171   : > { %3805 = vst.msk [vmem:[#allocation2 + $0x90] sm:$0xff] %vm3785_vm2, %v10551_v0  ;;  %3806 = vst.msk [vmem:[#allocation2 + $0x98] sm:$0xff] %vm3785_vm2, %v10551_v0  ;;  %v9672_v63 = vpop.f32.mrf.mxu0 }
 0x172   : > { %3808 = vst.msk [vmem:[#allocation2 + $0xa8] sm:$0xff] %vm3785_vm2, %v10551_v0  ;;  %3809 = vst.msk [vmem:[#allocation2 + $0xb0] sm:$0xff] %vm3785_vm2, %v10551_v0  ;;  %v11840_v10 = vpop.f32.mrf.mxu1  ;;  %v11861_v57 = vadd.f32 %v9672_v63, %v11630_v11  ;;  %v3907_v11 = vld [vmem:[#allocation2 + $0x1] sm:$0xff] }
 0x173   : > { %3811 = vst.msk [vmem:[#allocation2 + $0xc0] sm:$0xff] %vm3785_vm2, %v10551_v0  ;;  %3812 = vst.msk [vmem:[#allocation2 + $0xc8] sm:$0xff] %vm3785_vm2, %v10551_v0  ;;  %v11863_v13 = vpop.f32.mrf.mxu0  ;;  %v3874_v63 = vld [vmem:[#allocation2] sm:$0xff]  ;;  %9917 = vmatprep.mubr.msk.f32.mxu1 %vm3785_vm2, %v3907_v11  ;;  %v3875_v45 = vld [vmem:[#allocation2 + $0x8] sm:$0xff] }
 0x174   : > { %3814 = vst.msk [vmem:[#allocation2 + $0xd8] sm:$0xff] %vm3785_vm2, %v10551_v0  ;;  %3815 = vst.msk [vmem:[#allocation2 + $0xe0] sm:$0xff] %vm3785_vm2, %v10551_v0  ;;  %v11865_v38 = vpop.f32.mrf.mxu1  ;;  %9967 = vmatprep.mubr.msk.f32.mxu0 %vm3785_vm2, %v3874_v63 }
 0x175   : > { %3817 = vst.msk [vmem:[#allocation2 + $0xf0] sm:$0xff] %vm3785_vm2, %v10551_v0  ;;  %3818 = vst.msk [vmem:[#allocation2 + $0xf8] sm:$0xff] %vm3785_vm2, %v10551_v0  ;;  %v9675_v52 = vpop.f32.mrf.mxu0  ;;  %9968 = vmatmul.mubr.msk.f32.vlgmr.msra.gmra.mxu0 %vm3785_vm2, %v3875_v45 }
 0x176   : > { %3820 = vst.msk [vmem:[#allocation2 + $0x108] sm:$0xff] %vm3785_vm2, %v10551_v0  ;;  %3821 = vst.msk [vmem:[#allocation2 + $0x110] sm:$0xff] %vm3785_vm2, %v10551_v0  ;;  %v11867_v53 = vpop.f32.mrf.mxu1  ;;  %v11870_v60 = vadd.f32 %v9675_v52, %v11642_v59 }
 0x177   : > { %3823 = vst.msk [vmem:[#allocation2 + $0x120] sm:$0xff] %vm3785_vm2, %v10551_v0  ;;  %3824 = vst.msk [vmem:[#allocation2 + $0x128] sm:$0xff] %vm3785_vm2, %v10551_v0  ;;  %v11875_v35 = vpop.f32.mrf.mxu0 }
 0x178   : > { %3826 = vst.msk [vmem:[#allocation2 + $0x138] sm:$0xff] %vm3785_vm2, %v10551_v0  ;;  %3827 = vst.msk [vmem:[#allocation2 + $0x140] sm:$0xff] %vm3785_vm2, %v10551_v0 }
 0x179   : > { %3829 = vst.msk [vmem:[#allocation2 + $0x150] sm:$0xff] %vm3785_vm2, %v10551_v0  ;;  %3830 = vst.msk [vmem:[#allocation2 + $0x158] sm:$0xff] %vm3785_vm2, %v10551_v0  ;;  %v9678_v37 = vpop.f32.mrf.mxu0 }
 0x17a   : > { %3832 = vst.msk [vmem:[#allocation2 + $0x168] sm:$0xff] %vm3785_vm2, %v10551_v0  ;;  %3833 = vst.msk [vmem:[#allocation2 + $0x170] sm:$0xff] %vm3785_vm2, %v10551_v0  ;;  %v11885_v59 = vadd.f32 %v9678_v37, %v11654_v61  ;;  %v8633_v37 = vld [vmem:[%s13809_s3 + $0x10] sm:$0xff] }
 0x17b   : > { %3835 = vst.msk [vmem:[#allocation2 + $0x180] sm:$0xff] %vm3785_vm2, %v10551_v0  ;;  %3836 = vst.msk [vmem:[#allocation2 + $0x188] sm:$0xff] %vm3785_vm2, %v10551_v0  ;;  %v11888_v52 = vpop.f32.mrf.mxu0  ;;  %10015 = vmatprep.subr.mxu1 %v8633_v37 }
 0x17c   : > { %3838 = vst.msk [vmem:[#allocation2 + $0x198] sm:$0xff] %vm3785_vm2, %v10551_v0  ;;  %3839 = vst.msk [vmem:[#allocation2 + $0x1a0] sm:$0xff] %vm3785_vm2, %v10551_v0 }
 0x17d   : > { %3792 = vst.msk [vmem:[#allocation2 + $0x28] sm:$0x3] %vm3788_vm3, %v10551_v0  ;;  %3789 = vst.msk [vmem:[#allocation2 + $0x10] sm:$0x3] %vm3788_vm3, %v10551_v0  ;;  %v9681_v11 = vpop.f32.mrf.mxu0 }
 0x17e   : > { %3795 = vst.msk [vmem:[#allocation2 + $0x40] sm:$0x3] %vm3788_vm3, %v10551_v0  ;;  %3798 = vst.msk [vmem:[#allocation2 + $0x58] sm:$0x3] %vm3788_vm3, %v10551_v0  ;;  %v11895_v17 = vadd.f32 %v9681_v11, %v11669_v29 }
 0x17f   : > { %3801 = vst.msk [vmem:[#allocation2 + $0x70] sm:$0x3] %vm3788_vm3, %v10551_v0  ;;  %3804 = vst.msk [vmem:[#allocation2 + $0x88] sm:$0x3] %vm3788_vm3, %v10551_v0  ;;  %v11897_v33 = vpop.f32.mrf.mxu0 }
 0x180   : > { %3807 = vst.msk [vmem:[#allocation2 + $0xa0] sm:$0x3] %vm3788_vm3, %v10551_v0  ;;  %3810 = vst.msk [vmem:[#allocation2 + $0xb8] sm:$0x3] %vm3788_vm3, %v10551_v0 }
 0x181   : > { %3813 = vst.msk [vmem:[#allocation2 + $0xd0] sm:$0x3] %vm3788_vm3, %v10551_v0  ;;  %3816 = vst.msk [vmem:[#allocation2 + $0xe8] sm:$0x3] %vm3788_vm3, %v10551_v0 }
 0x182   : > { %3819 = vst.msk [vmem:[#allocation2 + $0x100] sm:$0x3] %vm3788_vm3, %v10551_v0  ;;  %3822 = vst.msk [vmem:[#allocation2 + $0x118] sm:$0x3] %vm3788_vm3, %v10551_v0 }
 0x183   : > { %3825 = vst.msk [vmem:[#allocation2 + $0x130] sm:$0x3] %vm3788_vm3, %v10551_v0  ;;  %3828 = vst.msk [vmem:[#allocation2 + $0x148] sm:$0x3] %vm3788_vm3, %v10551_v0 }
 0x184   : > { %3831 = vst.msk [vmem:[#allocation2 + $0x160] sm:$0x3] %vm3788_vm3, %v10551_v0  ;;  %3834 = vst.msk [vmem:[#allocation2 + $0x178] sm:$0x3] %vm3788_vm3, %v10551_v0  ;;  %v3908_v36 = vld [vmem:[#allocation2 + $0x9] sm:$0xff] }
 0x185   : > { %3837 = vst.msk [vmem:[#allocation2 + $0x190] sm:$0x3] %vm3788_vm3, %v10551_v0  ;;  %3840 = vst.msk [vmem:[#allocation2 + $0x1a8] sm:$0x3] %vm3788_vm3, %v10551_v0  ;;  %v11877_v0 = vpop.f32.mrf.mxu1  ;;  %9918 = vmatmul.mubr.msk.f32.vlgmr.msra.gmra.mxu1 %vm3785_vm2, %v3908_v36  ;;  %v9684_v36 = vpop.f32.mrf.mxu0 }
 0x186   : > { %v11904_v61 = vadd.f32 %v9684_v36, %v11681_v15  ;;  %10016 = vmatpush3.msra.mxu1 %v8633_v37 }
 0x187   : > { %v11880_v21 = vpop.f32.mrf.mxu1  ;;  %v11909_v45 = vpop.f32.mrf.mxu0 }
 0x188   : > { %13970 = vst [vmem:[#allocation38_spill] sm:$0xff] %v11904_v61 }
 0x189   : > { %v11890_v34 = vpop.f32.mrf.mxu1  ;;  %v9687_v29 = vpop.f32.mrf.mxu0 }
 0x18a   : > { %v11916_v22 = vadd.f32 %v9687_v29, %v11693_v55 }
 0x18b   : > { %v11892_v47 = vpop.f32.mrf.mxu1  ;;  %v11918_v4 = vpop.f32.mrf.mxu0 }
 0x18c   : > { %13973 = vst [vmem:[#allocation41_spill] sm:$0xff] %v11916_v22  ;;  %13974 = vst [vmem:[#allocation42_spill] sm:$0xff] %v11918_v4 }
 0x18d   : > { %v11899_v63 = vpop.f32.mrf.mxu1  ;;  %v9690_v36 = vpop.f32.mrf.mxu0 }
 0x18e   : > { %v11925_v3 = vadd.f32 %v9690_v36, %v11705_v20 }
 0x18f   : > { %v11901_v26 = vpop.f32.mrf.mxu1  ;;  %v11927_v27 = vpop.f32.mrf.mxu0 }
 0x190   : > { %13969 = vst [vmem:[#allocation37_spill] sm:$0xff] %v11901_v26  ;;  %13977 = vst [vmem:[#allocation45_spill] sm:$0xff] %v11925_v3 }
 0x191   : > { %v11911_v24 = vpop.f32.mrf.mxu1  ;;  %13978 = vst [vmem:[#allocation46_spill] sm:$0xff] %v11927_v27  ;;  %v9693_v37 = vpop.f32.mrf.mxu0 }
 0x192   : > { %13971 = vst [vmem:[#allocation39_spill] sm:$0xff] %v11911_v24  ;;  %v11934_v55 = vadd.f32 %v9693_v37, %v11720_v18 }
 0x193   : > { %v11913_v11 = vpop.f32.mrf.mxu1  ;;  %v11936_v29 = vpop.f32.mrf.mxu0 }
 0x194   : > { %13972 = vst [vmem:[#allocation40_spill] sm:$0xff] %v11913_v11  ;;  %13981 = vst [vmem:[#allocation49_spill] sm:$0xff] %v11934_v55 }
 0x195   : > { %v11920_v15 = vpop.f32.mrf.mxu1  ;;  %13982 = vst [vmem:[#allocation50_spill] sm:$0xff] %v11936_v29 }
 0x196   : > { %13975 = vst [vmem:[#allocation43_spill] sm:$0xff] %v11920_v15  ;;  %v9696_v15 = vpop.f32.mrf.mxu0 }
 0x197   : > { %v11922_v51 = vpop.f32.mrf.mxu1  ;;  %v11943_v20 = vadd.f32 %v9696_v15, %v11731_v31 }
 0x198   : > { %13976 = vst [vmem:[#allocation44_spill] sm:$0xff] %v11922_v51  ;;  %v11945_v36 = vpop.f32.mrf.mxu0 }
 0x199   : > { %v11929_v24 = vpop.f32.mrf.mxu1  ;;  %13985 = vst [vmem:[#allocation53_spill] sm:$0xff] %v11943_v20  ;;  %13986 = vst [vmem:[#allocation54_spill] sm:$0xff] %v11945_v36 }
 0x19a   : > { %13979 = vst [vmem:[#allocation47_spill] sm:$0xff] %v11929_v24  ;;  %v9699_v24 = vpop.f32.mrf.mxu0 }
 0x19b   : > { %v11931_v26 = vpop.f32.mrf.mxu1  ;;  %v11952_v18 = vadd.f32 %v9699_v24, %v11742_v39 }
 0x19c   : > { %13980 = vst [vmem:[#allocation48_spill] sm:$0xff] %v11931_v26  ;;  %v11954_v37 = vpop.f32.mrf.mxu0 }
 0x19d   : > { %v11938_v11 = vpop.f32.mrf.mxu1  ;;  %13989 = vst [vmem:[#allocation57_spill] sm:$0xff] %v11952_v18  ;;  %13990 = vst [vmem:[#allocation58_spill] sm:$0xff] %v11954_v37 }
 0x19e   : > { %13983 = vst [vmem:[#allocation51_spill] sm:$0xff] %v11938_v11  ;;  %v9702_v11 = vpop.f32.mrf.mxu0 }
 0x19f   : > { %v11940_v22 = vpop.f32.mrf.mxu1  ;;  %v11961_v31 = vadd.f32 %v9702_v11, %v11753_v44 }
 0x1a0   : > { %13984 = vst [vmem:[#allocation52_spill] sm:$0xff] %v11940_v22  ;;  %v11963_v15 = vpop.f32.mrf.mxu0 }
 0x1a1   : > { %v11947_v51 = vpop.f32.mrf.mxu1  ;;  %13993 = vst [vmem:[#allocation61_spill] sm:$0xff] %v11961_v31  ;;  %13994 = vst [vmem:[#allocation62_spill] sm:$0xff] %v11963_v15 }
 0x1a2   : > { %13987 = vst [vmem:[#allocation55_spill] sm:$0xff] %v11947_v51  ;;  %v9705_v51 = vpop.f32.mrf.mxu0 }
 0x1a3   : > { %v11949_v3 = vpop.f32.mrf.mxu1  ;;  %v11970_v24 = vadd.f32 %v9705_v51, %v11763_v48 }
 0x1a4   : > { %13988 = vst [vmem:[#allocation56_spill] sm:$0xff] %v11949_v3  ;;  %v11972_v39 = vpop.f32.mrf.mxu0 }
 0x1a5   : > { %v11956_v26 = vpop.f32.mrf.mxu1  ;;  %13997 = vst [vmem:[#allocation65_spill] sm:$0xff] %v11970_v24  ;;  %13998 = vst [vmem:[#allocation66_spill] sm:$0xff] %v11972_v39 }
 0x1a6   : > { %13991 = vst [vmem:[#allocation59_spill] sm:$0xff] %v11956_v26  ;;  %v9708_v26 = vpop.f32.mrf.mxu0 }
 0x1a7   : > { %v11958_v55 = vpop.f32.mrf.mxu1  ;;  %v11979_v44 = vadd.f32 %v9708_v26, %v11774_v46 }
 0x1a8   : > { %13992 = vst [vmem:[#allocation60_spill] sm:$0xff] %v11958_v55  ;;  %v11981_v11 = vpop.f32.mrf.mxu0 }
 0x1a9   : > { %v11965_v22 = vpop.f32.mrf.mxu1  ;;  %14001 = vst [vmem:[#allocation69_spill] sm:$0xff] %v11979_v44  ;;  %14002 = vst [vmem:[#allocation70_spill] sm:$0xff] %v11981_v11  ;;  %v12031_v11 = vld [vmem:[%s13809_s3 + $0x20] sm:$0xff] }
 0x1aa   : > { %13995 = vst [vmem:[#allocation63_spill] sm:$0xff] %v11965_v22  ;;  %v9711_v22 = vpop.f32.mrf.mxu0  ;;  %14012 = vst [vmem:[#allocation80_spill] sm:$0xff] %v12031_v11  ;;  %10115 = vmatprep.subr.mxu1 %v12031_v11 }
 0x1ab   : > { %v11967_v20 = vpop.f32.mrf.mxu1  ;;  %v11988_v51 = vadd.f32 %v9711_v22, %v11785_v40 }
 0x1ac   : > { %13996 = vst [vmem:[#allocation64_spill] sm:$0xff] %v11967_v20  ;;  %v11990_v48 = vpop.f32.mrf.mxu0 }
 0x1ad   : > { %v11974_v3 = vpop.f32.mrf.mxu1  ;;  %14005 = vst [vmem:[#allocation73_spill] sm:$0xff] %v11988_v51  ;;  %14006 = vst [vmem:[#allocation74_spill] sm:$0xff] %v11990_v48 }
 0x1ae   : > { %13999 = vst [vmem:[#allocation67_spill] sm:$0xff] %v11974_v3  ;;  %v9714_v3 = vpop.f32.mrf.mxu0 }
 0x1af   : > { %v11976_v18 = vpop.f32.mrf.mxu1  ;;  %v11997_v26 = vadd.f32 %v9714_v3, %v11793_v49 }
 0x1b0   : > { %14000 = vst [vmem:[#allocation68_spill] sm:$0xff] %v11976_v18  ;;  %v11999_v46 = vpop.f32.mrf.mxu0 }
 0x1b1   : > { %v11983_v55 = vpop.f32.mrf.mxu1  ;;  %14009 = vst [vmem:[#allocation77_spill] sm:$0xff] %v11997_v26  ;;  %14010 = vst [vmem:[#allocation78_spill] sm:$0xff] %v11999_v46 }
 0x1b2   : > { %14003 = vst [vmem:[#allocation71_spill] sm:$0xff] %v11983_v55  ;;  %v9769_v55 = vpop.f32.mrf.mxu0 }
 0x1b3   : > { %v11985_v31 = vpop.f32.mrf.mxu1 }
 0x1b4   : > { %14004 = vst [vmem:[#allocation72_spill] sm:$0xff] %v11985_v31  ;;  %v2743_v31 = vpop.f32.mrf.mxu0 }
 0x1b5   : > { %v11992_v20 = vpop.f32.mrf.mxu1 }
 0x1b6   : > { %14007 = vst [vmem:[#allocation75_spill] sm:$0xff] %v11992_v20  ;;  %v12007_v40 = vpop.f32.mrf.mxu0 }
 0x1b7   : > { %v11994_v24 = vpop.f32.mrf.mxu1 }
 0x1b8   : > { %14008 = vst [vmem:[#allocation76_spill] sm:$0xff] %v11994_v24  ;;  %v12009_v51 = vpop.f32.mrf.mxu0 }
 0x1b9   : > { %v12001_v18 = vpop.f32.mrf.mxu1 }
 0x1ba   : > { %14011 = vst [vmem:[#allocation79_spill] sm:$0xff] %v12001_v18  ;;  %v12013_v24 = vpop.f32.mrf.mxu0  ;;  %v8666_v18 = vld [vmem:[%s13809_s3 + $0x18] sm:$0xff] }
 0x1bb   : > { %v12003_v44 = vpop.f32.mrf.mxu1  ;;  %10065 = vmatprep.subr.mxu0 %v8666_v18 }
 0x1bc   : > { %v12017_v49 = vpop.f32.mrf.mxu0  ;;  %10066 = vmatpush3.msra.mxu0 %v8666_v18 }
 0x1bd   : > { %v12005_v22 = vpop.f32.mrf.mxu1 }
 0x1be   : > { %v12022_v26 = vpop.f32.mrf.mxu0 }
 0x1bf   : > { %v12011_v20 = vpop.f32.mrf.mxu1 }
 0x1c0   : > { %v12026_v48 = vpop.f32.mrf.mxu0 }
 0x1c1   : > { %v12015_v3 = vpop.f32.mrf.mxu1 }
 0x1c2   : > { %v12034_v39 = vpop.f32.mrf.mxu0 }
 0x1c3   : > { %v12024_v46 = vpop.f32.mrf.mxu1  ;;  %14013 = vst [vmem:[#allocation81_spill] sm:$0xff] %v12034_v39 }
 0x1c4   : > { %v12038_v37 = vpop.f32.mrf.mxu0 }
 0x1c5   : > { %v12036_v15 = vpop.f32.mrf.mxu1  ;;  %14014 = vst [vmem:[#allocation82_spill] sm:$0xff] %v12038_v37 }
 0x1c6   : > { %v12040_v36 = vpop.f32.mrf.mxu0 }
 0x1c7   : > { %14015 = vst [vmem:[#allocation83_spill] sm:$0xff] %v12040_v36  ;;  %v12042_v18 = vpop.f32.mrf.mxu1 }
 0x1c8   : > { %14016 = vst [vmem:[#allocation84_spill] sm:$0xff] %v12042_v18  ;;  %v12044_v29 = vpop.f32.mrf.mxu0 }
 0x1c9   : > { %14017 = vst [vmem:[#allocation85_spill] sm:$0xff] %v12044_v29  ;;  %v12048_v4 = vpop.f32.mrf.mxu1 }
 0x1ca   : > { %v12046_v27 = vpop.f32.mrf.mxu0  ;;  %14019 = vst [vmem:[#allocation87_spill] sm:$0xff] %v12048_v4 }
 0x1cb   : > { %14018 = vst [vmem:[#allocation86_spill] sm:$0xff] %v12046_v27  ;;  %v12054_v11 = vpop.f32.mrf.mxu1 }
 0x1cc   : > { %v12050_v61 = vpop.f32.mrf.mxu0  ;;  %14022 = vst [vmem:[#allocation90_spill] sm:$0xff] %v12054_v11 }
 0x1cd   : > { %14020 = vst [vmem:[#allocation88_spill] sm:$0xff] %v12050_v61  ;;  %v12060_v37 = vpop.f32.mrf.mxu1 }
 0x1ce   : > { %v12052_v28 = vpop.f32.mrf.mxu0  ;;  %14025 = vst [vmem:[#allocation93_spill] sm:$0xff] %v12060_v37 }
 0x1cf   : > { %14021 = vst [vmem:[#allocation89_spill] sm:$0xff] %v12052_v28  ;;  %v12066_v29 = vpop.f32.mrf.mxu1 }
 0x1d0   : > { %v12056_v1 = vpop.f32.mrf.mxu0  ;;  %14028 = vst [vmem:[#allocation96_spill] sm:$0xff] %v12066_v29 }
 0x1d1   : > { %14023 = vst [vmem:[#allocation91_spill] sm:$0xff] %v12056_v1  ;;  %v12072_v61 = vpop.f32.mrf.mxu1 }
 0x1d2   : > { %v12058_v39 = vpop.f32.mrf.mxu0 }
 0x1d3   : > { %14024 = vst [vmem:[#allocation92_spill] sm:$0xff] %v12058_v39  ;;  %v12078_v1 = vpop.f32.mrf.mxu1 }
 0x1d4   : > { %v12062_v36 = vpop.f32.mrf.mxu0  ;;  %14033 = vst [vmem:[#allocation101_spill] sm:$0xff] %v12078_v1 }
 0x1d5   : > { %14026 = vst [vmem:[#allocation94_spill] sm:$0xff] %v12062_v36  ;;  %v12084_v36 = vpop.f32.mrf.mxu1 }
 0x1d6   : > { %v12064_v18 = vpop.f32.mrf.mxu0 }
 0x1d7   : > { %14027 = vst [vmem:[#allocation95_spill] sm:$0xff] %v12064_v18 }
 0x1d8   : > { %v12068_v27 = vpop.f32.mrf.mxu0 }
 0x1d9   : > { %14029 = vst [vmem:[#allocation97_spill] sm:$0xff] %v12068_v27  ;;  %v12092_v27 = vpop.f32.mrf.mxu1 }
 0x1da   : > { %v12070_v4 = vpop.f32.mrf.mxu0  ;;  %14038 = vst [vmem:[#allocation106_spill] sm:$0xff] %v12092_v27 }
 0x1db   : > { %14030 = vst [vmem:[#allocation98_spill] sm:$0xff] %v12070_v4  ;;  %v1731_v4 = vadd.f32 %v11613_v7, %v11616_v12 }
 0x1dc   : > { %v12074_v28 = vpop.f32.mrf.mxu0 }
 0x1dd   : > { %14031 = vst [vmem:[#allocation99_spill] sm:$0xff] %v12074_v28 }
 0x1de   : > { %v12076_v11 = vpop.f32.mrf.mxu0 }
 0x1df   : > { %14032 = vst [vmem:[#allocation100_spill] sm:$0xff] %v12076_v11  ;;  %v2121_v11 = vadd.f32 %v11800_v32, %v1731_v4  ;;  %v1735_v4 = vadd.f32 %v11637_v14, %v11640_v41  ;;  %v1737_v14 = vadd.f32 %v11649_v16, %v11652_v30  ;;  %v2516_v41 = vadd.f32 %v11867_v53, %v11870_v60 }
 0x1e0   : > { %v12080_v39 = vpop.f32.mrf.mxu0 }
 0x1e1   : > { %14034 = vst [vmem:[#allocation102_spill] sm:$0xff] %v12080_v39  ;;  %v2512_v39 = vadd.f32 %v11795_v42, %v11798_v56  ;;  %v2511_v7 = vadd.f32 %v11802_v19, %v2121_v11  ;;  %v2125_v56 = vadd.f32 %v11875_v35, %v1735_v4  ;;  %v12130_v35 = vld [vmem:[%s13808_s2] ss:$0 sm:$0xff]  ;;  %v2907_v16 = vadd.f32 %v12013_v24, %v2516_v41  ;;  %v14041_v4 = vld [vmem:[#allocation36_spill] sm:$0xff] }
 0x1e2   : > { %v12082_v37 = vpop.f32.mrf.mxu0  ;;  %v14040_v11 = vld [vmem:[#allocation35_spill] sm:$0xff] }
 0x1e3   : > { %14035 = vst [vmem:[#allocation103_spill] sm:$0xff] %v12082_v37  ;;  %v1733_v37 = vadd.f32 %v11625_v43, %v11628_v8  ;;  %v2903_v27 = vadd.f32 %v9769_v55, %v2512_v39  ;;  %v2514_v43 = vadd.f32 %v11840_v10, %v11861_v57  ;;  %v2902_v8 = vadd.f32 %v2743_v31, %v2511_v7 }
 0x1e4   : > { %v12086_v18 = vpop.f32.mrf.mxu0  ;;  %v2127_v31 = vadd.f32 %v11888_v52, %v1737_v14 }
 0x1e5   : > { %14036 = vst [vmem:[#allocation104_spill] sm:$0xff] %v12086_v18  ;;  %v12103_v18 = vpop.f32.mrf.mxu1  ;;  %v2123_v12 = vadd.f32 %v11863_v13, %v1733_v37  ;;  %v3293_v13 = vadd.f32 %v12003_v44, %v2903_v27  ;;  %v2905_v55 = vadd.f32 %v12007_v40, %v2514_v43  ;;  %v3292_v57 = vadd.f32 %v12005_v22, %v2902_v8 }
 0x1e6   : > { %v12088_v29 = vpop.f32.mrf.mxu0  ;;  %v2515_v27 = vadd.f32 %v11877_v0, %v2125_v56  ;;  %v12143_v22 = vadd.f32 %v14040_v11, %v11522_v50  ;;  %v2518_v0 = vadd.f32 %v11880_v21, %v11885_v59  ;;  %v12154_v43 = vadd.f32 %v14041_v4, %v11536_v54  ;;  %v14054_v4 = vld [vmem:[#allocation39_spill] sm:$0xff] }
 0x1e7   : > { %14037 = vst [vmem:[#allocation105_spill] sm:$0xff] %v12088_v29  ;;  %v12116_v42 = vpop.f32.mrf.mxu1  ;;  %v2513_v19 = vadd.f32 %v11865_v38, %v2123_v12  ;;  %v3295_v53 = vadd.f32 %v12011_v20, %v2905_v55  ;;  %v2517_v50 = vadd.f32 %v11890_v34, %v2127_v31  ;;  %v12166_v54 = vadd.f32 %v11552_v23, %v11550_v58 }
 0x1e8   : > { %v12094_v28 = vpop.f32.mrf.mxu0  ;;  %v2906_v52 = vadd.f32 %v12017_v49, %v2515_v27  ;;  %v2909_v49 = vadd.f32 %v12022_v26, %v2518_v0  ;;  %v2520_v34 = vadd.f32 %v11892_v47, %v11895_v17  ;;  %v12178_v58 = vadd.f32 %v11566_v2, %v11564_v62  ;;  %v12191_v62 = vld [vmem:[%s13809_s3 + $0x28] sm:$0xff]  ;;  %v14044_v2 = vld [vmem:[#allocation9_spill] sm:$0xff]  ;;  %v14047_v27 = vld [vmem:[#allocation15_spill] sm:$0xff] }
 0x1e9   : > { %v2904_v38 = vadd.f32 %v12009_v51, %v2513_v19  ;;  %v12137_v30 = vpop.f32.mrf.mxu1  ;;  %v1739_v51 = vadd.f32 %v11664_v6, %v11667_v5  ;;  %v3297_v5 = vadd.f32 %v12024_v46, %v2907_v16  ;;  %v2908_v26 = vadd.f32 %v12026_v48, %v2517_v50  ;;  %v14043_v48 = vld [vmem:[#allocation84_spill] sm:$0xff]  ;;  %v14048_v16 = vld [vmem:[#allocation38_spill] sm:$0xff]  ;;  %10165 = vmatprep.subr.mxu0 %v12191_v62 }
 0x1ea   : > { %v12097_v1 = vpop.f32.mrf.mxu0  ;;  %v3296_v46 = vadd.f32 %v12036_v15, %v2906_v52  ;;  %v3299_v41 = vadd.f32 %v14043_v48, %v2909_v49  ;;  %v14064_v48 = vld [vmem:[#allocation93_spill] sm:$0xff] }
 0x1eb   : > { %14039 = vst [vmem:[#allocation107_spill] sm:$0xff] %v12097_v1  ;;  %v3294_v40 = vadd.f32 %v12015_v3, %v2904_v38  ;;  %v2129_v6 = vadd.f32 %v11897_v33, %v1739_v51  ;;  %v12159_v21 = vpop.f32.mrf.mxu1  ;;  %v1741_v33 = vadd.f32 %v11676_v25, %v11679_v9  ;;  %v14042_v9 = vld [vmem:[#allocation81_spill] sm:$0xff]  ;;  %v14051_v51 = vld [vmem:[#allocation87_spill] sm:$0xff] }
 0x1ec   : > { %v12105_v29 = vpop.f32.mrf.mxu0  ;;  %v2911_v17 = vadd.f32 %v14042_v9, %v2520_v34  ;;  %v3298_v0 = vadd.f32 %v14051_v51, %v2908_v26  ;;  %v14058_v26 = vld [vmem:[#allocation13_spill] sm:$0xff]  ;;  %v14068_v51 = vld [vmem:[#allocation86_spill] sm:$0xff] }
 0x1ed   : > { %v2519_v23 = vadd.f32 %v11899_v63, %v2129_v6  ;;  %v2131_v25 = vadd.f32 %v11909_v45, %v1741_v33  ;;  %v12183_v47 = vpop.f32.mrf.mxu1  ;;  %v14045_v63 = vld [vmem:[#allocation10_spill] sm:$0xff]  ;;  %v14062_v9 = vld [vmem:[#allocation41_spill] sm:$0xff] }
 0x1ee   : > { %v12111_v32 = vpop.f32.mrf.mxu0  ;;  %v12195_v45 = vadd.f32 %v14045_v63, %v14044_v2  ;;  %v14055_v6 = vld [vmem:[#allocation42_spill] sm:$0xff]  ;;  %v14065_v63 = vld [vmem:[#allocation85_spill] sm:$0xff] }
 0x1ef   : > { %v2521_v50 = vadd.f32 %v14054_v4, %v2131_v25 }
 0x1f0   : > { %v12118_v1 = vpop.f32.mrf.mxu0 }
 0x1f2   : > { %v9869_v10 = vpop.f32.mrf.mxu0 }
 0x1f3   : > { %v3683_v37 = vadd.f32 %v9869_v10, %v3293_v13 }
 0x1f4   : > { %v3523_v60 = vpop.f32.mrf.mxu0 }
 0x1f5   : > { %v3722_v39 = vadd.f32 %v12130_v35, %v3683_v37  ;;  %v3682_v44 = vadd.f32 %v3523_v60, %v3292_v57  ;;  %v14046_v37 = vld [vmem:[#allocation16_spill] sm:$0xff]  ;;  %v14049_v60 = vld [vmem:[#allocation37_spill] sm:$0xff] }
 0x1f6   : > { %v9872_v24 = vpop.f32.mrf.mxu0  ;;  %v1743_v31 = vadd.f32 %v14047_v27, %v14046_v37  ;;  %v2912_v37 = vadd.f32 %v14065_v63, %v2521_v50 }
 0x1f7   : > { %v3754_v7 = vmax.f32 %v3722_v39, 0.0  ;;  %v3721_v20 = vadd.f32 %v12130_v35, %v3682_v44  ;;  %v3685_v12 = vadd.f32 %v9872_v24, %v3295_v53  ;;  %v2522_v53 = vadd.f32 %v14049_v60, %v14048_v16  ;;  %v14050_v39 = vld [vmem:[#allocation82_spill] sm:$0xff] }
 0x1f8   : > { %v3533_v59 = vpop.f32.mrf.mxu0  ;;  %v2910_v44 = vadd.f32 %v14050_v39, %v2519_v23  ;;  %v14061_v23 = vld [vmem:[#allocation17_spill] sm:$0xff] }
 0x1f9   : > { %3843 = vst.msk [vmem:[#allocation2 + $0x21] sm:$0xff] %vm3785_vm2, %v3754_v7  ;;  %v3753_v3 = vmax.f32 %v3721_v20, 0.0  ;;  %v3724_v8 = vadd.f32 %v12130_v35, %v3685_v12  ;;  %v3684_v56 = vadd.f32 %v3533_v59, %v3294_v40  ;;  %v14052_v7 = vld [vmem:[#allocation11_spill] sm:$0xff]  ;;  %v14053_v20 = vld [vmem:[#allocation12_spill] sm:$0xff]  ;;  %v14056_v59 = vld [vmem:[#allocation90_spill] sm:$0xff] }
 0x1fa   : > { %v9875_v19 = vpop.f32.mrf.mxu0  ;;  %v12208_v12 = vadd.f32 %v14053_v20, %v14052_v7  ;;  %v3301_v49 = vadd.f32 %v14056_v59, %v2911_v17  ;;  %v14063_v17 = vld [vmem:[#allocation40_spill] sm:$0xff] }
 0x1fb   : > { %3842 = vst.msk [vmem:[#allocation2 + $0x19] sm:$0xff] %vm3785_vm2, %v3753_v3  ;;  %v3756_v13 = vmax.f32 %v3724_v8, 0.0  ;;  %v3723_v55 = vadd.f32 %v12130_v35, %v3684_v56  ;;  %v3687_v14 = vadd.f32 %v9875_v19, %v3297_v5  ;;  %v2133_v5 = vadd.f32 %v14055_v6, %v1743_v31  ;;  %v12213_v3 = vpop.f32.mrf.mxu1  ;;  %v14057_v56 = vld [vmem:[#allocation83_spill] sm:$0xff]  ;;  %v14070_v6 = vld [vmem:[#allocation20_spill] sm:$0xff] }
 0x1fc   : > { %v3543_v15 = vpop.f32.mrf.mxu0  ;;  %v2913_v33 = vadd.f32 %v14057_v56, %v2522_v53  ;;  %v14066_v53 = vld [vmem:[#allocation43_spill] sm:$0xff]  ;;  %v14073_v56 = vld [vmem:[#allocation45_spill] sm:$0xff] }
 0x1fd   : > { %3845 = vst.msk [vmem:[#allocation2 + $0x39] sm:$0xff] %vm3785_vm2, %v3756_v13  ;;  %v3755_v10 = vmax.f32 %v3723_v55, 0.0  ;;  %v3726_v57 = vadd.f32 %v12130_v35, %v3687_v14  ;;  %v3686_v38 = vadd.f32 %v3543_v15, %v3296_v46  ;;  %v14059_v13 = vld [vmem:[#allocation14_spill] sm:$0xff]  ;;  %v2524_v15 = vadd.f32 %v14063_v17, %v14062_v9 }
 0x1fe   : > { %v9878_v11 = vpop.f32.mrf.mxu0  ;;  %v12220_v55 = vadd.f32 %v14059_v13, %v14058_v26  ;;  %v14060_v14 = vld [vmem:[#allocation18_spill] sm:$0xff]  ;;  %v2523_v39 = vadd.f32 %v14066_v53, %v2133_v5  ;;  %v14071_v5 = vld [vmem:[#allocation19_spill] sm:$0xff] }
 0x1ff   : > { %3844 = vst.msk [vmem:[#allocation2 + $0x31] sm:$0xff] %vm3785_vm2, %v3755_v10  ;;  %v3758_v52 = vmax.f32 %v3726_v57, 0.0  ;;  %v3725_v24 = vadd.f32 %v12130_v35, %v3686_v38  ;;  %v3689_v40 = vadd.f32 %v9878_v11, %v3299_v41  ;;  %v1745_v25 = vadd.f32 %v14061_v23, %v14060_v14 }
 0x200   : > { %v3553_v8 = vpop.f32.mrf.mxu0  ;;  %v3300_v41 = vadd.f32 %v14064_v48, %v2910_v44  ;;  %v12240_v60 = vld [vmem:[#allocation2 + $0x21] sm:$0xff]  ;;  %v14067_v44 = vld [vmem:[#allocation46_spill] sm:$0xff]  ;;  %v1747_v59 = vadd.f32 %v14071_v5, %v14070_v6 }
 0x201   : > { %3847 = vst.msk [vmem:[#allocation2 + $0x51] sm:$0xff] %vm3785_vm2, %v3758_v52  ;;  %v3757_v34 = vmax.f32 %v3725_v24, 0.0  ;;  %v3728_v46 = vadd.f32 %v12130_v35, %v3689_v40  ;;  %v3688_v19 = vadd.f32 %v3553_v8, %v3298_v0  ;;  %v2135_v11 = vadd.f32 %v14067_v44, %v1745_v25  ;;  %v12245_v52 = vpop.f32.mrf.mxu1  ;;  %v14069_v40 = vld [vmem:[#allocation96_spill] sm:$0xff]  ;;  %v14076_v48 = vld [vmem:[#allocation47_spill] sm:$0xff] }
 0x202   : > { %v9881_v10 = vpop.f32.mrf.mxu0  ;;  %v12227_v57 = vld [vmem:[#allocation2 + $0x19] sm:$0xff]  ;;  %v2915_v0 = vadd.f32 %v14068_v51, %v2524_v15  ;;  %v3303_v7 = vadd.f32 %v14069_v40, %v2913_v33  ;;  %v3302_v25 = vadd.f32 %v12072_v61, %v2912_v37 }
 0x203   : > { %v12229_v38 = vld [vmem:[#allocation2 + $0x18] sm:$0xff]  ;;  %v12231_v2 = vld [vmem:[#allocation2 + $0x20] sm:$0xff]  ;;  %3846 = vst.msk [vmem:[#allocation2 + $0x49] sm:$0xff] %vm3785_vm2, %v3757_v34  ;;  %v3760_v27 = vmax.f32 %v3728_v46, 0.0  ;;  %v3727_v31 = vadd.f32 %v12130_v35, %v3688_v19  ;;  %v3691_v16 = vadd.f32 %v9881_v10, %v3301_v49  ;;  %9920 = vmatprep.mubr.msk.f32.mxu1 %vm3785_vm2, %v12227_v57  ;;  %v14072_v49 = vld [vmem:[#allocation21_spill] sm:$0xff]  ;;  %v12279_v37 = vpop.f32.mrf.mxu1 }
 0x204   : > { %9970 = vmatprep.mubr.msk.f32.mxu0 %vm3785_vm2, %v12229_v38  ;;  %v3563_v24 = vpop.f32.mrf.mxu0  ;;  %9921 = vmatmul.mubr.msk.f32.gmra.mxu1 %vm3785_vm2, %v12240_v60  ;;  %v1358_v8 = vadd.f32 %v14072_v49, %v12143_v22  ;;  %v14074_v34 = vld [vmem:[#allocation44_spill] sm:$0xff]  ;;  %v12274_v15 = vld [vmem:[#allocation2 + $0x39] sm:$0xff] }
 0x205   : > { %9971 = vmatmul.mubr.msk.f32.gmra.mxu0 %vm3785_vm2, %v12231_v2  ;;  %3849 = vst.msk [vmem:[#allocation2 + $0x69] sm:$0xff] %vm3785_vm2, %v3760_v27  ;;  %v3759_v20 = vmax.f32 %v3727_v31, 0.0  ;;  %v3730_v4 = vadd.f32 %v12130_v35, %v3691_v16  ;;  %v3690_v50 = vadd.f32 %v3563_v24, %v3300_v41  ;;  %v2526_v46 = vadd.f32 %v14074_v34, %v14073_v56  ;;  %v14075_v19 = vld [vmem:[#allocation88_spill] sm:$0xff]  ;;  %v14077_v10 = vld [vmem:[#allocation50_spill] sm:$0xff]  ;;  %v14078_v27 = vld [vmem:[#allocation101_spill] sm:$0xff] }
 0x206   : > { %v2914_v26 = vadd.f32 %v14075_v19, %v2523_v39  ;;  %v9884_v13 = vpop.f32.mrf.mxu0  ;;  %v12261_v14 = vld [vmem:[#allocation2 + $0x31] sm:$0xff]  ;;  %v2525_v41 = vadd.f32 %v14076_v48, %v2135_v11  ;;  %v2137_v63 = vadd.f32 %v14077_v10, %v1747_v59  ;;  %v3305_v61 = vadd.f32 %v14078_v27, %v2915_v0  ;;  %v14081_v0 = vld [vmem:[#allocation23_spill] sm:$0xff] }
 0x207   : > { %v12263_v33 = vld [vmem:[#allocation2 + $0x30] sm:$0xff]  ;;  %v12265_v23 = vld [vmem:[#allocation2 + $0x38] sm:$0xff]  ;;  %3848 = vst.msk [vmem:[#allocation2 + $0x61] sm:$0xff] %vm3785_vm2, %v3759_v20  ;;  %v3762_v9 = vmax.f32 %v3730_v4, 0.0  ;;  %v3729_v17 = vadd.f32 %v12130_v35, %v3690_v50  ;;  %v3693_v22 = vadd.f32 %v9884_v13, %v3303_v7  ;;  %9923 = vmatprep.mubr.msk.f32.mxu1 %vm3785_vm2, %v12261_v14  ;;  %v1360_v40 = vadd.f32 %v14081_v0, %v12154_v43  ;;  %v14083_v20 = vld [vmem:[#allocation48_spill] sm:$0xff] }
 0x208   : > { %9973 = vmatprep.mubr.msk.f32.mxu0 %vm3785_vm2, %v12263_v33  ;;  %v3573_v31 = vpop.f32.mrf.mxu0  ;;  %9924 = vmatmul.mubr.msk.f32.gmra.mxu1 %vm3785_vm2, %v12274_v15  ;;  %v14079_v16 = vld [vmem:[#allocation89_spill] sm:$0xff]  ;;  %v14080_v51 = vld [vmem:[#allocation22_spill] sm:$0xff]  ;;  %v3304_v50 = vadd.f32 %v12084_v36, %v2914_v26  ;;  %v14085_v56 = vld [vmem:[#allocation91_spill] sm:$0xff] }
 0x209   : > { %9974 = vmatmul.mubr.msk.f32.gmra.mxu0 %vm3785_vm2, %v12265_v23  ;;  %v2917_v53 = vadd.f32 %v14079_v16, %v2526_v46  ;;  %3851 = vst.msk [vmem:[#allocation2 + $0x81] sm:$0xff] %vm3785_vm2, %v3762_v9  ;;  %v3761_v39 = vmax.f32 %v3729_v17, 0.0  ;;  %v3732_v44 = vadd.f32 %v12130_v35, %v3693_v22  ;;  %v3692_v11 = vadd.f32 %v3573_v31, %v3302_v25  ;;  %v14082_v7 = vld [vmem:[#allocation49_spill] sm:$0xff]  ;;  %v14086_v19 = vld [vmem:[#allocation51_spill] sm:$0xff]  ;;  %v14087_v13 = vld [vmem:[#allocation54_spill] sm:$0xff]  ;;  %v12312_v22 = vpop.f32.mrf.mxu1 }
 0x20a   : > { %v1749_v24 = vadd.f32 %v14080_v51, %v1358_v8  ;;  %v2528_v4 = vadd.f32 %v14083_v20, %v14082_v7  ;;  %v9887_v6 = vpop.f32.mrf.mxu0  ;;  %v12294_v5 = vld [vmem:[#allocation2 + $0x49] sm:$0xff]  ;;  %v2916_v34 = vadd.f32 %v14085_v56, %v2525_v41  ;;  %v12307_v36 = vld [vmem:[#allocation2 + $0x51] sm:$0xff]  ;;  %v2527_v26 = vadd.f32 %v14086_v19, %v2137_v63 }
 0x20b   : > { %v12296_v59 = vld [vmem:[#allocation2 + $0x48] sm:$0xff]  ;;  %v12298_v49 = vld [vmem:[#allocation2 + $0x50] sm:$0xff]  ;;  %3850 = vst.msk [vmem:[#allocation2 + $0x79] sm:$0xff] %vm3785_vm2, %v3761_v39  ;;  %v3764_v8 = vmax.f32 %v3732_v44, 0.0  ;;  %v3731_v46 = vadd.f32 %v12130_v35, %v3692_v11  ;;  %v3695_v43 = vadd.f32 %v9887_v6, %v3305_v61  ;;  %9926 = vmatprep.mubr.msk.f32.mxu1 %vm3785_vm2, %v12294_v5  ;;  %v14089_v41 = vld [vmem:[#allocation106_spill] sm:$0xff] }
 0x20c   : > { %14084 = vst [vmem:[#allocation35_spill] sm:$0xff] %v12298_v49  ;;  %9976 = vmatprep.mubr.msk.f32.mxu0 %vm3785_vm2, %v12296_v59  ;;  %v2139_v25 = vadd.f32 %v14087_v13, %v1749_v24  ;;  %v14088_v9 = vld [vmem:[#allocation92_spill] sm:$0xff]  ;;  %v3583_v48 = vpop.f32.mrf.mxu0  ;;  %9927 = vmatmul.mubr.msk.f32.gmra.mxu1 %vm3785_vm2, %v12307_v36  ;;  %v3307_v10 = vadd.f32 %v14089_v41, %v2917_v53  ;;  %v14091_v39 = vld [vmem:[#allocation25_spill] sm:$0xff]  ;;  %v14094_v0 = vld [vmem:[#allocation94_spill] sm:$0xff] }
 0x20d   : > { %v2919_v17 = vadd.f32 %v14088_v9, %v2528_v4  ;;  %9977 = vmatmul.mubr.msk.f32.gmra.mxu0 %vm3785_vm2, %v12298_v49  ;;  %3853 = vst.msk [vmem:[#allocation2 + $0x99] sm:$0xff] %vm3785_vm2, %v3764_v8  ;;  %v3763_v27 = vmax.f32 %v3731_v46, 0.0  ;;  %v3734_v63 = vadd.f32 %v12130_v35, %v3695_v43  ;;  %v3694_v61 = vadd.f32 %v3583_v48, %v3304_v50  ;;  %v14090_v31 = vld [vmem:[#allocation24_spill] sm:$0xff]  ;;  %v14092_v11 = vld [vmem:[#allocation53_spill] sm:$0xff]  ;;  %v14097_v46 = vld [vmem:[#allocation55_spill] sm:$0xff] }
 0x20e   : > { %v1751_v16 = vadd.f32 %v14090_v31, %v1360_v40  ;;  %v1362_v44 = vadd.f32 %v14091_v39, %v12166_v54  ;;  %v14093_v51 = vld [vmem:[#allocation52_spill] sm:$0xff]  ;;  %v2918_v7 = vadd.f32 %v14094_v0, %v2527_v26  ;;  %v9890_v20 = vpop.f32.mrf.mxu0  ;;  %v12329_v53 = vld [vmem:[#allocation2 + $0x60] sm:$0xff]  ;;  %v3306_v56 = vadd.f32 %v12103_v18, %v2916_v34  ;;  %v14098_v19 = vld [vmem:[#allocation58_spill] sm:$0xff]  ;;  %v12345_v34 = vpop.f32.mrf.mxu1 }
 0x20f   : > { %v2530_v24 = vadd.f32 %v14093_v51, %v14092_v11  ;;  %v12327_v4 = vld [vmem:[#allocation2 + $0x61] sm:$0xff]  ;;  %14095 = vst [vmem:[#allocation36_spill] sm:$0xff] %v12329_v53  ;;  %3852 = vst.msk [vmem:[#allocation2 + $0x91] sm:$0xff] %vm3785_vm2, %v3763_v27  ;;  %v3766_v40 = vmax.f32 %v3734_v63, 0.0  ;;  %v3733_v50 = vadd.f32 %v12130_v35, %v3694_v61  ;;  %v3697_v54 = vadd.f32 %v9890_v20, %v3307_v10  ;;  %v12340_v8 = vld [vmem:[#allocation2 + $0x69] sm:$0xff] }
 0x210   : > { %v12331_v6 = vld [vmem:[#allocation2 + $0x68] sm:$0xff]  ;;  %9929 = vmatprep.mubr.msk.f32.mxu1 %vm3785_vm2, %v12327_v4  ;;  %9979 = vmatprep.mubr.msk.f32.mxu0 %vm3785_vm2, %v12329_v53  ;;  %v2529_v43 = vadd.f32 %v14097_v46, %v2139_v25  ;;  %v2141_v26 = vadd.f32 %v14098_v19, %v1751_v16  ;;  %v3309_v18 = vadd.f32 %v12116_v42, %v2919_v17  ;;  %v3593_v13 = vpop.f32.mrf.mxu0  ;;  %v14099_v9 = vld [vmem:[#allocation95_spill] sm:$0xff]  ;;  %v14100_v27 = vld [vmem:[#allocation26_spill] sm:$0xff] }
 0x211   : > { %14096 = vst [vmem:[#allocation81_spill] sm:$0xff] %v12331_v6  ;;  %9930 = vmatmul.mubr.msk.f32.gmra.mxu1 %vm3785_vm2, %v12340_v8  ;;  %9980 = vmatmul.mubr.msk.f32.gmra.mxu0 %vm3785_vm2, %v12331_v6  ;;  %v2921_v48 = vadd.f32 %v14099_v9, %v2530_v24  ;;  %3855 = vst.msk [vmem:[#allocation2 + $0xb1] sm:$0xff] %vm3785_vm2, %v3766_v40  ;;  %v3765_v41 = vmax.f32 %v3733_v50, 0.0  ;;  %v3736_v25 = vadd.f32 %v12130_v35, %v3697_v54  ;;  %v14101_v42 = vld [vmem:[#allocation27_spill] sm:$0xff]  ;;  %v14102_v61 = vld [vmem:[#allocation57_spill] sm:$0xff] }
 0x212   : > { %v3696_v10 = vadd.f32 %v3593_v13, %v3306_v56  ;;  %v1753_v63 = vadd.f32 %v14100_v27, %v1362_v44  ;;  %v1364_v17 = vadd.f32 %v14101_v42, %v12178_v58  ;;  %v14103_v31 = vld [vmem:[#allocation56_spill] sm:$0xff]  ;;  %v3308_v39 = vadd.f32 %v12137_v30, %v2918_v7  ;;  %v9893_v11 = vpop.f32.mrf.mxu0  ;;  %v12360_v51 = vld [vmem:[#allocation2 + $0x79] sm:$0xff]  ;;  %v14106_v20 = vld [vmem:[#allocation97_spill] sm:$0xff]  ;;  %v12378_v13 = vpop.f32.mrf.mxu1 }
 0x213   : > { %v2532_v16 = vadd.f32 %v14103_v31, %v14102_v61  ;;  %v12362_v24 = vld [vmem:[#allocation2 + $0x78] sm:$0xff]  ;;  %v12364_v0 = vld [vmem:[#allocation2 + $0x80] sm:$0xff]  ;;  %v2920_v40 = vadd.f32 %v14106_v20, %v2529_v43  ;;  %3854 = vst.msk [vmem:[#allocation2 + $0xa9] sm:$0xff] %vm3785_vm2, %v3765_v41  ;;  %v3768_v44 = vmax.f32 %v3736_v25, 0.0  ;;  %v3699_v58 = vadd.f32 %v9893_v11, %v3309_v18  ;;  %9932 = vmatprep.mubr.msk.f32.mxu1 %vm3785_vm2, %v12360_v51  ;;  %v14112_v61 = vld [vmem:[#allocation61_spill] sm:$0xff] }
 0x214   : > { %14104 = vst [vmem:[#allocation84_spill] sm:$0xff] %v12362_v24  ;;  %14105 = vst [vmem:[#allocation9_spill] sm:$0xff] %v12364_v0  ;;  %v3735_v56 = vadd.f32 %v12130_v35, %v3696_v10  ;;  %9982 = vmatprep.mubr.msk.f32.mxu0 %vm3785_vm2, %v12362_v24  ;;  %v12373_v30 = vld [vmem:[#allocation2 + $0x81] sm:$0xff]  ;;  %v14108_v54 = vld [vmem:[#allocation62_spill] sm:$0xff]  ;;  %v3603_v9 = vpop.f32.mrf.mxu0  ;;  %v3311_v18 = vadd.f32 %v12159_v21, %v2921_v48 }
 0x215   : > { %v14107_v7 = vld [vmem:[#allocation59_spill] sm:$0xff]  ;;  %v2143_v46 = vadd.f32 %v14108_v54, %v1753_v63  ;;  %v14109_v19 = vld [vmem:[#allocation98_spill] sm:$0xff]  ;;  %9933 = vmatmul.mubr.msk.f32.gmra.mxu1 %vm3785_vm2, %v12373_v30  ;;  %9983 = vmatmul.mubr.msk.f32.gmra.mxu0 %vm3785_vm2, %v12364_v0  ;;  %3857 = vst.msk [vmem:[#allocation2 + $0xc9] sm:$0xff] %vm3785_vm2, %v3768_v44  ;;  %v3698_v25 = vadd.f32 %v3603_v9, %v3308_v39  ;;  %v14110_v10 = vld [vmem:[#allocation28_spill] sm:$0xff] }
 0x216   : > { %v2531_v50 = vadd.f32 %v14107_v7, %v2141_v26  ;;  %v2923_v43 = vadd.f32 %v14109_v19, %v2532_v16  ;;  %v3767_v41 = vmax.f32 %v3735_v56, 0.0  ;;  %v3738_v26 = vadd.f32 %v12130_v35, %v3699_v58  ;;  %v14111_v63 = vld [vmem:[#allocation29_spill] sm:$0xff]  ;;  %v14113_v31 = vld [vmem:[#allocation60_spill] sm:$0xff]  ;;  %v14114_v11 = vld [vmem:[#allocation99_spill] sm:$0xff]  ;;  %v9896_v7 = vpop.f32.mrf.mxu0 }
 0x217   : > { %v1755_v27 = vadd.f32 %v14110_v10, %v1364_v17  ;;  %v1366_v42 = vadd.f32 %v14111_v63, %v12195_v45  ;;  %v2534_v16 = vadd.f32 %v14113_v31, %v14112_v61  ;;  %v12393_v54 = vld [vmem:[#allocation2 + $0x91] sm:$0xff]  ;;  %v3310_v44 = vadd.f32 %v12183_v47, %v2920_v40  ;;  %v12406_v56 = vld [vmem:[#allocation2 + $0x99] sm:$0xff]  ;;  %v12411_v40 = vpop.f32.mrf.mxu1  ;;  %v14124_v31 = vld [vmem:[#allocation64_spill] sm:$0xff] }
 0x218   : > { %v2922_v20 = vadd.f32 %v14114_v11, %v2531_v50  ;;  %v12395_v21 = vld [vmem:[#allocation2 + $0x90] sm:$0xff]  ;;  %v12397_v48 = vld [vmem:[#allocation2 + $0x98] sm:$0xff]  ;;  %3856 = vst.msk [vmem:[#allocation2 + $0xc1] sm:$0xff] %vm3785_vm2, %v3767_v41  ;;  %v3770_v17 = vmax.f32 %v3738_v26, 0.0  ;;  %v3737_v39 = vadd.f32 %v12130_v35, %v3698_v25  ;;  %v3701_v45 = vadd.f32 %v9896_v7, %v3311_v18  ;;  %9935 = vmatprep.mubr.msk.f32.mxu1 %vm3785_vm2, %v12393_v54  ;;  %v14118_v58 = vld [vmem:[#allocation63_spill] sm:$0xff]  ;;  %v3613_v41 = vpop.f32.mrf.mxu0 }
 0x219   : > { %14115 = vst [vmem:[#allocation10_spill] sm:$0xff] %v12395_v21  ;;  %14116 = vst [vmem:[#allocation16_spill] sm:$0xff] %v12397_v48  ;;  %9985 = vmatprep.mubr.msk.f32.mxu0 %vm3785_vm2, %v12395_v21  ;;  %v2533_v50 = vadd.f32 %v14118_v58, %v2143_v46  ;;  %v14119_v19 = vld [vmem:[#allocation66_spill] sm:$0xff]  ;;  %v3313_v47 = vadd.f32 %v12213_v3, %v2923_v43  ;;  %9936 = vmatmul.mubr.msk.f32.gmra.mxu1 %vm3785_vm2, %v12406_v56  ;;  %v14120_v18 = vld [vmem:[#allocation100_spill] sm:$0xff] }
 0x21a   : > { %14117 = vst [vmem:[#allocation15_spill] sm:$0xff] %v12406_v56  ;;  %v2145_v9 = vadd.f32 %v14119_v19, %v1755_v27  ;;  %9986 = vmatmul.mubr.msk.f32.gmra.mxu0 %vm3785_vm2, %v12397_v48  ;;  %v2925_v26 = vadd.f32 %v14120_v18, %v2534_v16  ;;  %3859 = vst.msk [vmem:[#allocation2 + $0xe1] sm:$0xff] %vm3785_vm2, %v3770_v17  ;;  %v3769_v25 = vmax.f32 %v3737_v39, 0.0  ;;  %v14121_v27 = vld [vmem:[#allocation30_spill] sm:$0xff]  ;;  %v14122_v3 = vld [vmem:[#allocation31_spill] sm:$0xff]  ;;  %v9899_v58 = vpop.f32.mrf.mxu0 }
 0x21b   : > { %v3740_v46 = vadd.f32 %v12130_v35, %v3701_v45  ;;  %v3700_v10 = vadd.f32 %v3613_v41, %v3310_v44  ;;  %v1757_v63 = vadd.f32 %v14121_v27, %v1366_v42  ;;  %v1368_v43 = vadd.f32 %v14122_v3, %v12208_v12  ;;  %v14123_v61 = vld [vmem:[#allocation65_spill] sm:$0xff]  ;;  %v12428_v16 = vld [vmem:[#allocation2 + $0xa8] sm:$0xff]  ;;  %v14128_v39 = vld [vmem:[#allocation102_spill] sm:$0xff] }
 0x21c   : > { %v2536_v11 = vadd.f32 %v14124_v31, %v14123_v61  ;;  %v3312_v7 = vadd.f32 %v12245_v52, %v2922_v20  ;;  %v12426_v19 = vld [vmem:[#allocation2 + $0xa9] sm:$0xff]  ;;  %14126 = vst [vmem:[#allocation37_spill] sm:$0xff] %v12428_v16  ;;  %v2924_v45 = vadd.f32 %v14128_v39, %v2533_v50  ;;  %3858 = vst.msk [vmem:[#allocation2 + $0xd9] sm:$0xff] %vm3785_vm2, %v3769_v25  ;;  %9988 = vmatprep.mubr.msk.f32.mxu0 %vm3785_vm2, %v12428_v16  ;;  %v12439_v52 = vld [vmem:[#allocation2 + $0xb1] sm:$0xff]  ;;  %v12444_v61 = vpop.f32.mrf.mxu1  ;;  %v3623_v25 = vpop.f32.mrf.mxu0 }
 0x21d   : > { %14125 = vst [vmem:[#allocation38_spill] sm:$0xff] %v12426_v19  ;;  %v12430_v17 = vld [vmem:[#allocation2 + $0xb0] sm:$0xff]  ;;  %v3772_v42 = vmax.f32 %v3740_v46, 0.0  ;;  %v3739_v44 = vadd.f32 %v12130_v35, %v3700_v10  ;;  %v3703_v12 = vadd.f32 %v9899_v58, %v3313_v47  ;;  %9938 = vmatprep.mubr.msk.f32.mxu1 %vm3785_vm2, %v12426_v19  ;;  %14129 = vst [vmem:[#allocation87_spill] sm:$0xff] %v12439_v52  ;;  %v14130_v20 = vld [vmem:[#allocation67_spill] sm:$0xff] }
 0x21e   : > { %14127 = vst [vmem:[#allocation82_spill] sm:$0xff] %v12430_v17  ;;  %v2535_v41 = vadd.f32 %v14130_v20, %v2145_v9  ;;  %v14131_v18 = vld [vmem:[#allocation70_spill] sm:$0xff]  ;;  %v14132_v3 = vld [vmem:[#allocation103_spill] sm:$0xff]  ;;  %9939 = vmatmul.mubr.msk.f32.gmra.mxu1 %vm3785_vm2, %v12439_v52  ;;  %9989 = vmatmul.mubr.msk.f32.gmra.mxu0 %vm3785_vm2, %v12430_v17  ;;  %v3315_v47 = vadd.f32 %v12279_v37, %v2925_v26  ;;  %v14135_v39 = vld [vmem:[#allocation69_spill] sm:$0xff]  ;;  %v9902_v19 = vpop.f32.mrf.mxu0 }
 0x21f   : > { %v2147_v27 = vadd.f32 %v14131_v18, %v1757_v63  ;;  %v2927_v50 = vadd.f32 %v14132_v3, %v2536_v11  ;;  %3861 = vst.msk [vmem:[#allocation2 + $0xf9] sm:$0xff] %vm3785_vm2, %v3772_v42  ;;  %v3771_v46 = vmax.f32 %v3739_v44, 0.0  ;;  %v3742_v9 = vadd.f32 %v12130_v35, %v3703_v12  ;;  %v14133_v63 = vld [vmem:[#allocation32_spill] sm:$0xff]  ;;  %v14134_v11 = vld [vmem:[#allocation33_spill] sm:$0xff]  ;;  %v12461_v37 = vld [vmem:[#allocation2 + $0xc0] sm:$0xff] }
 0x220   : > { %v3702_v10 = vadd.f32 %v3623_v25, %v3312_v7  ;;  %v1759_v31 = vadd.f32 %v14133_v63, %v1368_v43  ;;  %v1370_v58 = vadd.f32 %v14134_v11, %v12220_v55  ;;  %v14136_v20 = vld [vmem:[#allocation68_spill] sm:$0xff]  ;;  %14138 = vst [vmem:[#allocation11_spill] sm:$0xff] %v12461_v37  ;;  %v3314_v42 = vadd.f32 %v12312_v22, %v2924_v45  ;;  %v14141_v12 = vld [vmem:[#allocation71_spill] sm:$0xff]  ;;  %v14142_v25 = vld [vmem:[#allocation74_spill] sm:$0xff]  ;;  %v9861_v45 = vpop.f32.mrf.mxu1 }
 0x221   : > { %v2538_v18 = vadd.f32 %v14136_v20, %v14135_v39  ;;  %v14137_v3 = vld [vmem:[#allocation104_spill] sm:$0xff]  ;;  %3860 = vst.msk [vmem:[#allocation2 + $0xf1] sm:$0xff] %vm3785_vm2, %v3771_v46  ;;  %v3774_v43 = vmax.f32 %v3742_v9, 0.0  ;;  %v3705_v55 = vadd.f32 %v9902_v19, %v3315_v47  ;;  %9991 = vmatprep.mubr.msk.f32.mxu0 %vm3785_vm2, %v12461_v37  ;;  %v3317_v22 = vadd.f32 %v12345_v34, %v2927_v50  ;;  %v3633_v46 = vpop.f32.mrf.mxu0  ;;  %v14143_v19 = vld [vmem:[#allocation105_spill] sm:$0xff]  ;;  %v14144_v11 = vld [vmem:[#allocation34_spill] sm:$0xff] }
 0x222   : > { %v2926_v52 = vadd.f32 %v14137_v3, %v2535_v41  ;;  %v12459_v56 = vld [vmem:[#allocation2 + $0xc1] sm:$0xff]  ;;  %v3741_v7 = vadd.f32 %v12130_v35, %v3702_v10  ;;  %v12472_v44 = vld [vmem:[#allocation2 + $0xc9] sm:$0xff]  ;;  %v2537_v41 = vadd.f32 %v14141_v12, %v2147_v27  ;;  %v2149_v63 = vadd.f32 %v14142_v25, %v1759_v31 }
 0x223   : > { %v12463_v26 = vld [vmem:[#allocation2 + $0xc8] sm:$0xff]  ;;  %9941 = vmatprep.mubr.msk.f32.mxu1 %vm3785_vm2, %v12459_v56  ;;  %14140 = vst [vmem:[#allocation39_spill] sm:$0xff] %v12472_v44  ;;  %v2929_v47 = vadd.f32 %v14143_v19, %v2538_v18  ;;  %3863 = vst.msk [vmem:[#allocation2 + $0x111] sm:$0xff] %vm3785_vm2, %v3774_v43  ;;  %v3744_v10 = vadd.f32 %v12130_v35, %v3705_v55  ;;  %v3704_v27 = vadd.f32 %v3633_v46, %v3314_v42  ;;  %v14145_v39 = vld [vmem:[#allocation73_spill] sm:$0xff]  ;;  %v9905_v3 = vpop.f32.mrf.mxu0 }
 0x224   : > { %14139 = vst [vmem:[#allocation12_spill] sm:$0xff] %v12463_v26  ;;  %9942 = vmatmul.mubr.msk.f32.gmra.mxu1 %vm3785_vm2, %v12472_v44  ;;  %9992 = vmatmul.mubr.msk.f32.gmra.mxu0 %vm3785_vm2, %v12463_v26  ;;  %v3773_v9 = vmax.f32 %v3741_v7, 0.0  ;;  %v1761_v31 = vadd.f32 %v14144_v11, %v1370_v58  ;;  %v14146_v34 = vld [vmem:[#allocation72_spill] sm:$0xff]  ;;  %v3316_v20 = vadd.f32 %v12378_v13, %v2926_v52  ;;  %v12488_v12 = vld [vmem:[#allocation2 + $0xd9] sm:$0xff]  ;;  %v14152_v11 = vld [vmem:[#allocation77_spill] sm:$0xff] }
 0x225   : > { %v2540_v50 = vadd.f32 %v14146_v34, %v14145_v39  ;;  %v12490_v25 = vld [vmem:[#allocation2 + $0xd8] sm:$0xff]  ;;  %v12492_v44 = vld [vmem:[#allocation2 + $0xe0] sm:$0xff]  ;;  %v2928_v18 = vadd.f32 %v12094_v28, %v2537_v41  ;;  %v3776_v43 = vmax.f32 %v3744_v10, 0.0  ;;  %v3743_v42 = vadd.f32 %v12130_v35, %v3704_v27  ;;  %9944 = vmatprep.mubr.msk.f32.mxu1 %vm3785_vm2, %v12488_v12  ;;  %v3273_v41 = vpop.f32.mrf.mxu1 }
 0x226   : > { %14147 = vst [vmem:[#allocation42_spill] sm:$0xff] %v12490_v25  ;;  %14148 = vst [vmem:[#allocation90_spill] sm:$0xff] %v12492_v44  ;;  %v3707_v58 = vadd.f32 %v9905_v3, %v3317_v22  ;;  %9994 = vmatprep.mubr.msk.f32.mxu0 %vm3785_vm2, %v12490_v25  ;;  %v12501_v13 = vld [vmem:[#allocation2 + $0xe1] sm:$0xff]  ;;  %v14150_v55 = vld [vmem:[#allocation78_spill] sm:$0xff]  ;;  %v3319_v22 = vadd.f32 %v12411_v40, %v2929_v47 }
 0x227   : > { %3862 = vst.msk [vmem:[#allocation2 + $0x109] sm:$0xff] %vm3785_vm2, %v3773_v9  ;;  %v14149_v52 = vld [vmem:[#allocation75_spill] sm:$0xff]  ;;  %v2151_v46 = vadd.f32 %v14150_v55, %v1761_v31  ;;  %v3643_v9 = vpop.f32.mrf.mxu0  ;;  %3865 = vst.msk [vmem:[#allocation2 + $0x129] sm:$0xff] %vm3785_vm2, %v3776_v43  ;;  %v3775_v10 = vmax.f32 %v3743_v42, 0.0  ;;  %v14153_v31 = vld [vmem:[#allocation76_spill] sm:$0xff]  ;;  %v3318_v40 = vadd.f32 %v12444_v61, %v2928_v18 }
 0x228   : > { %v2539_v7 = vadd.f32 %v14149_v52, %v2149_v63  ;;  %v14151_v19 = vld [vmem:[#allocation107_spill] sm:$0xff]  ;;  %9945 = vmatmul.mubr.msk.f32.gmra.mxu1 %vm3785_vm2, %v12501_v13  ;;  %9995 = vmatmul.mubr.msk.f32.gmra.mxu0 %vm3785_vm2, %v12492_v44  ;;  %v3746_v27 = vadd.f32 %v12130_v35, %v3707_v58  ;;  %v3706_v63 = vadd.f32 %v3643_v9, %v3316_v20  ;;  %v12516_v3 = vld [vmem:[#allocation2 + $0xf1] sm:$0xff] }
 0x229   : > { %v2931_v28 = vadd.f32 %v14151_v19, %v2540_v50  ;;  %v2542_v39 = vadd.f32 %v14153_v31, %v14152_v11  ;;  %v9908_v50 = vpop.f32.mrf.mxu0  ;;  %v12518_v52 = vld [vmem:[#allocation2 + $0xf0] sm:$0xff]  ;;  %v12520_v55 = vld [vmem:[#allocation2 + $0xf8] sm:$0xff]  ;;  %3864 = vst.msk [vmem:[#allocation2 + $0x121] sm:$0xff] %vm3785_vm2, %v3775_v10  ;;  %9947 = vmatprep.mubr.msk.f32.mxu1 %vm3785_vm2, %v12516_v3  ;;  %v14156_v42 = vld [vmem:[#allocation79_spill] sm:$0xff]  ;;  %v9864_v19 = vpop.f32.mrf.mxu1 }
 0x22a   : > { %v2930_v34 = vadd.f32 %v12105_v29, %v2539_v7  ;;  %14154 = vst [vmem:[#allocation83_spill] sm:$0xff] %v12518_v52  ;;  %14155 = vst [vmem:[#allocation13_spill] sm:$0xff] %v12520_v55  ;;  %v3778_v47 = vmax.f32 %v3746_v27, 0.0  ;;  %v3745_v43 = vadd.f32 %v12130_v35, %v3706_v63  ;;  %v3709_v20 = vadd.f32 %v9908_v50, %v3319_v22  ;;  %v12529_v29 = vld [vmem:[#allocation2 + $0xf9] sm:$0xff] }
 0x22b   : > { %9997 = vmatprep.mubr.msk.f32.mxu0 %vm3785_vm2, %v12518_v52  ;;  %v2541_v58 = vadd.f32 %v14156_v42, %v2151_v46  ;;  %v3321_v7 = vadd.f32 %v9861_v45, %v2931_v28  ;;  %v3653_v9 = vpop.f32.mrf.mxu0  ;;  %v2933_v61 = vadd.f32 %v12111_v32, %v2542_v39 }
 0x22c   : > { %9948 = vmatmul.mubr.msk.f32.gmra.mxu1 %vm3785_vm2, %v12529_v29  ;;  %9998 = vmatmul.mubr.msk.f32.gmra.mxu0 %vm3785_vm2, %v12520_v55  ;;  %3867 = vst.msk [vmem:[#allocation2 + $0x141] sm:$0xff] %vm3785_vm2, %v3778_v47  ;;  %v3777_v18 = vmax.f32 %v3745_v43, 0.0  ;;  %v3748_v22 = vadd.f32 %v12130_v35, %v3709_v20  ;;  %v3708_v10 = vadd.f32 %v3653_v9, %v3318_v40 }
 0x22d   : > { %v3320_v27 = vadd.f32 %v3273_v41, %v2930_v34  ;;  %v9911_v63 = vpop.f32.mrf.mxu0  ;;  %v2932_v11 = vadd.f32 %v12118_v1, %v2541_v58  ;;  %v12552_v41 = vld [vmem:[#allocation2 + $0x111] sm:$0xff]  ;;  %v3283_v34 = vpop.f32.mrf.mxu1  ;;  %v3323_v1 = vadd.f32 %v9864_v19, %v2933_v61 }
 0x22e   : > { %v12539_v46 = vld [vmem:[#allocation2 + $0x109] sm:$0xff]  ;;  %3866 = vst.msk [vmem:[#allocation2 + $0x139] sm:$0xff] %vm3785_vm2, %v3777_v18  ;;  %v3780_v31 = vmax.f32 %v3748_v22, 0.0  ;;  %v3747_v32 = vadd.f32 %v12130_v35, %v3708_v10  ;;  %v3711_v39 = vadd.f32 %v9911_v63, %v3321_v7 }
 0x22f   : > { %v12541_v45 = vld [vmem:[#allocation2 + $0x108] sm:$0xff]  ;;  %v12543_v28 = vld [vmem:[#allocation2 + $0x110] sm:$0xff]  ;;  %9950 = vmatprep.mubr.msk.f32.mxu1 %vm3785_vm2, %v12539_v46  ;;  %v3663_v50 = vpop.f32.mrf.mxu0  ;;  %v3322_v9 = vadd.f32 %v3283_v34, %v2932_v11 }
 0x230   : > { %14157 = vst [vmem:[#allocation14_spill] sm:$0xff] %v12541_v45  ;;  %14158 = vst [vmem:[#allocation18_spill] sm:$0xff] %v12543_v28  ;;  %10000 = vmatprep.mubr.msk.f32.mxu0 %vm3785_vm2, %v12541_v45  ;;  %9951 = vmatmul.mubr.msk.f32.gmra.mxu1 %vm3785_vm2, %v12552_v41  ;;  %v3779_v40 = vmax.f32 %v3747_v32, 0.0  ;;  %v3750_v47 = vadd.f32 %v12130_v35, %v3711_v39  ;;  %v3710_v43 = vadd.f32 %v3663_v50, %v3320_v27  ;;  %v12560_v42 = vld [vmem:[#allocation2 + $0x121] sm:$0xff]  ;;  %v12572_v61 = vld [vmem:[#allocation2 + $0x129] sm:$0xff] }
 0x231   : > { %10001 = vmatmul.mubr.msk.f32.gmra.mxu0 %vm3785_vm2, %v12543_v28  ;;  %3869 = vst.msk [vmem:[#allocation2 + $0x159] sm:$0xff] %vm3785_vm2, %v3780_v31  ;;  %v9914_v20 = vpop.f32.mrf.mxu0  ;;  %v12562_v58 = vld [vmem:[#allocation2 + $0x120] sm:$0xff]  ;;  %v12564_v7 = vld [vmem:[#allocation2 + $0x128] sm:$0xff]  ;;  %9953 = vmatprep.mubr.msk.f32.mxu1 %vm3785_vm2, %v12560_v42 }
 0x232   : > { %14159 = vst [vmem:[#allocation17_spill] sm:$0xff] %v12562_v58  ;;  %14160 = vst [vmem:[#allocation41_spill] sm:$0xff] %v12564_v7  ;;  %v3782_v18 = vmax.f32 %v3750_v47, 0.0  ;;  %v3749_v22 = vadd.f32 %v12130_v35, %v3710_v43  ;;  %v3713_v19 = vadd.f32 %v9914_v20, %v3323_v1  ;;  %10003 = vmatprep.mubr.msk.f32.mxu0 %vm3785_vm2, %v12562_v58 }
 0x233   : > { %3868 = vst.msk [vmem:[#allocation2 + $0x151] sm:$0xff] %vm3785_vm2, %v3779_v40  ;;  %v3673_v10 = vpop.f32.mrf.mxu0  ;;  %v12592_v1 = vld [vmem:[#allocation2 + $0x141] sm:$0xff] }
 0x234   : > { %9954 = vmatmul.mubr.msk.f32.gmra.mxu1 %vm3785_vm2, %v12572_v61  ;;  %3871 = vst.msk [vmem:[#allocation2 + $0x171] sm:$0xff] %vm3785_vm2, %v3782_v18  ;;  %v3781_v27 = vmax.f32 %v3749_v22, 0.0  ;;  %v3752_v63 = vadd.f32 %v12130_v35, %v3713_v19  ;;  %v3712_v11 = vadd.f32 %v3673_v10, %v3322_v9  ;;  %v4583_v9 = vld [vmem:[#allocation2 + $0x2] sm:$0xff] }
 0x235   : > { %10004 = vmatmul.mubr.msk.f32.gmra.mxu0 %vm3785_vm2, %v12564_v7  ;;  %v12580_v31 = vld [vmem:[#allocation2 + $0x139] sm:$0xff] }
 0x236   : > { %v12582_v32 = vld [vmem:[#allocation2 + $0x138] sm:$0xff]  ;;  %v12584_v39 = vld [vmem:[#allocation2 + $0x140] sm:$0xff]  ;;  %3870 = vst.msk [vmem:[#allocation2 + $0x169] sm:$0xff] %vm3785_vm2, %v3781_v27  ;;  %v3784_v34 = vmax.f32 %v3752_v63, 0.0  ;;  %v3751_v50 = vadd.f32 %v12130_v35, %v3712_v11  ;;  %9956 = vmatprep.mubr.msk.f32.mxu1 %vm3785_vm2, %v12580_v31  ;;  %v4584_v27 = vld [vmem:[#allocation2 + $0xa] sm:$0xff]  ;;  %v9969_v11 = vpop.f32.mrf.mxu0 }
 0x237   : > { %14161 = vst [vmem:[#allocation40_spill] sm:$0xff] %v12582_v32  ;;  %14162 = vst [vmem:[#allocation93_spill] sm:$0xff] %v12584_v39  ;;  %10006 = vmatprep.mubr.msk.f32.mxu0 %vm3785_vm2, %v12582_v32 }
 0x238   : > { %9957 = vmatmul.mubr.msk.f32.gmra.mxu1 %vm3785_vm2, %v12592_v1  ;;  %3873 = vst.msk [vmem:[#allocation2 + $0x189] sm:$0xff] %vm3785_vm2, %v3784_v34  ;;  %v3783_v40 = vmax.f32 %v3751_v50, 0.0  ;;  %v12610_v20 = vld [vmem:[#allocation2 + $0x159] sm:$0xff]  ;;  %v12643_v50 = vld [vmem:[%s13809_s3 + $0x30] sm:$0xff] }
 0x239   : > { %10007 = vmatmul.mubr.msk.f32.gmra.mxu0 %vm3785_vm2, %v12584_v39  ;;  %v12638_v34 = vld [vmem:[#allocation2 + $0x1a] sm:$0xff] }
 0x23a   : > { %v12599_v47 = vld [vmem:[#allocation2 + $0x151] sm:$0xff]  ;;  %3872 = vst.msk [vmem:[#allocation2 + $0x181] sm:$0xff] %vm3785_vm2, %v3783_v40 }
 0x23b   : > { %v12601_v35 = vld [vmem:[#allocation2 + $0x150] sm:$0xff]  ;;  %v12603_v43 = vld [vmem:[#allocation2 + $0x158] sm:$0xff]  ;;  %9959 = vmatprep.mubr.msk.f32.mxu1 %vm3785_vm2, %v12599_v47 }
 0x23c   : > { %14163 = vst [vmem:[#allocation85_spill] sm:$0xff] %v12601_v35  ;;  %14164 = vst [vmem:[#allocation43_spill] sm:$0xff] %v12603_v43  ;;  %10009 = vmatprep.mubr.msk.f32.mxu0 %vm3785_vm2, %v12601_v35  ;;  %9960 = vmatmul.mubr.msk.f32.gmra.mxu1 %vm3785_vm2, %v12610_v20  ;;  %v12626_v10 = vld [vmem:[#allocation2 + $0x171] sm:$0xff] }
 0x23d   : > { %10010 = vmatmul.mubr.msk.f32.gmra.mxu0 %vm3785_vm2, %v12603_v43  ;;  %v12616_v18 = vld [vmem:[#allocation2 + $0x169] sm:$0xff] }
 0x23e   : > { %v12618_v22 = vld [vmem:[#allocation2 + $0x168] sm:$0xff]  ;;  %v12620_v19 = vld [vmem:[#allocation2 + $0x170] sm:$0xff]  ;;  %9962 = vmatprep.mubr.msk.f32.mxu1 %vm3785_vm2, %v12616_v18 }
 0x23f   : > { %14165 = vst [vmem:[#allocation46_spill] sm:$0xff] %v12618_v22  ;;  %10012 = vmatprep.mubr.msk.f32.mxu0 %vm3785_vm2, %v12618_v22 }
 0x240   : > { %9963 = vmatmul.mubr.msk.f32.gmra.mxu1 %vm3785_vm2, %v12626_v10 }
 0x241   : > { %10013 = vmatmul.mubr.msk.f32.gmra.mxu0 %vm3785_vm2, %v12620_v19  ;;  %10017 = vmatprep.mubr.msk.f32.mxu1 %vm3785_vm2, %v4583_v9  ;;  %v12658_v9 = vld [vmem:[#allocation2 + $0x22] sm:$0xff] }
 0x242   : > { %10067 = vmatprep.mubr.msk.f32.mxu0 %vm3785_vm2, %v12229_v38  ;;  %v12648_v38 = vld [vmem:[%s13809_s3 + $0x38] sm:$0xff] }
 0x244   : > { %10018 = vmatmul.mubr.msk.f32.vlgmr.msra.gmra.mxu1 %vm3785_vm2, %v4584_v27  ;;  %v12666_v27 = vld [vmem:[#allocation2 + $0x32] sm:$0xff] }
 0x245   : > { %v9919_v63 = vpop.f32.mrf.mxu1  ;;  %10068 = vmatmul.mubr.msk.f32.vlgmr.msra.gmra.mxu0 %vm3785_vm2, %v12231_v2  ;;  %10020 = vmatprep.mubr.msk.f32.mxu1 %vm3785_vm2, %v12638_v34  ;;  %v14167_v2 = vld [vmem:[#allocation80_spill] sm:$0xff] }
 0x246   : > { %v12650_v40 = vadd.f32 %v9969_v11, %v9919_v63  ;;  %10070 = vmatprep.mubr.msk.f32.mxu0 %vm3785_vm2, %v12263_v33  ;;  %10116 = vmatpush3.msra.mxu1 %v14167_v2  ;;  %v12678_v63 = vld [vmem:[#allocation2 + $0x4a] sm:$0xff]  ;;  %v12684_v11 = vld [vmem:[#allocation2 + $0x52] sm:$0xff]  ;;  %v12690_v2 = vld [vmem:[#allocation2 + $0x62] sm:$0xff] }
 0x247   : > { %10166 = vmatpush3.msra.mxu0 %v12191_v62  ;;  %10215 = vmatprep.subr.mxu1 %v12643_v50  ;;  %v12672_v62 = vld [vmem:[#allocation2 + $0x3a] sm:$0xff] }
 0x248   : > { %14166 = vst [vmem:[#allocation86_spill] sm:$0xff] %v12650_v40  ;;  %10265 = vmatprep.subr.mxu0 %v12648_v38  ;;  %10021 = vmatmul.mubr.msk.f32.gmra.mxu1 %vm3785_vm2, %v12658_v9  ;;  %v12696_v40 = vld [vmem:[#allocation2 + $0x6a] sm:$0xff] }
 0x249   : > { %10071 = vmatmul.mubr.msk.f32.gmra.mxu0 %vm3785_vm2, %v12265_v23  ;;  %10023 = vmatprep.mubr.msk.f32.mxu1 %vm3785_vm2, %v12666_v27 }
 0x24a   : > { %10073 = vmatprep.mubr.msk.f32.mxu0 %vm3785_vm2, %v12296_v59 }
 0x24c   : > { %10024 = vmatmul.mubr.msk.f32.gmra.mxu1 %vm3785_vm2, %v12672_v62 }
 0x24d   : > { %10074 = vmatmul.mubr.msk.f32.gmra.mxu0 %vm3785_vm2, %v12298_v49  ;;  %10026 = vmatprep.mubr.msk.f32.mxu1 %vm3785_vm2, %v12678_v63  ;;  %v12824_v49 = vld [vmem:[#allocation2 + $0x180] sm:$0xff] }
 0x24e   : > { %10076 = vmatprep.mubr.msk.f32.mxu0 %vm3785_vm2, %v12329_v53  ;;  %v12702_v53 = vld [vmem:[#allocation2 + $0x7a] sm:$0xff]  ;;  %14168 = vst [vmem:[#allocation96_spill] sm:$0xff] %v12824_v49 }
 0x250   : > { %10027 = vmatmul.mubr.msk.f32.gmra.mxu1 %vm3785_vm2, %v12684_v11 }
 0x251   : > { %10077 = vmatmul.mubr.msk.f32.gmra.mxu0 %vm3785_vm2, %v12331_v6  ;;  %10029 = vmatprep.mubr.msk.f32.mxu1 %vm3785_vm2, %v12690_v2  ;;  %v12708_v6 = vld [vmem:[#allocation2 + $0x82] sm:$0xff] }
 0x252   : > { %10079 = vmatprep.mubr.msk.f32.mxu0 %vm3785_vm2, %v12362_v24  ;;  %v12714_v24 = vld [vmem:[#allocation2 + $0x92] sm:$0xff] }
 0x254   : > { %10030 = vmatmul.mubr.msk.f32.gmra.mxu1 %vm3785_vm2, %v12696_v40 }
 0x255   : > { %10080 = vmatmul.mubr.msk.f32.gmra.mxu0 %vm3785_vm2, %v12364_v0  ;;  %10032 = vmatprep.mubr.msk.f32.mxu1 %vm3785_vm2, %v12702_v53  ;;  %v12720_v0 = vld [vmem:[#allocation2 + $0x9a] sm:$0xff] }
 0x256   : > { %10082 = vmatprep.mubr.msk.f32.mxu0 %vm3785_vm2, %v12395_v21  ;;  %v12726_v21 = vld [vmem:[#allocation2 + $0xaa] sm:$0xff] }
 0x258   : > { %10033 = vmatmul.mubr.msk.f32.gmra.mxu1 %vm3785_vm2, %v12708_v6 }
 0x259   : > { %10083 = vmatmul.mubr.msk.f32.gmra.mxu0 %vm3785_vm2, %v12397_v48  ;;  %10035 = vmatprep.mubr.msk.f32.mxu1 %vm3785_vm2, %v12714_v24  ;;  %v12732_v48 = vld [vmem:[#allocation2 + $0xb2] sm:$0xff] }
 0x25a   : > { %10085 = vmatprep.mubr.msk.f32.mxu0 %vm3785_vm2, %v12428_v16  ;;  %v12738_v16 = vld [vmem:[#allocation2 + $0xc2] sm:$0xff] }
 0x25c   : > { %10036 = vmatmul.mubr.msk.f32.gmra.mxu1 %vm3785_vm2, %v12720_v0 }
 0x25d   : > { %10086 = vmatmul.mubr.msk.f32.gmra.mxu0 %vm3785_vm2, %v12430_v17  ;;  %10038 = vmatprep.mubr.msk.f32.mxu1 %vm3785_vm2, %v12726_v21  ;;  %v12744_v17 = vld [vmem:[#allocation2 + $0xca] sm:$0xff] }
 0x25e   : > { %10088 = vmatprep.mubr.msk.f32.mxu0 %vm3785_vm2, %v12461_v37  ;;  %v12750_v37 = vld [vmem:[#allocation2 + $0xda] sm:$0xff] }
 0x260   : > { %10039 = vmatmul.mubr.msk.f32.gmra.mxu1 %vm3785_vm2, %v12732_v48 }
 0x261   : > { %10089 = vmatmul.mubr.msk.f32.gmra.mxu0 %vm3785_vm2, %v12463_v26  ;;  %10041 = vmatprep.mubr.msk.f32.mxu1 %vm3785_vm2, %v12738_v16  ;;  %v12756_v26 = vld [vmem:[#allocation2 + $0xe2] sm:$0xff] }
 0x262   : > { %10091 = vmatprep.mubr.msk.f32.mxu0 %vm3785_vm2, %v12490_v25  ;;  %v12762_v25 = vld [vmem:[#allocation2 + $0xf2] sm:$0xff] }
 0x264   : > { %10042 = vmatmul.mubr.msk.f32.gmra.mxu1 %vm3785_vm2, %v12744_v17 }
 0x265   : > { %10092 = vmatmul.mubr.msk.f32.gmra.mxu0 %vm3785_vm2, %v12492_v44  ;;  %10044 = vmatprep.mubr.msk.f32.mxu1 %vm3785_vm2, %v12750_v37  ;;  %v12768_v44 = vld [vmem:[#allocation2 + $0xfa] sm:$0xff] }
 0x266   : > { %10094 = vmatprep.mubr.msk.f32.mxu0 %vm3785_vm2, %v12518_v52  ;;  %v12774_v52 = vld [vmem:[#allocation2 + $0x10a] sm:$0xff] }
 0x268   : > { %10045 = vmatmul.mubr.msk.f32.gmra.mxu1 %vm3785_vm2, %v12756_v26 }
 0x269   : > { %10095 = vmatmul.mubr.msk.f32.gmra.mxu0 %vm3785_vm2, %v12520_v55  ;;  %10047 = vmatprep.mubr.msk.f32.mxu1 %vm3785_vm2, %v12762_v25  ;;  %v12780_v55 = vld [vmem:[#allocation2 + $0x112] sm:$0xff] }
 0x26a   : > { %10097 = vmatprep.mubr.msk.f32.mxu0 %vm3785_vm2, %v12541_v45  ;;  %v12786_v45 = vld [vmem:[#allocation2 + $0x122] sm:$0xff] }
 0x26c   : > { %10048 = vmatmul.mubr.msk.f32.gmra.mxu1 %vm3785_vm2, %v12768_v44 }
 0x26d   : > { %10098 = vmatmul.mubr.msk.f32.gmra.mxu0 %vm3785_vm2, %v12543_v28  ;;  %10050 = vmatprep.mubr.msk.f32.mxu1 %vm3785_vm2, %v12774_v52  ;;  %v12792_v28 = vld [vmem:[#allocation2 + $0x12a] sm:$0xff] }
 0x26e   : > { %10100 = vmatprep.mubr.msk.f32.mxu0 %vm3785_vm2, %v12562_v58  ;;  %v12798_v58 = vld [vmem:[#allocation2 + $0x13a] sm:$0xff] }
 0x270   : > { %10051 = vmatmul.mubr.msk.f32.gmra.mxu1 %vm3785_vm2, %v12780_v55 }
 0x271   : > { %10101 = vmatmul.mubr.msk.f32.gmra.mxu0 %vm3785_vm2, %v12564_v7  ;;  %10053 = vmatprep.mubr.msk.f32.mxu1 %vm3785_vm2, %v12786_v45  ;;  %v12804_v7 = vld [vmem:[#allocation2 + $0x142] sm:$0xff] }
 0x272   : > { %10103 = vmatprep.mubr.msk.f32.mxu0 %vm3785_vm2, %v12582_v32  ;;  %v12810_v32 = vld [vmem:[#allocation2 + $0x152] sm:$0xff] }
 0x274   : > { %10054 = vmatmul.mubr.msk.f32.gmra.mxu1 %vm3785_vm2, %v12792_v28 }
 0x275   : > { %10104 = vmatmul.mubr.msk.f32.gmra.mxu0 %vm3785_vm2, %v12584_v39  ;;  %10056 = vmatprep.mubr.msk.f32.mxu1 %vm3785_vm2, %v12798_v58  ;;  %v12816_v39 = vld [vmem:[#allocation2 + $0x15a] sm:$0xff] }
 0x276   : > { %10106 = vmatprep.mubr.msk.f32.mxu0 %vm3785_vm2, %v12601_v35  ;;  %v12822_v35 = vld [vmem:[#allocation2 + $0x16a] sm:$0xff] }
 0x278   : > { %10057 = vmatmul.mubr.msk.f32.gmra.mxu1 %vm3785_vm2, %v12804_v7 }
 0x279   : > { %10107 = vmatmul.mubr.msk.f32.gmra.mxu0 %vm3785_vm2, %v12603_v43  ;;  %10059 = vmatprep.mubr.msk.f32.mxu1 %vm3785_vm2, %v12810_v32  ;;  %v12830_v43 = vld [vmem:[#allocation2 + $0x172] sm:$0xff] }
 0x27a   : > { %10109 = vmatprep.mubr.msk.f32.mxu0 %vm3785_vm2, %v12618_v22  ;;  %v12832_v22 = vld [vmem:[#allocation2 + $0x188] sm:$0xff] }
 0x27c   : > { %10060 = vmatmul.mubr.msk.f32.gmra.mxu1 %vm3785_vm2, %v12816_v39 }
 0x27d   : > { %10110 = vmatmul.mubr.msk.f32.gmra.mxu0 %vm3785_vm2, %v12620_v19  ;;  %10062 = vmatprep.mubr.msk.f32.mxu1 %vm3785_vm2, %v12822_v35 }
 0x27e   : > { %10112 = vmatprep.mubr.msk.f32.mxu0 %vm3785_vm2, %v12824_v49  ;;  %v12849_v49 = vld [vmem:[%s13809_s3 + $0x40] sm:$0xff] }
 0x280   : > { %10063 = vmatmul.mubr.msk.f32.gmra.mxu1 %vm3785_vm2, %v12830_v43 }
 0x281   : > { %10113 = vmatmul.mubr.msk.f32.gmra.mxu0 %vm3785_vm2, %v12832_v22  ;;  %10117 = vmatprep.mubr.msk.f32.mxu1 %vm3785_vm2, %v12227_v57  ;;  %v14169_v57 = vld [vmem:[#allocation15_spill] sm:$0xff] }
 0x282   : > { %10167 = vmatprep.mubr.msk.f32.mxu0 %vm3785_vm2, %v12638_v34  ;;  %v14171_v34 = vld [vmem:[#allocation87_spill] sm:$0xff] }
 0x284   : > { %10118 = vmatmul.mubr.msk.f32.vlgmr.msra.gmra.mxu1 %vm3785_vm2, %v12240_v60  ;;  %v14170_v60 = vld [vmem:[#allocation38_spill] sm:$0xff] }
 0x285   : > { %10168 = vmatmul.mubr.msk.f32.vlgmr.msra.gmra.mxu0 %vm3785_vm2, %v12658_v9  ;;  %10120 = vmatprep.mubr.msk.f32.mxu1 %vm3785_vm2, %v12261_v14  ;;  %v14177_v9 = vld [vmem:[#allocation81_spill] sm:$0xff] }
 0x286   : > { %10170 = vmatprep.mubr.msk.f32.mxu0 %vm3785_vm2, %v12666_v27  ;;  %10216 = vmatpush3.msra.mxu1 %v12643_v50  ;;  %v14172_v50 = vld [vmem:[#allocation39_spill] sm:$0xff] }
 0x287   : > { %10266 = vmatpush3.msra.mxu0 %v12648_v38  ;;  %10315 = vmatprep.subr.mxu1 %v12849_v49 }
 0x288   : > { %10121 = vmatmul.mubr.msk.f32.gmra.mxu1 %vm3785_vm2, %v12274_v15 }
 0x289   : > { %10171 = vmatmul.mubr.msk.f32.gmra.mxu0 %vm3785_vm2, %v12672_v62  ;;  %10123 = vmatprep.mubr.msk.f32.mxu1 %vm3785_vm2, %v12294_v5 }
 0x28a   : > { %10173 = vmatprep.mubr.msk.f32.mxu0 %vm3785_vm2, %v12678_v63 }
 0x28c   : > { %10124 = vmatmul.mubr.msk.f32.gmra.mxu1 %vm3785_vm2, %v12307_v36 }
 0x28d   : > { %10174 = vmatmul.mubr.msk.f32.gmra.mxu0 %vm3785_vm2, %v12684_v11  ;;  %10126 = vmatprep.mubr.msk.f32.mxu1 %vm3785_vm2, %v12327_v4 }
 0x28e   : > { %10176 = vmatprep.mubr.msk.f32.mxu0 %vm3785_vm2, %v12690_v2 }
 0x290   : > { %10127 = vmatmul.mubr.msk.f32.gmra.mxu1 %vm3785_vm2, %v12340_v8 }
 0x291   : > { %10177 = vmatmul.mubr.msk.f32.gmra.mxu0 %vm3785_vm2, %v12696_v40  ;;  %10129 = vmatprep.mubr.msk.f32.mxu1 %vm3785_vm2, %v12360_v51 }
 0x292   : > { %10179 = vmatprep.mubr.msk.f32.mxu0 %vm3785_vm2, %v12702_v53 }
 0x294   : > { %10130 = vmatmul.mubr.msk.f32.gmra.mxu1 %vm3785_vm2, %v12373_v30 }
 0x295   : > { %10180 = vmatmul.mubr.msk.f32.gmra.mxu0 %vm3785_vm2, %v12708_v6  ;;  %10132 = vmatprep.mubr.msk.f32.mxu1 %vm3785_vm2, %v12393_v54 }
 0x296   : > { %10182 = vmatprep.mubr.msk.f32.mxu0 %vm3785_vm2, %v12714_v24 }
 0x298   : > { %10133 = vmatmul.mubr.msk.f32.gmra.mxu1 %vm3785_vm2, %v14169_v57 }
 0x299   : > { %10183 = vmatmul.mubr.msk.f32.gmra.mxu0 %vm3785_vm2, %v12720_v0  ;;  %10135 = vmatprep.mubr.msk.f32.mxu1 %vm3785_vm2, %v14170_v60 }
 0x29a   : > { %10185 = vmatprep.mubr.msk.f32.mxu0 %vm3785_vm2, %v12726_v21 }
 0x29c   : > { %10136 = vmatmul.mubr.msk.f32.gmra.mxu1 %vm3785_vm2, %v14171_v34 }
 0x29d   : > { %10186 = vmatmul.mubr.msk.f32.gmra.mxu0 %vm3785_vm2, %v12732_v48  ;;  %10138 = vmatprep.mubr.msk.f32.mxu1 %vm3785_vm2, %v12459_v56 }
 0x29e   : > { %10188 = vmatprep.mubr.msk.f32.mxu0 %vm3785_vm2, %v12738_v16 }
 0x2a0   : > { %10139 = vmatmul.mubr.msk.f32.gmra.mxu1 %vm3785_vm2, %v14172_v50 }
 0x2a1   : > { %10189 = vmatmul.mubr.msk.f32.gmra.mxu0 %vm3785_vm2, %v12744_v17  ;;  %10141 = vmatprep.mubr.msk.f32.mxu1 %vm3785_vm2, %v12488_v12 }
 0x2a2   : > { %10191 = vmatprep.mubr.msk.f32.mxu0 %vm3785_vm2, %v12750_v37 }
 0x2a4   : > { %10142 = vmatmul.mubr.msk.f32.gmra.mxu1 %vm3785_vm2, %v12501_v13 }
 0x2a5   : > { %10192 = vmatmul.mubr.msk.f32.gmra.mxu0 %vm3785_vm2, %v12756_v26  ;;  %10144 = vmatprep.mubr.msk.f32.mxu1 %vm3785_vm2, %v12516_v3 }
 0x2a6   : > { %10194 = vmatprep.mubr.msk.f32.mxu0 %vm3785_vm2, %v12762_v25 }
 0x2a8   : > { %10145 = vmatmul.mubr.msk.f32.gmra.mxu1 %vm3785_vm2, %v12529_v29 }
 0x2a9   : > { %10195 = vmatmul.mubr.msk.f32.gmra.mxu0 %vm3785_vm2, %v12768_v44  ;;  %10147 = vmatprep.mubr.msk.f32.mxu1 %vm3785_vm2, %v12539_v46 }
 0x2aa   : > { %10197 = vmatprep.mubr.msk.f32.mxu0 %vm3785_vm2, %v12774_v52 }
 0x2ac   : > { %10148 = vmatmul.mubr.msk.f32.gmra.mxu1 %vm3785_vm2, %v12552_v41 }
 0x2ad   : > { %10198 = vmatmul.mubr.msk.f32.gmra.mxu0 %vm3785_vm2, %v12780_v55  ;;  %10150 = vmatprep.mubr.msk.f32.mxu1 %vm3785_vm2, %v12560_v42  ;;  %v12966_v55 = vld [vmem:[#allocation2 + $0x181] sm:$0xff] }
 0x2ae   : > { %10200 = vmatprep.mubr.msk.f32.mxu0 %vm3785_vm2, %v12786_v45 }
 0x2b0   : > { %10151 = vmatmul.mubr.msk.f32.gmra.mxu1 %vm3785_vm2, %v12572_v61 }
 0x2b1   : > { %10201 = vmatmul.mubr.msk.f32.gmra.mxu0 %vm3785_vm2, %v12792_v28  ;;  %10153 = vmatprep.mubr.msk.f32.mxu1 %vm3785_vm2, %v12580_v31  ;;  %v12968_v28 = vld [vmem:[#allocation2 + $0x182] sm:$0xff] }
 0x2b2   : > { %10203 = vmatprep.mubr.msk.f32.mxu0 %vm3785_vm2, %v12798_v58  ;;  %14173 = vst [vmem:[#allocation20_spill] sm:$0xff] %v12968_v28  ;;  %v12974_v58 = vld [vmem:[#allocation2 + $0x189] sm:$0xff] }
 0x2b4   : > { %10154 = vmatmul.mubr.msk.f32.gmra.mxu1 %vm3785_vm2, %v12592_v1 }
 0x2b5   : > { %10204 = vmatmul.mubr.msk.f32.gmra.mxu0 %vm3785_vm2, %v12804_v7  ;;  %10156 = vmatprep.mubr.msk.f32.mxu1 %vm3785_vm2, %v12599_v47  ;;  %v12976_v7 = vld [vmem:[#allocation2 + $0x18a] sm:$0xff] }
 0x2b6   : > { %10206 = vmatprep.mubr.msk.f32.mxu0 %vm3785_vm2, %v12810_v32  ;;  %14174 = vst [vmem:[#allocation19_spill] sm:$0xff] %v12976_v7  ;;  %v12994_v32 = vpop.f32.mrf.mxu1 }
 0x2b8   : > { %10157 = vmatmul.mubr.msk.f32.gmra.mxu1 %vm3785_vm2, %v12610_v20 }
 0x2b9   : > { %10207 = vmatmul.mubr.msk.f32.gmra.mxu0 %vm3785_vm2, %v12816_v39  ;;  %10159 = vmatprep.mubr.msk.f32.mxu1 %vm3785_vm2, %v12616_v18  ;;  %v12996_v39 = vpop.f32.mrf.mxu0 }
 0x2ba   : > { %10209 = vmatprep.mubr.msk.f32.mxu0 %vm3785_vm2, %v12822_v35  ;;  %v14175_v35 = vld [vmem:[#allocation35_spill] sm:$0xff] }
 0x2bc   : > { %10160 = vmatmul.mubr.msk.f32.gmra.mxu1 %vm3785_vm2, %v12626_v10 }
 0x2bd   : > { %10210 = vmatmul.mubr.msk.f32.gmra.mxu0 %vm3785_vm2, %v12830_v43  ;;  %10162 = vmatprep.mubr.msk.f32.mxu1 %vm3785_vm2, %v12966_v55 }
 0x2be   : > { %10212 = vmatprep.mubr.msk.f32.mxu0 %vm3785_vm2, %v12968_v28  ;;  %v14195_v28 = vld [vmem:[#allocation93_spill] sm:$0xff] }
 0x2c0   : > { %10163 = vmatmul.mubr.msk.f32.gmra.mxu1 %vm3785_vm2, %v12974_v58 }
 0x2c1   : > { %10213 = vmatmul.mubr.msk.f32.gmra.mxu0 %vm3785_vm2, %v12976_v7  ;;  %10217 = vmatprep.mubr.msk.f32.mxu1 %vm3785_vm2, %v12263_v33 }
 0x2c2   : > { %10267 = vmatprep.mubr.msk.f32.mxu0 %vm3785_vm2, %v12261_v14 }
 0x2c4   : > { %10218 = vmatmul.mubr.msk.f32.vlgmr.msra.gmra.mxu1 %vm3785_vm2, %v12265_v23  ;;  %v9922_v33 = vpop.f32.mrf.mxu1 }
 0x2c5   : > { %10268 = vmatmul.mubr.msk.f32.vlgmr.msra.gmra.mxu0 %vm3785_vm2, %v12274_v15  ;;  %10220 = vmatprep.mubr.msk.f32.mxu1 %vm3785_vm2, %v12296_v59  ;;  %v9972_v14 = vpop.f32.mrf.mxu0  ;;  %v14176_v15 = vld [vmem:[#allocation36_spill] sm:$0xff] }
 0x2c6   : > { %10270 = vmatprep.mubr.msk.f32.mxu0 %vm3785_vm2, %v12294_v5  ;;  %10316 = vmatpush3.msra.mxu1 %v12849_v49  ;;  %v13003_v23 = vadd.f32 %v9972_v14, %v9922_v33  ;;  %v4113_v5 = vpop.f32.mrf.mxu1  ;;  %v14178_v33 = vld [vmem:[#allocation84_spill] sm:$0xff] }
 0x2c7   : > { %v4434_v59 = vpop.f32.mrf.mxu0 }
 0x2c8   : > { %10221 = vmatmul.mubr.msk.f32.gmra.mxu1 %vm3785_vm2, %v14175_v35  ;;  %v13009_v43 = vadd.f32 %v4434_v59, %v4113_v5  ;;  %v9925_v49 = vpop.f32.mrf.mxu1  ;;  %v14179_v59 = vld [vmem:[#allocation9_spill] sm:$0xff] }
 0x2c9   : > { %10271 = vmatmul.mubr.msk.f32.gmra.mxu0 %vm3785_vm2, %v12307_v36  ;;  %10223 = vmatprep.mubr.msk.f32.mxu1 %vm3785_vm2, %v14176_v15  ;;  %v9975_v38 = vpop.f32.mrf.mxu0 }
 0x2ca   : > { %10273 = vmatprep.mubr.msk.f32.mxu0 %vm3785_vm2, %v12327_v4  ;;  %v13015_v36 = vadd.f32 %v9975_v38, %v9925_v49  ;;  %v4123_v4 = vpop.f32.mrf.mxu1  ;;  %v14180_v49 = vld [vmem:[#allocation10_spill] sm:$0xff] }
 0x2cb   : > { %v4444_v14 = vpop.f32.mrf.mxu0 }
 0x2cc   : > { %10224 = vmatmul.mubr.msk.f32.gmra.mxu1 %vm3785_vm2, %v14177_v9  ;;  %v13021_v35 = vadd.f32 %v4444_v14, %v4123_v4  ;;  %v9928_v15 = vpop.f32.mrf.mxu1  ;;  %v14181_v14 = vld [vmem:[#allocation16_spill] sm:$0xff] }
 0x2cd   : > { %10274 = vmatmul.mubr.msk.f32.gmra.mxu0 %vm3785_vm2, %v12340_v8  ;;  %10226 = vmatprep.mubr.msk.f32.mxu1 %vm3785_vm2, %v14178_v33  ;;  %v9978_v5 = vpop.f32.mrf.mxu0 }
 0x2ce   : > { %10276 = vmatprep.mubr.msk.f32.mxu0 %vm3785_vm2, %v12360_v51  ;;  %v13027_v8 = vadd.f32 %v9978_v5, %v9928_v15  ;;  %v4133_v51 = vpop.f32.mrf.mxu1  ;;  %v14182_v15 = vld [vmem:[#allocation37_spill] sm:$0xff] }
 0x2cf   : > { %v4454_v38 = vpop.f32.mrf.mxu0 }
 0x2d0   : > { %10227 = vmatmul.mubr.msk.f32.gmra.mxu1 %vm3785_vm2, %v14179_v59  ;;  %v13033_v9 = vadd.f32 %v4454_v38, %v4133_v51  ;;  %v14183_v38 = vld [vmem:[#allocation82_spill] sm:$0xff] }
 0x2d1   : > { %10277 = vmatmul.mubr.msk.f32.gmra.mxu0 %vm3785_vm2, %v12373_v30  ;;  %10229 = vmatprep.mubr.msk.f32.mxu1 %vm3785_vm2, %v14180_v49  ;;  %v9931_v33 = vpop.f32.mrf.mxu1  ;;  %v9981_v4 = vpop.f32.mrf.mxu0 }
 0x2d2   : > { %10279 = vmatprep.mubr.msk.f32.mxu0 %vm3785_vm2, %v12393_v54  ;;  %v13039_v30 = vadd.f32 %v9981_v4, %v9931_v33  ;;  %v14184_v33 = vld [vmem:[#allocation11_spill] sm:$0xff] }
 0x2d3   : > { %v4143_v54 = vpop.f32.mrf.mxu1  ;;  %v4464_v5 = vpop.f32.mrf.mxu0 }
 0x2d4   : > { %10230 = vmatmul.mubr.msk.f32.gmra.mxu1 %vm3785_vm2, %v14181_v14  ;;  %v13045_v59 = vadd.f32 %v4464_v5, %v4143_v54  ;;  %v14185_v5 = vld [vmem:[#allocation12_spill] sm:$0xff] }
 0x2d5   : > { %10280 = vmatmul.mubr.msk.f32.gmra.mxu0 %vm3785_vm2, %v14169_v57  ;;  %10232 = vmatprep.mubr.msk.f32.mxu1 %vm3785_vm2, %v14182_v15  ;;  %v9934_v49 = vpop.f32.mrf.mxu1  ;;  %v9984_v51 = vpop.f32.mrf.mxu0 }
 0x2d6   : > { %10282 = vmatprep.mubr.msk.f32.mxu0 %vm3785_vm2, %v14170_v60  ;;  %v13051_v57 = vadd.f32 %v9984_v51, %v9934_v49  ;;  %v14186_v49 = vld [vmem:[#allocation42_spill] sm:$0xff] }
 0x2d7   : > { %v4153_v60 = vpop.f32.mrf.mxu1  ;;  %v4474_v4 = vpop.f32.mrf.mxu0 }
 0x2d8   : > { %10233 = vmatmul.mubr.msk.f32.gmra.mxu1 %vm3785_vm2, %v14183_v38  ;;  %v13057_v14 = vadd.f32 %v4474_v4, %v4153_v60  ;;  %v14187_v4 = vld [vmem:[#allocation90_spill] sm:$0xff] }
 0x2d9   : > { %10283 = vmatmul.mubr.msk.f32.gmra.mxu0 %vm3785_vm2, %v14171_v34  ;;  %10235 = vmatprep.mubr.msk.f32.mxu1 %vm3785_vm2, %v14184_v33  ;;  %v9937_v15 = vpop.f32.mrf.mxu1 }
 0x2da   : > { %10285 = vmatprep.mubr.msk.f32.mxu0 %vm3785_vm2, %v12459_v56  ;;  %v9987_v54 = vpop.f32.mrf.mxu0 }
 0x2db   : > { %v13063_v34 = vadd.f32 %v9987_v54, %v9937_v15  ;;  %v4163_v56 = vpop.f32.mrf.mxu1  ;;  %v14188_v15 = vld [vmem:[#allocation83_spill] sm:$0xff] }
 0x2dc   : > { %10236 = vmatmul.mubr.msk.f32.gmra.mxu1 %vm3785_vm2, %v14185_v5  ;;  %v4484_v51 = vpop.f32.mrf.mxu0 }
 0x2dd   : > { %10286 = vmatmul.mubr.msk.f32.gmra.mxu0 %vm3785_vm2, %v14172_v50  ;;  %10238 = vmatprep.mubr.msk.f32.mxu1 %vm3785_vm2, %v14186_v49  ;;  %v13069_v38 = vadd.f32 %v4484_v51, %v4163_v56  ;;  %v14189_v51 = vld [vmem:[#allocation13_spill] sm:$0xff] }
 0x2de   : > { %10288 = vmatprep.mubr.msk.f32.mxu0 %vm3785_vm2, %v12488_v12  ;;  %v9940_v33 = vpop.f32.mrf.mxu1  ;;  %v9990_v60 = vpop.f32.mrf.mxu0 }
 0x2df   : > { %v13075_v50 = vadd.f32 %v9990_v60, %v9940_v33  ;;  %v14190_v33 = vld [vmem:[#allocation14_spill] sm:$0xff] }
 0x2e0   : > { %10239 = vmatmul.mubr.msk.f32.gmra.mxu1 %vm3785_vm2, %v14187_v4  ;;  %v4173_v12 = vpop.f32.mrf.mxu1  ;;  %v4494_v54 = vpop.f32.mrf.mxu0 }
 0x2e1   : > { %10289 = vmatmul.mubr.msk.f32.gmra.mxu0 %vm3785_vm2, %v12501_v13  ;;  %10241 = vmatprep.mubr.msk.f32.mxu1 %vm3785_vm2, %v14188_v15  ;;  %v13081_v5 = vadd.f32 %v4494_v54, %v4173_v12  ;;  %v14191_v12 = vld [vmem:[#allocation18_spill] sm:$0xff]  ;;  %v14192_v54 = vld [vmem:[#allocation17_spill] sm:$0xff] }
 0x2e2   : > { %10291 = vmatprep.mubr.msk.f32.mxu0 %vm3785_vm2, %v12516_v3 }
 0x2e4   : > { %v9943_v49 = vpop.f32.mrf.mxu1  ;;  %v9993_v56 = vpop.f32.mrf.mxu0  ;;  %10242 = vmatmul.mubr.msk.f32.gmra.mxu1 %vm3785_vm2, %v14189_v51 }
 0x2e5   : > { %10292 = vmatmul.mubr.msk.f32.gmra.mxu0 %vm3785_vm2, %v12529_v29  ;;  %v13087_v13 = vadd.f32 %v9993_v56, %v9943_v49  ;;  %10244 = vmatprep.mubr.msk.f32.mxu1 %vm3785_vm2, %v14190_v33  ;;  %v14193_v33 = vld [vmem:[#allocation41_spill] sm:$0xff] }
 0x2e6   : > { %10294 = vmatprep.mubr.msk.f32.mxu0 %vm3785_vm2, %v12539_v46  ;;  %v13093_v3 = vpop.f32.mrf.mxu1  ;;  %v13095_v60 = vpop.f32.mrf.mxu0 }
 0x2e8   : > { %v9946_v4 = vpop.f32.mrf.mxu1  ;;  %v9996_v15 = vpop.f32.mrf.mxu0  ;;  %10245 = vmatmul.mubr.msk.f32.gmra.mxu1 %vm3785_vm2, %v14191_v12 }
 0x2e9   : > { %10295 = vmatmul.mubr.msk.f32.gmra.mxu0 %vm3785_vm2, %v12552_v41  ;;  %v13101_v29 = vadd.f32 %v9996_v15, %v9946_v4  ;;  %10247 = vmatprep.mubr.msk.f32.mxu1 %vm3785_vm2, %v14192_v54  ;;  %v14194_v4 = vld [vmem:[#allocation40_spill] sm:$0xff] }
 0x2ea   : > { %10297 = vmatprep.mubr.msk.f32.mxu0 %vm3785_vm2, %v12560_v42  ;;  %v13107_v46 = vpop.f32.mrf.mxu1  ;;  %v13109_v49 = vpop.f32.mrf.mxu0 }
 0x2ec   : > { %v9949_v56 = vpop.f32.mrf.mxu1  ;;  %v9999_v51 = vpop.f32.mrf.mxu0  ;;  %10248 = vmatmul.mubr.msk.f32.gmra.mxu1 %vm3785_vm2, %v14193_v33 }
 0x2ed   : > { %10298 = vmatmul.mubr.msk.f32.gmra.mxu0 %vm3785_vm2, %v12572_v61  ;;  %v13115_v41 = vadd.f32 %v9999_v51, %v9949_v56  ;;  %10250 = vmatprep.mubr.msk.f32.mxu1 %vm3785_vm2, %v14194_v4  ;;  %v14196_v56 = vld [vmem:[#allocation85_spill] sm:$0xff] }
 0x2ee   : > { %10300 = vmatprep.mubr.msk.f32.mxu0 %vm3785_vm2, %v12580_v31  ;;  %v4203_v42 = vpop.f32.mrf.mxu1  ;;  %v4524_v15 = vpop.f32.mrf.mxu0 }
 0x2ef   : > { %v13121_v12 = vadd.f32 %v4524_v15, %v4203_v42  ;;  %v14197_v15 = vld [vmem:[#allocation43_spill] sm:$0xff] }
 0x2f0   : > { %v9952_v54 = vpop.f32.mrf.mxu1  ;;  %10251 = vmatmul.mubr.msk.f32.gmra.mxu1 %vm3785_vm2, %v14195_v28  ;;  %v14198_v28 = vld [vmem:[#allocation46_spill] sm:$0xff] }
 0x2f1   : > { %v10002_v7 = vpop.f32.mrf.mxu0  ;;  %10301 = vmatmul.mubr.msk.f32.gmra.mxu0 %vm3785_vm2, %v12592_v1  ;;  %10253 = vmatprep.mubr.msk.f32.mxu1 %vm3785_vm2, %v14196_v56 }
 0x2f2   : > { %v13127_v61 = vadd.f32 %v10002_v7, %v9952_v54  ;;  %10303 = vmatprep.mubr.msk.f32.mxu0 %vm3785_vm2, %v12599_v47  ;;  %v4213_v31 = vpop.f32.mrf.mxu1 }
 0x2f3   : > { %v4534_v51 = vpop.f32.mrf.mxu0 }
 0x2f4   : > { %v13133_v33 = vadd.f32 %v4534_v51, %v4213_v31  ;;  %v9955_v4 = vpop.f32.mrf.mxu1  ;;  %10254 = vmatmul.mubr.msk.f32.gmra.mxu1 %vm3785_vm2, %v14197_v15  ;;  %v14199_v51 = vld [vmem:[#allocation96_spill] sm:$0xff]  ;;  %v6549_v15 = vld [vmem:[#allocation2 + $0x199] sm:$0xff] }
 0x2f5   : > { %v10005_v42 = vpop.f32.mrf.mxu0  ;;  %10304 = vmatmul.mubr.msk.f32.gmra.mxu0 %vm3785_vm2, %v12610_v20  ;;  %10256 = vmatprep.mubr.msk.f32.mxu1 %vm3785_vm2, %v14198_v28 }
 0x2f6   : > { %v13139_v1 = vadd.f32 %v10005_v42, %v9955_v4  ;;  %10306 = vmatprep.mubr.msk.f32.mxu0 %vm3785_vm2, %v12616_v18  ;;  %v4223_v47 = vpop.f32.mrf.mxu1  ;;  %v6162_v42 = vld [vmem:[#allocation2 + $0x198] sm:$0xff] }
 0x2f7   : > { %v4544_v7 = vpop.f32.mrf.mxu0 }
 0x2f8   : > { %v13145_v54 = vadd.f32 %v4544_v7, %v4223_v47  ;;  %v9958_v56 = vpop.f32.mrf.mxu1  ;;  %10257 = vmatmul.mubr.msk.f32.gmra.mxu1 %vm3785_vm2, %v12620_v19 }
 0x2f9   : > { %v10008_v31 = vpop.f32.mrf.mxu0  ;;  %10307 = vmatmul.mubr.msk.f32.gmra.mxu0 %vm3785_vm2, %v12626_v10  ;;  %10259 = vmatprep.mubr.msk.f32.mxu1 %vm3785_vm2, %v14199_v51  ;;  %v6163_v10 = vld [vmem:[#allocation2 + $0x1a0] sm:$0xff] }
 0x2fa   : > { %v13151_v20 = vadd.f32 %v10008_v31, %v9958_v56  ;;  %10309 = vmatprep.mubr.msk.f32.mxu0 %vm3785_vm2, %v12966_v55  ;;  %v4233_v18 = vpop.f32.mrf.mxu1  ;;  %v6550_v55 = vld [vmem:[#allocation2 + $0x1a1] sm:$0xff] }
 0x2fb   : > { %v4554_v4 = vpop.f32.mrf.mxu0 }
 0x2fc   : > { %v13157_v28 = vadd.f32 %v4554_v4, %v4233_v18  ;;  %v9961_v47 = vpop.f32.mrf.mxu1  ;;  %10260 = vmatmul.mubr.msk.f32.gmra.mxu1 %vm3785_vm2, %v12832_v22 }
 0x2fd   : > { %v10011_v7 = vpop.f32.mrf.mxu0  ;;  %10310 = vmatmul.mubr.msk.f32.gmra.mxu0 %vm3785_vm2, %v12974_v58  ;;  %10262 = vmatprep.mubr.msk.f32.mxu1 %vm3785_vm2, %v6162_v42 }
 0x2fe   : > { %v13163_v19 = vadd.f32 %v10011_v7, %v9961_v47  ;;  %10312 = vmatprep.mubr.msk.f32.mxu0 %vm3785_vm2, %v6549_v15  ;;  %v4243_v56 = vpop.f32.mrf.mxu1 }
 0x2ff   : > { %v4564_v31 = vpop.f32.mrf.mxu0 }
 0x300   : > { %v13167_v51 = vadd.f32 %v4564_v31, %v4243_v56  ;;  %v9964_v18 = vpop.f32.mrf.mxu1  ;;  %10263 = vmatmul.mubr.msk.f32.gmra.mxu1 %vm3785_vm2, %v6163_v10  ;;  %v4425_v56 = vadd.f32 %v12996_v39, %v12994_v32  ;;  %v14201_v10 = vld [vmem:[#allocation86_spill] sm:$0xff] }
 0x301   : > { %v10014_v4 = vpop.f32.mrf.mxu0  ;;  %10313 = vmatmul.mubr.msk.f32.gmra.mxu0 %vm3785_vm2, %v6550_v55  ;;  %10317 = vmatprep.mubr.msk.f32.mxu1 %vm3785_vm2, %v12666_v27 }
 0x302   : > { %v13171_v22 = vadd.f32 %v10014_v4, %v9964_v18  ;;  %v4253_v58 = vpop.f32.mrf.mxu1 }
 0x303   : > { %v4574_v42 = vpop.f32.mrf.mxu0 }
 0x304   : > { %v13175_v47 = vadd.f32 %v4574_v42, %v4253_v58  ;;  %v10019_v15 = vpop.f32.mrf.mxu1  ;;  %10318 = vmatmul.mubr.msk.f32.vlgmr.msra.gmra.mxu1 %vm3785_vm2, %v12672_v62 }
 0x305   : > { %v10069_v7 = vpop.f32.mrf.mxu0  ;;  %v4939_v31 = vadd.f32 %v10019_v15, %v14201_v10  ;;  %10320 = vmatprep.mubr.msk.f32.mxu1 %vm3785_vm2, %v12678_v63 }
 0x306   : > { %14200 = vst [vmem:[#allocation21_spill] sm:$0xff] %v13175_v47  ;;  %v4779_v55 = vpop.f32.mrf.mxu1 }
 0x307   : > { %v5166_v18 = vpop.f32.mrf.mxu0  ;;  %v13184_v27 = vadd.f32 %v10069_v7, %v4939_v31  ;;  %v4938_v4 = vadd.f32 %v4779_v55, %v4425_v56 }
 0x308   : > { %v10022_v58 = vpop.f32.mrf.mxu1  ;;  %10321 = vmatmul.mubr.msk.f32.gmra.mxu1 %vm3785_vm2, %v12684_v11 }
 0x309   : > { %v10072_v42 = vpop.f32.mrf.mxu0  ;;  %v13188_v47 = vadd.f32 %v5166_v18, %v4938_v4  ;;  %v4941_v62 = vadd.f32 %v10022_v58, %v13003_v23  ;;  %10323 = vmatprep.mubr.msk.f32.mxu1 %vm3785_vm2, %v12690_v2 }
 0x30a   : > { %v4789_v32 = vpop.f32.mrf.mxu1 }
 0x30b   : > { %v5176_v39 = vpop.f32.mrf.mxu0  ;;  %v13193_v63 = vadd.f32 %v10072_v42, %v4941_v62  ;;  %v4940_v15 = vadd.f32 %v4789_v32, %v13009_v43 }
 0x30c   : > { %v10025_v7 = vpop.f32.mrf.mxu1  ;;  %10324 = vmatmul.mubr.msk.f32.gmra.mxu1 %vm3785_vm2, %v12696_v40 }
 0x30d   : > { %v10075_v56 = vpop.f32.mrf.mxu0  ;;  %v13198_v10 = vadd.f32 %v5176_v39, %v4940_v15  ;;  %v4943_v11 = vadd.f32 %v10025_v7, %v13015_v36  ;;  %10326 = vmatprep.mubr.msk.f32.mxu1 %vm3785_vm2, %v12702_v53 }
 0x30e   : > { %v4799_v23 = vpop.f32.mrf.mxu1 }
 0x30f   : > { %v5186_v2 = vpop.f32.mrf.mxu0  ;;  %v13203_v31 = vadd.f32 %v10075_v56, %v4943_v11  ;;  %v4942_v55 = vadd.f32 %v4799_v23, %v13021_v35 }
 0x310   : > { %v10028_v18 = vpop.f32.mrf.mxu1  ;;  %10327 = vmatmul.mubr.msk.f32.gmra.mxu1 %vm3785_vm2, %v12708_v6 }
 0x311   : > { %v10078_v43 = vpop.f32.mrf.mxu0  ;;  %v13208_v4 = vadd.f32 %v5186_v2, %v4942_v55  ;;  %v4945_v40 = vadd.f32 %v10028_v18, %v13027_v8  ;;  %10329 = vmatprep.mubr.msk.f32.mxu1 %vm3785_vm2, %v12714_v24 }
 0x312   : > { %v4809_v36 = vpop.f32.mrf.mxu1 }
 0x313   : > { %v5196_v53 = vpop.f32.mrf.mxu0  ;;  %v13213_v58 = vadd.f32 %v10078_v43, %v4945_v40  ;;  %v4944_v42 = vadd.f32 %v4809_v36, %v13033_v9 }
 0x314   : > { %v10031_v62 = vpop.f32.mrf.mxu1  ;;  %10330 = vmatmul.mubr.msk.f32.gmra.mxu1 %vm3785_vm2, %v12720_v0 }
 0x315   : > { %v10081_v35 = vpop.f32.mrf.mxu0  ;;  %v13218_v32 = vadd.f32 %v5196_v53, %v4944_v42  ;;  %v4947_v6 = vadd.f32 %v10031_v62, %v13039_v30  ;;  %10332 = vmatprep.mubr.msk.f32.mxu1 %vm3785_vm2, %v12726_v21 }
 0x316   : > { %v4819_v8 = vpop.f32.mrf.mxu1 }
 0x317   : > { %v5206_v24 = vpop.f32.mrf.mxu0  ;;  %v13223_v39 = vadd.f32 %v10081_v35, %v4947_v6  ;;  %v4946_v15 = vadd.f32 %v4819_v8, %v13045_v59 }
 0x318   : > { %v10034_v7 = vpop.f32.mrf.mxu1  ;;  %10333 = vmatmul.mubr.msk.f32.gmra.mxu1 %vm3785_vm2, %v12732_v48 }
 0x319   : > { %v10084_v9 = vpop.f32.mrf.mxu0  ;;  %v13228_v56 = vadd.f32 %v5206_v24, %v4946_v15  ;;  %v4949_v0 = vadd.f32 %v10034_v7, %v13051_v57  ;;  %10335 = vmatprep.mubr.msk.f32.mxu1 %vm3785_vm2, %v12738_v16  ;;  %v6925_v24 = vld [vmem:[#allocation2 + $0x112] sm:$0xff] }
 0x31a   : > { %v4829_v30 = vpop.f32.mrf.mxu1 }
 0x31b   : > { %v5216_v21 = vpop.f32.mrf.mxu0  ;;  %v13233_v11 = vadd.f32 %v10084_v9, %v4949_v0  ;;  %v4948_v23 = vadd.f32 %v4829_v30, %v13057_v14  ;;  %v6927_v30 = vld [vmem:[#allocation2 + $0x12a] sm:$0xff] }
 0x31c   : > { %v10037_v2 = vpop.f32.mrf.mxu1  ;;  %10336 = vmatmul.mubr.msk.f32.gmra.mxu1 %vm3785_vm2, %v12744_v17 }
 0x31d   : > { %v10087_v59 = vpop.f32.mrf.mxu0  ;;  %v13238_v55 = vadd.f32 %v5216_v21, %v4948_v23  ;;  %v4951_v48 = vadd.f32 %v10037_v2, %v13063_v34  ;;  %10338 = vmatprep.mubr.msk.f32.mxu1 %vm3785_vm2, %v12750_v37  ;;  %v6928_v2 = vld [vmem:[#allocation2 + $0x13a] sm:$0xff] }
 0x31e   : > { %v4839_v57 = vpop.f32.mrf.mxu1 }
 0x31f   : > { %v5226_v16 = vpop.f32.mrf.mxu0  ;;  %v13243_v18 = vadd.f32 %v10087_v59, %v4951_v48  ;;  %v4950_v43 = vadd.f32 %v4839_v57, %v13069_v38  ;;  %v6929_v57 = vld [vmem:[#allocation2 + $0x142] sm:$0xff] }
 0x320   : > { %v10040_v40 = vpop.f32.mrf.mxu1  ;;  %10339 = vmatmul.mubr.msk.f32.gmra.mxu1 %vm3785_vm2, %v12756_v26  ;;  %v4505_v26 = vadd.f32 %v13095_v60, %v13093_v3 }
 0x321   : > { %v10090_v14 = vpop.f32.mrf.mxu0  ;;  %v13248_v36 = vadd.f32 %v5226_v16, %v4950_v43  ;;  %v4953_v17 = vadd.f32 %v10040_v40, %v13075_v50  ;;  %10341 = vmatprep.mubr.msk.f32.mxu1 %vm3785_vm2, %v12762_v25  ;;  %v6930_v40 = vld [vmem:[#allocation2 + $0x152] sm:$0xff] }
 0x322   : > { %v4849_v34 = vpop.f32.mrf.mxu1 }
 0x323   : > { %v5236_v37 = vpop.f32.mrf.mxu0  ;;  %v13253_v53 = vadd.f32 %v10090_v14, %v4953_v17  ;;  %v4952_v42 = vadd.f32 %v4849_v34, %v13081_v5 }
 0x324   : > { %v10043_v62 = vpop.f32.mrf.mxu1  ;;  %10342 = vmatmul.mubr.msk.f32.gmra.mxu1 %vm3785_vm2, %v12768_v44  ;;  %v4515_v44 = vadd.f32 %v13109_v49, %v13107_v46 }
 0x325   : > { %v10093_v38 = vpop.f32.mrf.mxu0  ;;  %v13260_v35 = vadd.f32 %v5236_v37, %v4952_v42  ;;  %v4955_v50 = vadd.f32 %v10043_v62, %v13087_v13  ;;  %10344 = vmatprep.mubr.msk.f32.mxu1 %vm3785_vm2, %v12774_v52  ;;  %v6931_v62 = vld [vmem:[#allocation2 + $0x15a] sm:$0xff] }
 0x326   : > { %v4859_v25 = vpop.f32.mrf.mxu1 }
 0x327   : > { %v5246_v6 = vpop.f32.mrf.mxu0  ;;  %v13265_v8 = vadd.f32 %v10093_v38, %v4955_v50  ;;  %v4954_v5 = vadd.f32 %v4859_v25, %v4505_v26  ;;  %v6932_v26 = vld [vmem:[#allocation2 + $0x16a] sm:$0xff] }
 0x328   : > { %v10046_v15 = vpop.f32.mrf.mxu1  ;;  %10345 = vmatmul.mubr.msk.f32.gmra.mxu1 %vm3785_vm2, %v6925_v24 }
 0x329   : > { %v10096_v7 = vpop.f32.mrf.mxu0  ;;  %v13270_v3 = vadd.f32 %v5246_v6, %v4954_v5  ;;  %v4957_v13 = vadd.f32 %v10046_v15, %v13101_v29  ;;  %10347 = vmatprep.mubr.msk.f32.mxu1 %vm3785_vm2, %v12786_v45  ;;  %v6933_v15 = vld [vmem:[#allocation2 + $0x172] sm:$0xff] }
 0x32a   : > { %v4869_v52 = vpop.f32.mrf.mxu1 }
 0x32b   : > { %v5256_v60 = vpop.f32.mrf.mxu0  ;;  %v13275_v9 = vadd.f32 %v10096_v7, %v4957_v13  ;;  %v4956_v0 = vadd.f32 %v4869_v52, %v4515_v44  ;;  %v14202_v52 = vld [vmem:[#allocation20_spill] sm:$0xff] }
 0x32c   : > { %v10049_v21 = vpop.f32.mrf.mxu1  ;;  %10348 = vmatmul.mubr.msk.f32.gmra.mxu1 %vm3785_vm2, %v6927_v30 }
 0x32d   : > { %v10099_v23 = vpop.f32.mrf.mxu0  ;;  %v13278_v59 = vadd.f32 %v5256_v60, %v4956_v0  ;;  %v4959_v46 = vadd.f32 %v10049_v21, %v13115_v41  ;;  %10350 = vmatprep.mubr.msk.f32.mxu1 %vm3785_vm2, %v6928_v2  ;;  %v6936_v0 = vld [vmem:[#allocation2 + $0x19a] sm:$0xff] }
 0x32e   : > { %v4879_v29 = vpop.f32.mrf.mxu1  ;;  %v14203_v2 = vld [vmem:[#allocation19_spill] sm:$0xff] }
 0x32f   : > { %v5266_v49 = vpop.f32.mrf.mxu0  ;;  %v13282_v45 = vadd.f32 %v10099_v23, %v4959_v46  ;;  %v4958_v48 = vadd.f32 %v4879_v29, %v13121_v12 }
 0x330   : > { %v10052_v16 = vpop.f32.mrf.mxu1  ;;  %10351 = vmatmul.mubr.msk.f32.gmra.mxu1 %vm3785_vm2, %v6929_v57 }
 0x331   : > { %v10102_v43 = vpop.f32.mrf.mxu0  ;;  %v13286_v14 = vadd.f32 %v5266_v49, %v4958_v48  ;;  %v4961_v17 = vadd.f32 %v10052_v16, %v13127_v61  ;;  %10353 = vmatprep.mubr.msk.f32.mxu1 %vm3785_vm2, %v6930_v40 }
 0x332   : > { %v4889_v41 = vpop.f32.mrf.mxu1 }
 0x333   : > { %v5276_v34 = vpop.f32.mrf.mxu0  ;;  %v13290_v37 = vadd.f32 %v10102_v43, %v4961_v17  ;;  %v4960_v42 = vadd.f32 %v4889_v41, %v13133_v33 }
 0x334   : > { %v10055_v12 = vpop.f32.mrf.mxu1  ;;  %10354 = vmatmul.mubr.msk.f32.gmra.mxu1 %vm3785_vm2, %v6931_v62 }
 0x335   : > { %v10105_v38 = vpop.f32.mrf.mxu0  ;;  %v13294_v50 = vadd.f32 %v5276_v34, %v4960_v42  ;;  %v4963_v25 = vadd.f32 %v10055_v12, %v13139_v1  ;;  %10356 = vmatprep.mubr.msk.f32.mxu1 %vm3785_vm2, %v6932_v26  ;;  %v14204_v42 = vld [vmem:[#allocation21_spill] sm:$0xff] }
 0x336   : > { %v4899_v61 = vpop.f32.mrf.mxu1 }
 0x337   : > { %v5286_v6 = vpop.f32.mrf.mxu0  ;;  %v13298_v5 = vadd.f32 %v10105_v38, %v4963_v25  ;;  %v4962_v24 = vadd.f32 %v4899_v61, %v13145_v54 }
 0x338   : > { %v10058_v33 = vpop.f32.mrf.mxu1  ;;  %10357 = vmatmul.mubr.msk.f32.gmra.mxu1 %vm3785_vm2, %v6933_v15 }
 0x339   : > { %v10108_v7 = vpop.f32.mrf.mxu0  ;;  %v13302_v44 = vadd.f32 %v5286_v6, %v4962_v24  ;;  %v4965_v13 = vadd.f32 %v10058_v33, %v13151_v20  ;;  %10359 = vmatprep.mubr.msk.f32.mxu1 %vm3785_vm2, %v14202_v52  ;;  %v6937_v20 = vld [vmem:[#allocation2 + $0x1a2] sm:$0xff] }
 0x33a   : > { %v4909_v1 = vpop.f32.mrf.mxu1 }
 0x33b   : > { %v5296_v60 = vpop.f32.mrf.mxu0  ;;  %v13307_v30 = vadd.f32 %v10108_v7, %v4965_v13  ;;  %v4964_v21 = vadd.f32 %v4909_v1, %v13157_v28 }
 0x33c   : > { %v10061_v54 = vpop.f32.mrf.mxu1  ;;  %10360 = vmatmul.mubr.msk.f32.gmra.mxu1 %vm3785_vm2, %v14203_v2 }
 0x33d   : > { %v10111_v23 = vpop.f32.mrf.mxu0  ;;  %v13312_v46 = vadd.f32 %v5296_v60, %v4964_v21  ;;  %v4967_v29 = vadd.f32 %v10061_v54, %v13163_v19  ;;  %10362 = vmatprep.mubr.msk.f32.mxu1 %vm3785_vm2, %v6936_v0 }
 0x33e   : > { %v4919_v49 = vpop.f32.mrf.mxu1 }
 0x33f   : > { %v5306_v48 = vpop.f32.mrf.mxu0  ;;  %v13316_v57 = vadd.f32 %v10111_v23, %v4967_v29  ;;  %v4966_v16 = vadd.f32 %v4919_v49, %v13167_v51 }
 0x340   : > { %v10064_v43 = vpop.f32.mrf.mxu1  ;;  %10363 = vmatmul.mubr.msk.f32.gmra.mxu1 %vm3785_vm2, %v6937_v20 }
 0x341   : > { %v10114_v28 = vpop.f32.mrf.mxu0  ;;  %v13320_v40 = vadd.f32 %v5306_v48, %v4966_v16  ;;  %v4969_v17 = vadd.f32 %v10064_v43, %v13171_v22 }
 0x342   : > { %v4929_v41 = vpop.f32.mrf.mxu1 }
 0x343   : > { %v5316_v34 = vpop.f32.mrf.mxu0  ;;  %v13323_v19 = vadd.f32 %v10114_v28, %v4969_v17  ;;  %v4968_v62 = vadd.f32 %v4929_v41, %v14204_v42 }
 0x344   : > { %v10119_v12 = vpop.f32.mrf.mxu1 }
 0x345   : > { %v10169_v38 = vpop.f32.mrf.mxu0  ;;  %v13326_v26 = vadd.f32 %v5316_v34, %v4968_v62  ;;  %v5713_v51 = vadd.f32 %v10119_v12, %v13184_v27 }
 0x346   : > { %v5553_v25 = vpop.f32.mrf.mxu1 }
 0x347   : > { %v5940_v61 = vpop.f32.mrf.mxu0  ;;  %v13329_v6 = vadd.f32 %v10169_v38, %v5713_v51  ;;  %v5712_v24 = vadd.f32 %v5553_v25, %v13188_v47 }
 0x348   : > { %v10122_v15 = vpop.f32.mrf.mxu1 }
 0x349   : > { %v10172_v22 = vpop.f32.mrf.mxu0  ;;  %v13332_v33 = vadd.f32 %v5940_v61, %v5712_v24  ;;  %v5715_v7 = vadd.f32 %v10122_v15, %v13193_v63 }
 0x34a   : > { %v5563_v13 = vpop.f32.mrf.mxu1 }
 0x34b   : > { %v5950_v52 = vpop.f32.mrf.mxu0  ;;  %v13335_v1 = vadd.f32 %v10172_v22, %v5715_v7  ;;  %v5714_v60 = vadd.f32 %v5563_v13, %v13198_v10 }
 0x34c   : > { %v10125_v0 = vpop.f32.mrf.mxu1 }
 0x34d   : > { %v10175_v27 = vpop.f32.mrf.mxu0  ;;  %v13338_v21 = vadd.f32 %v5950_v52, %v5714_v60  ;;  %v5717_v54 = vadd.f32 %v10125_v0, %v13203_v31 }
 0x34e   : > { %v5573_v23 = vpop.f32.mrf.mxu1 }
 0x34f   : > { %v5960_v47 = vpop.f32.mrf.mxu0  ;;  %v13341_v2 = vadd.f32 %v10175_v27, %v5717_v54  ;;  %v5716_v29 = vadd.f32 %v5573_v23, %v13208_v4 }
 0x350   : > { %v10128_v20 = vpop.f32.mrf.mxu1 }
 0x351   : > { %v10178_v63 = vpop.f32.mrf.mxu0  ;;  %v13344_v49 = vadd.f32 %v5960_v47, %v5716_v29  ;;  %v5719_v48 = vadd.f32 %v10128_v20, %v13213_v58 }
 0x352   : > { %v5583_v16 = vpop.f32.mrf.mxu1 }
 0x353   : > { %v5970_v10 = vpop.f32.mrf.mxu0  ;;  %v13347_v43 = vadd.f32 %v10178_v63, %v5719_v48  ;;  %v5718_v28 = vadd.f32 %v5583_v16, %v13218_v32 }
 0x354   : > { %v10131_v17 = vpop.f32.mrf.mxu1 }
 0x355   : > { %v10181_v31 = vpop.f32.mrf.mxu0  ;;  %v13350_v41 = vadd.f32 %v5970_v10, %v5718_v28  ;;  %v5721_v34 = vadd.f32 %v10131_v17, %v13223_v39 }
 0x356   : > { %v5593_v42 = vpop.f32.mrf.mxu1 }
 0x357   : > { %v5980_v4 = vpop.f32.mrf.mxu0  ;;  %v13353_v62 = vadd.f32 %v10181_v31, %v5721_v34  ;;  %v5720_v12 = vadd.f32 %v5593_v42, %v13228_v56 }
 0x358   : > { %v10134_v38 = vpop.f32.mrf.mxu1 }
 0x359   : > { %v10184_v58 = vpop.f32.mrf.mxu0  ;;  %v13356_v51 = vadd.f32 %v5980_v4, %v5720_v12  ;;  %v5723_v25 = vadd.f32 %v10134_v38, %v13233_v11 }
 0x35a   : > { %v5603_v61 = vpop.f32.mrf.mxu1 }
 0x35b   : > { %v5990_v32 = vpop.f32.mrf.mxu0  ;;  %v13359_v24 = vadd.f32 %v10184_v58, %v5723_v25  ;;  %v5722_v15 = vadd.f32 %v5603_v61, %v13238_v55 }
 0x35c   : > { %v10137_v22 = vpop.f32.mrf.mxu1 }
 0x35d   : > { %v10187_v39 = vpop.f32.mrf.mxu0  ;;  %v13362_v7 = vadd.f32 %v5990_v32, %v5722_v15  ;;  %v5725_v13 = vadd.f32 %v10137_v22, %v13243_v18 }
 0x35e   : > { %v5613_v52 = vpop.f32.mrf.mxu1 }
 0x35f   : > { %v6000_v56 = vpop.f32.mrf.mxu0  ;;  %v13365_v60 = vadd.f32 %v10187_v39, %v5725_v13  ;;  %v5724_v0 = vadd.f32 %v5613_v52, %v13248_v36 }
 0x360   : > { %v10140_v27 = vpop.f32.mrf.mxu1 }
 0x361   : > { %v10190_v11 = vpop.f32.mrf.mxu0  ;;  %v13368_v54 = vadd.f32 %v6000_v56, %v5724_v0  ;;  %v5727_v23 = vadd.f32 %v10140_v27, %v13253_v53 }
 0x362   : > { %v5623_v47 = vpop.f32.mrf.mxu1 }
 0x363   : > { %v6010_v55 = vpop.f32.mrf.mxu0  ;;  %v13371_v29 = vadd.f32 %v10190_v11, %v5727_v23  ;;  %v5726_v20 = vadd.f32 %v5623_v47, %v13260_v35 }
 0x364   : > { %v10143_v63 = vpop.f32.mrf.mxu1 }
 0x365   : > { %v10193_v18 = vpop.f32.mrf.mxu0  ;;  %v13374_v48 = vadd.f32 %v6010_v55, %v5726_v20  ;;  %v5729_v16 = vadd.f32 %v10143_v63, %v13265_v8 }
 0x366   : > { %v5633_v10 = vpop.f32.mrf.mxu1 }
 0x367   : > { %v13377_v36 = vpop.f32.mrf.mxu0  ;;  %v13379_v28 = vadd.f32 %v10193_v18, %v5729_v16  ;;  %v13382_v17 = vadd.f32 %v5633_v10, %v13270_v3 }
 0x368   : > { %v10146_v53 = vpop.f32.mrf.mxu1 }
 0x369   : > { %v10196_v31 = vpop.f32.mrf.mxu0  ;;  %v5731_v34 = vadd.f32 %v10146_v53, %v13275_v9 }
 0x36a   : > { %v5643_v42 = vpop.f32.mrf.mxu1 }
 0x36b   : > { %v6030_v35 = vpop.f32.mrf.mxu0  ;;  %v13385_v4 = vadd.f32 %v10196_v31, %v5731_v34  ;;  %v5730_v12 = vadd.f32 %v5643_v42, %v13278_v59 }
 0x36c   : > { %v10149_v38 = vpop.f32.mrf.mxu1 }
 0x36d   : > { %v10199_v8 = vpop.f32.mrf.mxu0  ;;  %v13388_v58 = vadd.f32 %v6030_v35, %v5730_v12  ;;  %v5733_v25 = vadd.f32 %v10149_v38, %v13282_v45 }
 0x36e   : > { %v5653_v61 = vpop.f32.mrf.mxu1 }
 0x36f   : > { %v6040_v32 = vpop.f32.mrf.mxu0  ;;  %v13391_v3 = vadd.f32 %v10199_v8, %v5733_v25  ;;  %v5732_v15 = vadd.f32 %v5653_v61, %v13286_v14 }
 0x370   : > { %v10152_v22 = vpop.f32.mrf.mxu1 }
 0x371   : > { %v10202_v9 = vpop.f32.mrf.mxu0  ;;  %v13394_v39 = vadd.f32 %v6040_v32, %v5732_v15  ;;  %v5735_v13 = vadd.f32 %v10152_v22, %v13290_v37 }
 0x372   : > { %v5663_v52 = vpop.f32.mrf.mxu1 }
 0x373   : > { %v6050_v59 = vpop.f32.mrf.mxu0  ;;  %v13397_v56 = vadd.f32 %v10202_v9, %v5735_v13  ;;  %v5734_v0 = vadd.f32 %v5663_v52, %v13294_v50 }
 0x374   : > { %v10155_v27 = vpop.f32.mrf.mxu1 }
 0x375   : > { %v10205_v45 = vpop.f32.mrf.mxu0  ;;  %v13400_v11 = vadd.f32 %v6050_v59, %v5734_v0  ;;  %v5737_v23 = vadd.f32 %v10155_v27, %v13298_v5 }
 0x376   : > { %v5673_v47 = vpop.f32.mrf.mxu1 }
 0x377   : > { %v6060_v14 = vpop.f32.mrf.mxu0  ;;  %v13403_v55 = vadd.f32 %v10205_v45, %v5737_v23  ;;  %v5736_v20 = vadd.f32 %v5673_v47, %v13302_v44 }
 0x378   : > { %v10158_v63 = vpop.f32.mrf.mxu1 }
 0x379   : > { %v10208_v37 = vpop.f32.mrf.mxu0  ;;  %v13406_v18 = vadd.f32 %v6060_v14, %v5736_v20  ;;  %v5739_v16 = vadd.f32 %v10158_v63, %v13307_v30 }
 0x37a   : > { %v5683_v10 = vpop.f32.mrf.mxu1 }
 0x37b   : > { %v6070_v50 = vpop.f32.mrf.mxu0  ;;  %v13409_v53 = vadd.f32 %v10208_v37, %v5739_v16  ;;  %v5738_v31 = vadd.f32 %v5683_v10, %v13312_v46 }
 0x37c   : > { %v10161_v34 = vpop.f32.mrf.mxu1 }
 0x37d   : > { %v10211_v5 = vpop.f32.mrf.mxu0  ;;  %v13412_v42 = vadd.f32 %v6070_v50, %v5738_v31  ;;  %v5741_v35 = vadd.f32 %v10161_v34, %v13316_v57 }
 0x37e   : > { %v5693_v12 = vpop.f32.mrf.mxu1 }
 0x37f   : > { %v6080_v44 = vpop.f32.mrf.mxu0  ;;  %v13415_v38 = vadd.f32 %v10211_v5, %v5741_v35  ;;  %v5740_v8 = vadd.f32 %v5693_v12, %v13320_v40 }
 0x380   : > { %v10164_v25 = vpop.f32.mrf.mxu1 }
 0x381   : > { %v10214_v30 = vpop.f32.mrf.mxu0  ;;  %v13418_v61 = vadd.f32 %v6080_v44, %v5740_v8  ;;  %v5743_v32 = vadd.f32 %v10164_v25, %v13323_v19 }
 0x382   : > { %v5703_v15 = vpop.f32.mrf.mxu1 }
 0x383   : > { %v6090_v46 = vpop.f32.mrf.mxu0  ;;  %v13421_v22 = vadd.f32 %v10214_v30, %v5743_v32  ;;  %v5742_v9 = vadd.f32 %v5703_v15, %v13326_v26 }
 0x384   : > { %v10219_v13 = vpop.f32.mrf.mxu1 }
 0x385   : > { %v13424_v57 = vpop.f32.mrf.mxu0  ;;  %v13426_v52 = vadd.f32 %v6090_v46, %v5742_v9  ;;  %v13429_v59 = vadd.f32 %v10219_v13, %v13329_v6 }
 0x386   : > { %v6328_v40 = vpop.f32.mrf.mxu1 }
 0x387   : > { %v13431_v0 = vpop.f32.mrf.mxu0  ;;  %v13434_v27 = vadd.f32 %v6328_v40, %v13332_v33 }
 0x388   : > { %v10222_v19 = vpop.f32.mrf.mxu1 }
 0x389   : > { %v13436_v45 = vpop.f32.mrf.mxu0  ;;  %v13439_v23 = vadd.f32 %v10222_v19, %v13335_v1 }
 0x38a   : > { %v6338_v26 = vpop.f32.mrf.mxu1 }
 0x38b   : > { %v13441_v47 = vpop.f32.mrf.mxu0  ;;  %v13444_v14 = vadd.f32 %v6338_v26, %v13338_v21 }
 0x38c   : > { %v10225_v6 = vpop.f32.mrf.mxu1 }
 0x38d   : > { %v13446_v20 = vpop.f32.mrf.mxu0  ;;  %v13449_v63 = vadd.f32 %v10225_v6, %v13341_v2 }
 0x38e   : > { %v6348_v33 = vpop.f32.mrf.mxu1 }
 0x38f   : > { %v13451_v37 = vpop.f32.mrf.mxu0  ;;  %v13454_v16 = vadd.f32 %v6348_v33, %v13344_v49 }
 0x390   : > { %v10228_v1 = vpop.f32.mrf.mxu1 }
 0x391   : > { %v13456_v10 = vpop.f32.mrf.mxu0  ;;  %v13459_v50 = vadd.f32 %v10228_v1, %v13347_v43 }
 0x392   : > { %v6358_v21 = vpop.f32.mrf.mxu1 }
 0x393   : > { %v13461_v31 = vpop.f32.mrf.mxu0  ;;  %v13464_v34 = vadd.f32 %v6358_v21, %v13350_v41 }
 0x394   : > { %v10231_v2 = vpop.f32.mrf.mxu1 }
 0x395   : > { %v13466_v5 = vpop.f32.mrf.mxu0  ;;  %v13469_v35 = vadd.f32 %v10231_v2, %v13353_v62 }
 0x396   : > { %v6368_v49 = vpop.f32.mrf.mxu1 }
 0x397   : > { %v13471_v12 = vpop.f32.mrf.mxu0  ;;  %v13474_v44 = vadd.f32 %v6368_v49, %v13356_v51  ;;  %v7549_v49 = vld [vmem:[#allocation3 + $0x3c8] sm:$0xff] }
 0x398   : > { %v10234_v43 = vpop.f32.mrf.mxu1  ;;  %7684 = vmatprep.subr.mxu0 %v7549_v49  ;;  %v7525_v49 = vld [vmem:[#allocation3 + $0x308] sm:$0xff] }
 0x399   : > { %v13476_v8 = vpop.f32.mrf.mxu0  ;;  %v13479_v25 = vadd.f32 %v10234_v43, %v13359_v24  ;;  %v7551_v43 = vld [vmem:[#allocation3 + $0x3d8] sm:$0xff] }
 0x39a   : > { %v6378_v41 = vpop.f32.mrf.mxu1  ;;  %7755 = vmatprep.subr.mxu1 %v7551_v43  ;;  %v7527_v43 = vld [vmem:[#allocation3 + $0x318] sm:$0xff] }
 0x39b   : > { %v13481_v30 = vpop.f32.mrf.mxu0  ;;  %v13484_v32 = vadd.f32 %v6378_v41, %v13362_v7  ;;  %v7548_v41 = vld [vmem:[#allocation3 + $0x3c0] sm:$0xff] }
 0x39c   : > { %v10237_v62 = vpop.f32.mrf.mxu1  ;;  %7685 = vmatpush1.msra.mxu0 %v7548_v41  ;;  %v7524_v41 = vld [vmem:[#allocation3 + $0x300] sm:$0xff] }
 0x39d   : > { %v13486_v15 = vpop.f32.mrf.mxu0  ;;  %v13489_v46 = vadd.f32 %v10237_v62, %v13365_v60 }
 0x39e   : > { %v6388_v51 = vpop.f32.mrf.mxu1 }
 0x39f   : > { %v13491_v9 = vpop.f32.mrf.mxu0  ;;  %v13494_v13 = vadd.f32 %v6388_v51, %v13368_v54  ;;  %v7541_v51 = vld [vmem:[#allocation3 + $0x388] sm:$0xff] }
 0x3a0   : > { %v10240_v24 = vpop.f32.mrf.mxu1  ;;  %7686 = vmatprep.subr.mxu0 %v7541_v51  ;;  %v7517_v51 = vld [vmem:[#allocation3 + $0x2c8] sm:$0xff] }
 0x3a1   : > { %v6502_v40 = vadd.f32 %v10240_v24, %v13371_v29  ;;  %v10290_v19 = vpop.f32.mrf.mxu0 }
 0x3a2   : > { %v6398_v26 = vpop.f32.mrf.mxu1 }
 0x3a3   : > { %v13497_v6 = vadd.f32 %v10290_v19, %v6502_v40  ;;  %v13500_v7 = vadd.f32 %v6398_v26, %v13374_v48  ;;  %v7550_v48 = vld [vmem:[#allocation3 + $0x3d0] sm:$0xff]  ;;  %v7533_v19 = vld [vmem:[#allocation3 + $0x348] sm:$0xff] }
 0x3a4   : > { %v10243_v33 = vpop.f32.mrf.mxu1  ;;  %7756 = vmatpush1.msra.mxu1 %v7550_v48  ;;  %v7542_v40 = vld [vmem:[#allocation3 + $0x390] sm:$0xff] }
 0x3a5   : > { %14205 = vst [vmem:[#allocation45_spill] sm:$0xff] %v13500_v7  ;;  %v13503_v60 = vadd.f32 %v10243_v33, %v13379_v28  ;;  %v7543_v28 = vld [vmem:[#allocation3 + $0x398] sm:$0xff]  ;;  %v7532_v33 = vld [vmem:[#allocation3 + $0x340] sm:$0xff] }
 0x3a6   : > { %v13505_v1 = vpop.f32.mrf.mxu1  ;;  %7757 = vmatprep.subr.mxu1 %v7543_v28  ;;  %v7519_v28 = vld [vmem:[#allocation3 + $0x2d8] sm:$0xff] }
 0x3a7   : > { %7758 = vmatpush1.msra.mxu1 %v7542_v40 }
 0x3a8   : > { %v10246_v21 = vpop.f32.mrf.mxu1 }
 0x3a9   : > { %v13508_v54 = vadd.f32 %v10246_v21, %v13385_v4  ;;  %v7540_v4 = vld [vmem:[#allocation3 + $0x380] sm:$0xff]  ;;  %v7534_v21 = vld [vmem:[#allocation3 + $0x350] sm:$0xff] }
 0x3aa   : > { %v6418_v2 = vpop.f32.mrf.mxu1  ;;  %7687 = vmatpush1.msra.mxu0 %v7540_v4  ;;  %v7518_v4 = vld [vmem:[#allocation3 + $0x2d0] sm:$0xff] }
 0x3ab   : > { %v13511_v29 = vadd.f32 %v6418_v2, %v13388_v58  ;;  %v7535_v58 = vld [vmem:[#allocation3 + $0x358] sm:$0xff]  ;;  %7688 = vmatprep.subr.mxu0 %v7533_v19  ;;  %v7509_v19 = vld [vmem:[#allocation3 + $0x288] sm:$0xff] }
 0x3ac   : > { %v10249_v62 = vpop.f32.mrf.mxu1  ;;  %7759 = vmatprep.subr.mxu1 %v7535_v58  ;;  %7689 = vmatpush1.msra.mxu0 %v7532_v33  ;;  %v7510_v33 = vld [vmem:[#allocation3 + $0x290] sm:$0xff] }
 0x3ad   : > { %v13514_v24 = vadd.f32 %v10249_v62, %v13391_v3  ;;  %v7526_v62 = vld [vmem:[#allocation3 + $0x310] sm:$0xff]  ;;  %7760 = vmatpush1.msra.mxu1 %v7534_v21  ;;  %7690 = vmatprep.subr.mxu0 %v7525_v49  ;;  %v7501_v49 = vld [vmem:[#allocation3 + $0x248] sm:$0xff] }
 0x3ae   : > { %v6428_v26 = vpop.f32.mrf.mxu1  ;;  %7761 = vmatprep.subr.mxu1 %v7527_v43  ;;  %7691 = vmatpush1.msra.mxu0 %v7524_v41  ;;  %v7503_v43 = vld [vmem:[#allocation3 + $0x258] sm:$0xff] }
 0x3af   : > { %v13517_v2 = vadd.f32 %v6428_v26, %v13394_v39  ;;  %v7516_v39 = vld [vmem:[#allocation3 + $0x2c0] sm:$0xff]  ;;  %7762 = vmatpush1.msra.mxu1 %v7526_v62  ;;  %v7511_v26 = vld [vmem:[#allocation3 + $0x298] sm:$0xff]  ;;  %7692 = vmatprep.subr.mxu0 %v7517_v51  ;;  %v7493_v62 = vld [vmem:[#allocation3 + $0x208] sm:$0xff] }
 0x3b0   : > { %v10252_v3 = vpop.f32.mrf.mxu1  ;;  %7763 = vmatprep.subr.mxu1 %v7519_v28  ;;  %7693 = vmatpush1.msra.mxu0 %v7516_v39  ;;  %v7495_v51 = vld [vmem:[#allocation3 + $0x218] sm:$0xff]  ;;  %v7494_v39 = vld [vmem:[#allocation3 + $0x210] sm:$0xff] }
 0x3b1   : > { %v13520_v48 = vadd.f32 %v10252_v3, %v13397_v56  ;;  %v7508_v56 = vld [vmem:[#allocation3 + $0x280] sm:$0xff]  ;;  %7764 = vmatpush1.msra.mxu1 %v7518_v4  ;;  %7694 = vmatprep.subr.mxu0 %v7509_v19  ;;  %v7485_v19 = vld [vmem:[#allocation3 + $0x1c8] sm:$0xff] }
 0x3b2   : > { %v6438_v7 = vpop.f32.mrf.mxu1  ;;  %7765 = vmatprep.subr.mxu1 %v7511_v26  ;;  %7695 = vmatpush1.msra.mxu0 %v7508_v56  ;;  %v7487_v26 = vld [vmem:[#allocation3 + $0x1d8] sm:$0xff]  ;;  %v7486_v56 = vld [vmem:[#allocation3 + $0x1d0] sm:$0xff] }
 0x3b3   : > { %14206 = vst [vmem:[#allocation44_spill] sm:$0xff] %v13520_v48  ;;  %v13523_v40 = vadd.f32 %v6438_v7, %v13400_v11  ;;  %v7500_v11 = vld [vmem:[#allocation3 + $0x240] sm:$0xff]  ;;  %v7502_v7 = vld [vmem:[#allocation3 + $0x250] sm:$0xff]  ;;  %7766 = vmatpush1.msra.mxu1 %v7510_v33  ;;  %7696 = vmatprep.subr.mxu0 %v7501_v49  ;;  %v7477_v49 = vld [vmem:[#allocation3 + $0x188] sm:$0xff] }
 0x3b4   : > { %v10255_v58 = vpop.f32.mrf.mxu1  ;;  %7767 = vmatprep.subr.mxu1 %v7503_v43  ;;  %7697 = vmatpush1.msra.mxu0 %v7500_v11  ;;  %v7479_v43 = vld [vmem:[#allocation3 + $0x198] sm:$0xff]  ;;  %v7478_v11 = vld [vmem:[#allocation3 + $0x190] sm:$0xff] }
 0x3b5   : > { %14207 = vst [vmem:[#allocation88_spill] sm:$0xff] %v13523_v40  ;;  %v13526_v21 = vadd.f32 %v10255_v58, %v13403_v55  ;;  %v7492_v55 = vld [vmem:[#allocation3 + $0x200] sm:$0xff]  ;;  %7768 = vmatpush1.msra.mxu1 %v7502_v7  ;;  %7698 = vmatprep.subr.mxu0 %v7493_v62  ;;  %v7469_v62 = vld [vmem:[#allocation3 + $0x148] sm:$0xff]  ;;  %v7646_v40 = vld [vmem:[#allocation3 + $0x6d0] sm:$0xff] }
 0x3b6   : > { %v6448_v3 = vpop.f32.mrf.mxu1  ;;  %7769 = vmatprep.subr.mxu1 %v7495_v51  ;;  %7699 = vmatpush1.msra.mxu0 %v7492_v55  ;;  %v7471_v51 = vld [vmem:[#allocation3 + $0x158] sm:$0xff]  ;;  %v7470_v55 = vld [vmem:[#allocation3 + $0x150] sm:$0xff] }
 0x3b7   : > { %14208 = vst [vmem:[#allocation47_spill] sm:$0xff] %v13526_v21  ;;  %v13529_v41 = vadd.f32 %v6448_v3, %v13406_v18  ;;  %v7484_v18 = vld [vmem:[#allocation3 + $0x1c0] sm:$0xff]  ;;  %7770 = vmatpush1.msra.mxu1 %v7494_v39  ;;  %7700 = vmatprep.subr.mxu0 %v7485_v19  ;;  %v13540_v39 = vpop.f32.mrf.mxu0  ;;  %v7461_v19 = vld [vmem:[#allocation3 + $0x108] sm:$0xff]  ;;  %v7647_v21 = vld [vmem:[#allocation3 + $0x6d8] sm:$0xff] }
 0x3b8   : > { %v10258_v28 = vpop.f32.mrf.mxu1  ;;  %7771 = vmatprep.subr.mxu1 %v7487_v26  ;;  %7701 = vmatpush1.msra.mxu0 %v7484_v18  ;;  %14213 = vst [vmem:[#allocation23_spill] sm:$0xff] %v13540_v39  ;;  %v7463_v26 = vld [vmem:[#allocation3 + $0x118] sm:$0xff]  ;;  %v7460_v18 = vld [vmem:[#allocation3 + $0x100] sm:$0xff] }
 0x3b9   : > { %14209 = vst [vmem:[#allocation50_spill] sm:$0xff] %v13529_v41  ;;  %v13532_v4 = vadd.f32 %v10258_v28, %v13409_v53  ;;  %v7476_v53 = vld [vmem:[#allocation3 + $0x180] sm:$0xff]  ;;  %7772 = vmatpush1.msra.mxu1 %v7486_v56  ;;  %7702 = vmatprep.subr.mxu0 %v7477_v49  ;;  %v7462_v56 = vld [vmem:[#allocation3 + $0x110] sm:$0xff]  ;;  %v7453_v49 = vld [vmem:[#allocation3 + $0xc8] sm:$0xff] }
 0x3ba   : > { %v6458_v58 = vpop.f32.mrf.mxu1  ;;  %7773 = vmatprep.subr.mxu1 %v7479_v43  ;;  %7703 = vmatpush1.msra.mxu0 %v7476_v53  ;;  %v7455_v43 = vld [vmem:[#allocation3 + $0xd8] sm:$0xff]  ;;  %v7454_v53 = vld [vmem:[#allocation3 + $0xd0] sm:$0xff] }
 0x3bb   : > { %14210 = vst [vmem:[#allocation101_spill] sm:$0xff] %v13532_v4  ;;  %v13535_v33 = vadd.f32 %v6458_v58, %v13412_v42  ;;  %v7468_v42 = vld [vmem:[#allocation3 + $0x140] sm:$0xff]  ;;  %7774 = vmatpush1.msra.mxu1 %v7478_v11  ;;  %7704 = vmatprep.subr.mxu0 %v7469_v62  ;;  %v13548_v11 = vpop.f32.mrf.mxu0  ;;  %v7445_v62 = vld [vmem:[#allocation3 + $0x88] sm:$0xff]  ;;  %v7662_v4 = vld [vmem:[#allocation3 + $0x750] sm:$0xff] }
 0x3bc   : > { %v10261_v3 = vpop.f32.mrf.mxu1  ;;  %7775 = vmatprep.subr.mxu1 %v7471_v51  ;;  %7705 = vmatpush1.msra.mxu0 %v7468_v42  ;;  %v7447_v51 = vld [vmem:[#allocation3 + $0x98] sm:$0xff]  ;;  %v7444_v42 = vld [vmem:[#allocation3 + $0x80] sm:$0xff] }
 0x3bd   : > { %14211 = vst [vmem:[#allocation89_spill] sm:$0xff] %v13535_v33  ;;  %v13538_v7 = vadd.f32 %v10261_v3, %v13415_v38  ;;  %7776 = vmatpush1.msra.mxu1 %v7470_v55  ;;  %7706 = vmatprep.subr.mxu0 %v7461_v19  ;;  %v7446_v55 = vld [vmem:[#allocation3 + $0x90] sm:$0xff]  ;;  %v7437_v19 = vld [vmem:[#allocation3 + $0x48] sm:$0xff]  ;;  %v7663_v33 = vld [vmem:[#allocation3 + $0x758] sm:$0xff] }
 0x3be   : > { %v6468_v28 = vpop.f32.mrf.mxu1  ;;  %7777 = vmatprep.subr.mxu1 %v7463_v26  ;;  %7707 = vmatpush1.msra.mxu0 %v7460_v18  ;;  %v7439_v26 = vld [vmem:[#allocation3 + $0x58] sm:$0xff]  ;;  %v13557_v18 = vpop.f32.mrf.mxu0 }
 0x3bf   : > { %14212 = vst [vmem:[#allocation22_spill] sm:$0xff] %v13538_v7  ;;  %v13543_v58 = vadd.f32 %v6468_v28, %v13418_v61  ;;  %v7452_v61 = vld [vmem:[#allocation3 + $0xc0] sm:$0xff]  ;;  %7778 = vmatpush1.msra.mxu1 %v7462_v56  ;;  %7708 = vmatprep.subr.mxu0 %v7453_v49  ;;  %v7429_v56 = vld [vmem:[#allocation3 + $0x8] sm:$0xff]  ;;  %v7671_v7 = vld [vmem:[#allocation3 + $0x798] sm:$0xff] }
 0x3c0   : > { %v10264_v38 = vpop.f32.mrf.mxu1  ;;  %7779 = vmatprep.subr.mxu1 %v7455_v43  ;;  %7709 = vmatpush1.msra.mxu0 %v7452_v61  ;;  %v7428_v43 = vld [vmem:[#allocation3] sm:$0xff]  ;;  %v7430_v61 = vld [vmem:[#allocation3 + $0x10] sm:$0xff]  ;;  %v7655_v41 = vld [vmem:[#allocation3 + $0x718] sm:$0xff] }
 0x3c1   : > { %14214 = vst [vmem:[#allocation49_spill] sm:$0xff] %v13543_v58  ;;  %v13546_v3 = vadd.f32 %v10264_v38, %v13421_v22  ;;  %7780 = vmatpush1.msra.mxu1 %v7454_v53  ;;  %7710 = vmatprep.subr.mxu0 %v7445_v62  ;;  %v7677_v53 = vld [vmem:[#allocation3 + $0x7c8] sm:$0xff]  ;;  %v7678_v58 = vld [vmem:[#allocation3 + $0x7d0] sm:$0xff]  ;;  %v7639_v48 = vld [vmem:[#allocation3 + $0x698] sm:$0xff] }
 0x3c2   : > { %v6478_v39 = vpop.f32.mrf.mxu1  ;;  %7781 = vmatprep.subr.mxu1 %v7447_v51  ;;  %7711 = vmatpush1.msra.mxu0 %v7444_v42  ;;  %v7676_v51 = vld [vmem:[#allocation3 + $0x7c0] sm:$0xff]  ;;  %v13563_v42 = vpop.f32.mrf.mxu0 }
 0x3c3   : > { %14215 = vst [vmem:[#allocation48_spill] sm:$0xff] %v13546_v3  ;;  %v13551_v28 = vadd.f32 %v6478_v39, %v13426_v52  ;;  %v7436_v52 = vld [vmem:[#allocation3 + $0x40] sm:$0xff]  ;;  %v7438_v39 = vld [vmem:[#allocation3 + $0x50] sm:$0xff]  ;;  %7782 = vmatpush1.msra.mxu1 %v7446_v55  ;;  %7712 = vmatprep.subr.mxu0 %v7437_v19  ;;  %v7679_v3 = vld [vmem:[#allocation3 + $0x7d8] sm:$0xff] }
 0x3c4   : > { %v13553_v22 = vpop.f32.mrf.mxu1  ;;  %7783 = vmatprep.subr.mxu1 %v7439_v26  ;;  %7713 = vmatpush1.msra.mxu0 %v7436_v52  ;;  %v7669_v55 = vld [vmem:[#allocation3 + $0x788] sm:$0xff]  ;;  %v7668_v26 = vld [vmem:[#allocation3 + $0x780] sm:$0xff]  ;;  %v7670_v52 = vld [vmem:[#allocation3 + $0x790] sm:$0xff] }
 0x3c5   : > { %14216 = vst [vmem:[#allocation91_spill] sm:$0xff] %v13551_v28  ;;  %v7431_v28 = vld [vmem:[#allocation3 + $0x18] sm:$0xff]  ;;  %7784 = vmatpush1.msra.mxu1 %v7438_v39  ;;  %7714 = vmatprep.subr.mxu0 %v7429_v56  ;;  %v7661_v39 = vld [vmem:[#allocation3 + $0x748] sm:$0xff] }
 0x3c6   : > { %v13555_v38 = vpop.f32.mrf.mxu1  ;;  %7785 = vmatprep.subr.mxu1 %v7431_v28  ;;  %7715 = vmatpush1.msra.mxu0 %v7428_v43  ;;  %v7660_v28 = vld [vmem:[#allocation3 + $0x740] sm:$0xff]  ;;  %v13569_v43 = vpop.f32.mrf.mxu0 }
 0x3c7   : > { %7786 = vmatpush1.msra.mxu1 %v7430_v61  ;;  %7716 = vmatprep.subr.mxu0 %v7677_v53  ;;  %v7653_v61 = vld [vmem:[#allocation3 + $0x708] sm:$0xff] }
 0x3c8   : > { %v13559_v49 = vpop.f32.mrf.mxu1  ;;  %7787 = vmatprep.subr.mxu1 %v7679_v3  ;;  %7717 = vmatpush2.msra.mxu0 %v7676_v51  ;;  %v7652_v3 = vld [vmem:[#allocation3 + $0x700] sm:$0xff]  ;;  %v7645_v51 = vld [vmem:[#allocation3 + $0x6c8] sm:$0xff] }
 0x3c9   : > { %7788 = vmatpush2.msra.mxu1 %v7678_v58  ;;  %7718 = vmatprep.subr.mxu0 %v7669_v55  ;;  %v7654_v58 = vld [vmem:[#allocation3 + $0x710] sm:$0xff] }
 0x3ca   : > { %v13561_v62 = vpop.f32.mrf.mxu1  ;;  %7789 = vmatprep.subr.mxu1 %v7671_v7  ;;  %7719 = vmatpush2.msra.mxu0 %v7668_v26  ;;  %v7644_v7 = vld [vmem:[#allocation3 + $0x6c0] sm:$0xff]  ;;  %v13575_v26 = vpop.f32.mrf.mxu0 }
 0x3cb   : > { %7790 = vmatpush2.msra.mxu1 %v7670_v52  ;;  %7720 = vmatprep.subr.mxu0 %v7661_v39  ;;  %v7637_v52 = vld [vmem:[#allocation3 + $0x688] sm:$0xff] }
 0x3cc   : > { %v13565_v19 = vpop.f32.mrf.mxu1  ;;  %7791 = vmatprep.subr.mxu1 %v7663_v33  ;;  %7721 = vmatpush2.msra.mxu0 %v7660_v28  ;;  %v7636_v33 = vld [vmem:[#allocation3 + $0x680] sm:$0xff]  ;;  %v7629_v28 = vld [vmem:[#allocation3 + $0x648] sm:$0xff] }
 0x3cd   : > { %7792 = vmatpush2.msra.mxu1 %v7662_v4  ;;  %7722 = vmatprep.subr.mxu0 %v7653_v61  ;;  %v7638_v4 = vld [vmem:[#allocation3 + $0x690] sm:$0xff] }
 0x3ce   : > { %v13567_v56 = vpop.f32.mrf.mxu1  ;;  %7793 = vmatprep.subr.mxu1 %v7655_v41  ;;  %7723 = vmatpush2.msra.mxu0 %v7652_v3  ;;  %v7628_v41 = vld [vmem:[#allocation3 + $0x640] sm:$0xff]  ;;  %v13581_v3 = vpop.f32.mrf.mxu0 }
 0x3cf   : > { %7794 = vmatpush2.msra.mxu1 %v7654_v58  ;;  %7724 = vmatprep.subr.mxu0 %v7645_v51  ;;  %14221 = vst [vmem:[#allocation24_spill] sm:$0xff] %v13581_v3  ;;  %v7621_v58 = vld [vmem:[#allocation3 + $0x608] sm:$0xff]  ;;  %v7614_v3 = vld [vmem:[#allocation3 + $0x5d0] sm:$0xff] }
 0x3d0   : > { %v13571_v53 = vpop.f32.mrf.mxu1  ;;  %7795 = vmatprep.subr.mxu1 %v7647_v21  ;;  %7725 = vmatpush2.msra.mxu0 %v7644_v7  ;;  %v7620_v21 = vld [vmem:[#allocation3 + $0x600] sm:$0xff]  ;;  %v7613_v7 = vld [vmem:[#allocation3 + $0x5c8] sm:$0xff] }
 0x3d1   : > { %14217 = vst [vmem:[#allocation51_spill] sm:$0xff] %v13571_v53  ;;  %7796 = vmatpush2.msra.mxu1 %v7646_v40  ;;  %7726 = vmatprep.subr.mxu0 %v7637_v52  ;;  %v7630_v53 = vld [vmem:[#allocation3 + $0x650] sm:$0xff] }
 0x3d2   : > { %v13573_v55 = vpop.f32.mrf.mxu1  ;;  %7797 = vmatprep.subr.mxu1 %v7639_v48  ;;  %7727 = vmatpush2.msra.mxu0 %v7636_v33  ;;  %v7622_v40 = vld [vmem:[#allocation3 + $0x610] sm:$0xff]  ;;  %v7612_v48 = vld [vmem:[#allocation3 + $0x5c0] sm:$0xff]  ;;  %v13587_v33 = vpop.f32.mrf.mxu0 }
 0x3d3   : > { %14218 = vst [vmem:[#allocation54_spill] sm:$0xff] %v13573_v55  ;;  %v7631_v55 = vld [vmem:[#allocation3 + $0x658] sm:$0xff]  ;;  %7798 = vmatpush2.msra.mxu1 %v7638_v4  ;;  %7728 = vmatprep.subr.mxu0 %v7629_v28  ;;  %v7605_v4 = vld [vmem:[#allocation3 + $0x588] sm:$0xff] }
 0x3d4   : > { %v13577_v39 = vpop.f32.mrf.mxu1  ;;  %7799 = vmatprep.subr.mxu1 %v7631_v55  ;;  %7729 = vmatpush2.msra.mxu0 %v7628_v41  ;;  %v7604_v55 = vld [vmem:[#allocation3 + $0x580] sm:$0xff]  ;;  %v7597_v41 = vld [vmem:[#allocation3 + $0x548] sm:$0xff] }
 0x3d5   : > { %14219 = vst [vmem:[#allocation92_spill] sm:$0xff] %v13577_v39  ;;  %v7623_v39 = vld [vmem:[#allocation3 + $0x618] sm:$0xff]  ;;  %7800 = vmatpush2.msra.mxu1 %v7630_v53  ;;  %7730 = vmatprep.subr.mxu0 %v7621_v58  ;;  %v7606_v53 = vld [vmem:[#allocation3 + $0x590] sm:$0xff]  ;;  %v6875_v58 = vadd.f32 %v13424_v57, %v13429_v59  ;;  %v13607_v57 = vadd.f32 %v13446_v20, %v13449_v63  ;;  %v7581_v63 = vld [vmem:[#allocation3 + $0x4c8] sm:$0xff] }
 0x3d6   : > { %v13579_v61 = vpop.f32.mrf.mxu1  ;;  %7801 = vmatprep.subr.mxu1 %v7623_v39  ;;  %7731 = vmatpush2.msra.mxu0 %v7620_v21  ;;  %v6115_v39 = vadd.f32 %v13377_v36, %v13382_v17  ;;  %v7589_v36 = vld [vmem:[#allocation3 + $0x508] sm:$0xff]  ;;  %v7591_v17 = vld [vmem:[#allocation3 + $0x518] sm:$0xff]  ;;  %v13611_v59 = vadd.f32 %v13451_v37, %v13454_v16  ;;  %v13624_v16 = vadd.f32 %v13461_v31, %v13464_v34 }
 0x3d7   : > { %14220 = vst [vmem:[#allocation106_spill] sm:$0xff] %v13579_v61  ;;  %v7615_v61 = vld [vmem:[#allocation3 + $0x5d8] sm:$0xff]  ;;  %7802 = vmatpush2.msra.mxu1 %v7622_v40  ;;  %7732 = vmatprep.subr.mxu0 %v7613_v7  ;;  %v7596_v40 = vld [vmem:[#allocation3 + $0x540] sm:$0xff]  ;;  %v6876_v7 = vadd.f32 %v13441_v47, %v13444_v14  ;;  %v7262_v14 = vadd.f32 %v13553_v22, %v6875_v58 }
 0x3d8   : > { %v13583_v51 = vpop.f32.mrf.mxu1  ;;  %7803 = vmatprep.subr.mxu1 %v7615_v61  ;;  %7733 = vmatpush2.msra.mxu0 %v7612_v48  ;;  %v6874_v61 = vadd.f32 %v13431_v0, %v13434_v27  ;;  %v13603_v48 = vpop.f32.mrf.mxu0  ;;  %v13615_v0 = vadd.f32 %v13456_v10, %v13459_v50  ;;  %v6503_v47 = vadd.f32 %v13505_v1, %v6115_v39  ;;  %v7583_v37 = vld [vmem:[#allocation3 + $0x4d8] sm:$0xff]  ;;  %v13633_v50 = vld [vmem:[%s13810_s4] ss:$0 sm:$0xff]  ;;  %v7580_v22 = vld [vmem:[#allocation3 + $0x4c0] sm:$0xff] }
 0x3d9   : > { %14222 = vst [vmem:[#allocation25_spill] sm:$0xff] %v13583_v51  ;;  %v7607_v51 = vld [vmem:[#allocation3 + $0x598] sm:$0xff]  ;;  %7804 = vmatpush2.msra.mxu1 %v7614_v3  ;;  %7734 = vmatprep.subr.mxu0 %v7605_v4  ;;  %v6877_v3 = vadd.f32 %v13436_v45, %v13439_v23  ;;  %v7588_v45 = vld [vmem:[#allocation3 + $0x500] sm:$0xff]  ;;  %v7590_v23 = vld [vmem:[#allocation3 + $0x510] sm:$0xff]  ;;  %v13628_v10 = vadd.f32 %v13466_v5, %v13469_v35 }
 0x3da   : > { %v13585_v52 = vpop.f32.mrf.mxu1  ;;  %7805 = vmatprep.subr.mxu1 %v7607_v51  ;;  %7735 = vmatpush2.msra.mxu0 %v7604_v55  ;;  %v7582_v51 = vld [vmem:[#allocation3 + $0x4d0] sm:$0xff]  ;;  %v13640_v31 = vadd.f32 %v13471_v12, %v13474_v44  ;;  %v13644_v34 = vadd.f32 %v13476_v8, %v13479_v25  ;;  %v6891_v5 = vadd.f32 %v13548_v11, %v13503_v60  ;;  %v13648_v35 = vpop.f32.mrf.mxu0  ;;  %v7572_v25 = vld [vmem:[#allocation3 + $0x480] sm:$0xff] }
 0x3db   : > { %14223 = vst [vmem:[#allocation53_spill] sm:$0xff] %v13585_v52  ;;  %v7599_v52 = vld [vmem:[#allocation3 + $0x558] sm:$0xff]  ;;  %7806 = vmatpush2.msra.mxu1 %v7606_v53  ;;  %7736 = vmatprep.subr.mxu0 %v7597_v41  ;;  %v13652_v4 = vadd.f32 %v13481_v30, %v13484_v32  ;;  %v13656_v12 = vadd.f32 %v13486_v15, %v13489_v46  ;;  %v7574_v60 = vld [vmem:[#allocation3 + $0x490] sm:$0xff]  ;;  %v7565_v30 = vld [vmem:[#allocation3 + $0x448] sm:$0xff] }
 0x3dc   : > { %v13589_v28 = vpop.f32.mrf.mxu1  ;;  %7807 = vmatprep.subr.mxu1 %v7599_v52  ;;  %7737 = vmatpush2.msra.mxu0 %v7596_v40  ;;  %v7575_v52 = vld [vmem:[#allocation3 + $0x498] sm:$0xff]  ;;  %v7264_v44 = vadd.f32 %v13559_v49, %v6877_v3  ;;  %v6890_v11 = vadd.f32 %v13557_v18, %v6503_v47  ;;  %v13663_v15 = vadd.f32 %v13491_v9, %v13494_v13  ;;  %v7564_v41 = vld [vmem:[#allocation3 + $0x440] sm:$0xff]  ;;  %v7566_v18 = vld [vmem:[#allocation3 + $0x450] sm:$0xff]  ;;  %v13669_v58 = vpop.f32.mrf.mxu0 }
 0x3dd   : > { %14224 = vst [vmem:[#allocation52_spill] sm:$0xff] %v13589_v28  ;;  %v7598_v28 = vld [vmem:[#allocation3 + $0x550] sm:$0xff]  ;;  %7738 = vmatprep.subr.mxu0 %v7589_v36  ;;  %v7567_v32 = vld [vmem:[#allocation3 + $0x458] sm:$0xff]  ;;  %v7263_v46 = vadd.f32 %v13561_v62, %v6876_v7  ;;  %v6893_v39 = vadd.f32 %v13563_v42, %v13508_v54  ;;  %v6892_v9 = vadd.f32 %v13569_v43, %v13511_v29 }
 0x3de   : > { %v13595_v21 = vpop.f32.mrf.mxu1  ;;  %7808 = vmatpush2.msra.mxu1 %v7598_v28  ;;  %7739 = vmatpush2.msra.mxu0 %v7588_v45  ;;  %v7301_v28 = vadd.f32 %v13633_v50, %v7262_v14  ;;  %v7303_v13 = vadd.f32 %v13633_v50, %v7264_v44  ;;  %v7266_v62 = vadd.f32 %v13565_v19, %v13607_v57  ;;  %v13683_v57 = vpop.f32.mrf.mxu0 }
 0x3df   : > { %7809 = vmatprep.subr.mxu1 %v7591_v17  ;;  %7740 = vmatprep.subr.mxu0 %v7581_v63  ;;  %v6895_v17 = vadd.f32 %v13575_v26, %v13514_v24  ;;  %v7302_v29 = vadd.f32 %v13633_v50, %v7263_v46  ;;  %v7265_v43 = vadd.f32 %v13567_v56, %v13611_v59  ;;  %v14225_v63 = vld [vmem:[#allocation24_spill] sm:$0xff]  ;;  %v14226_v26 = vld [vmem:[#allocation51_spill] sm:$0xff]  ;;  %v7557_v56 = vld [vmem:[#allocation3 + $0x408] sm:$0xff] }
 0x3e0   : > { %v10340_v27 = vpop.f32.mrf.mxu1  ;;  %7810 = vmatpush2.msra.mxu1 %v7590_v23  ;;  %7741 = vmatpush2.msra.mxu0 %v7580_v22  ;;  %v7333_v7 = vmax.f32 %v7301_v28, 0.0  ;;  %v7305_v24 = vadd.f32 %v13633_v50, %v7266_v62  ;;  %v7268_v22 = vadd.f32 %v14226_v26, %v13615_v0  ;;  %v7559_v59 = vld [vmem:[#allocation3 + $0x418] sm:$0xff]  ;;  %v14228_v0 = vld [vmem:[#allocation54_spill] sm:$0xff]  ;;  %v14234_v26 = vld [vmem:[#allocation25_spill] sm:$0xff] }
 0x3e1   : > { %v13620_v20 = vadd.f32 %v10340_v27, %v13497_v6  ;;  %v7261_v6 = vadd.f32 %v13555_v38, %v6874_v61  ;;  %v7573_v38 = vld [vmem:[#allocation3 + $0x488] sm:$0xff]  ;;  %7811 = vmatprep.subr.mxu1 %v7583_v37  ;;  %v6894_v37 = vadd.f32 %v14225_v63, %v13517_v2  ;;  %v7304_v28 = vadd.f32 %v13633_v50, %v7265_v43  ;;  %v7555_v46 = vld [vmem:[#allocation3 + $0x3f8] sm:$0xff] }
 0x3e2   : > { %v13636_v1 = vpop.f32.mrf.mxu1  ;;  %7812 = vmatpush2.msra.mxu1 %v7582_v51  ;;  %7742 = vmatprep.subr.mxu0 %v7573_v38 }
 0x3e3   : > { %v7300_v53 = vadd.f32 %v13633_v50, %v7261_v6  ;;  %7813 = vmatprep.subr.mxu1 %v7575_v52  ;;  %7743 = vmatpush2.msra.mxu0 %v7572_v25  ;;  %v7335_v6 = vmax.f32 %v7303_v13, 0.0  ;;  %v7558_v25 = vld [vmem:[#allocation3 + $0x410] sm:$0xff] }
 0x3e4   : > { %v10343_v8 = vpop.f32.mrf.mxu1  ;;  %7814 = vmatpush2.msra.mxu1 %v7574_v60  ;;  %7744 = vmatprep.subr.mxu0 %v7565_v30  ;;  %v14227_v60 = vld [vmem:[#allocation44_spill] sm:$0xff] }
 0x3e5   : > { %v7278_v55 = vadd.f32 %v10343_v8, %v6891_v5  ;;  %7815 = vmatprep.subr.mxu1 %v7567_v32  ;;  %7745 = vmatpush2.msra.mxu0 %v7564_v41  ;;  %v7332_v19 = vmax.f32 %v7300_v53, 0.0  ;;  %v7556_v5 = vld [vmem:[#allocation3 + $0x400] sm:$0xff]  ;;  %v6897_v2 = vadd.f32 %v13587_v33, %v14227_v60  ;;  %v7553_v32 = vld [vmem:[#allocation3 + $0x3e8] sm:$0xff]  ;;  %v14229_v33 = vld [vmem:[#allocation88_spill] sm:$0xff] }
 0x3e6   : > { %v7182_v49 = vpop.f32.mrf.mxu1  ;;  %7816 = vmatpush2.msra.mxu1 %v7566_v18  ;;  %7746 = vmatprep.subr.mxu0 %v7557_v56 }
 0x3e7   : > { %v7317_v40 = vadd.f32 %v13633_v50, %v7278_v55  ;;  %v7277_v61 = vadd.f32 %v7182_v49, %v6890_v11  ;;  %7817 = vmatprep.subr.mxu1 %v7559_v59  ;;  %v7334_v11 = vmax.f32 %v7302_v29, 0.0  ;;  %v7267_v55 = vadd.f32 %v14228_v0, %v13624_v16  ;;  %7747 = vmatpush2.msra.mxu0 %v7556_v5  ;;  %v6845_v49 = vpop.f32.mrf.mxu0  ;;  %v14230_v16 = vld [vmem:[#allocation92_spill] sm:$0xff]  ;;  %v14237_v0 = vld [vmem:[#allocation89_spill] sm:$0xff] }
 0x3e8   : > { %v10346_v3 = vpop.f32.mrf.mxu1  ;;  %7818 = vmatpush2.msra.mxu1 %v7558_v25  ;;  %7826 = vmatprep.subr.mxu0 %v7553_v32  ;;  %v7270_v13 = vadd.f32 %v14230_v16, %v13628_v10  ;;  %v7336_v29 = vmax.f32 %v7304_v28, 0.0  ;;  %v14238_v32 = vld [vmem:[#allocation52_spill] sm:$0xff] }
 0x3e9   : > { %v7349_v54 = vmax.f32 %v7317_v40, 0.0  ;;  %v7280_v42 = vadd.f32 %v10346_v3, %v6893_v39  ;;  %v7316_v36 = vadd.f32 %v13633_v50, %v7277_v61  ;;  %v6896_v40 = vadd.f32 %v13603_v48, %v14229_v33  ;;  %7897 = vmatprep.subr.mxu1 %v7555_v46  ;;  %v14232_v48 = vld [vmem:[#allocation106_spill] sm:$0xff] }
 0x3ea   : > { %v7192_v27 = vpop.f32.mrf.mxu1  ;;  %v7337_v61 = vmax.f32 %v7305_v24, 0.0  ;;  %v7306_v43 = vadd.f32 %v13633_v50, %v7267_v55  ;;  %v6900_v55 = vadd.f32 %v6845_v49, %v14237_v0  ;;  %v7274_v46 = vadd.f32 %v14238_v32, %v13656_v12 }
 0x3eb   : > { %v7319_v45 = vadd.f32 %v13633_v50, %v7280_v42  ;;  %v7279_v23 = vadd.f32 %v7192_v27, %v6892_v9  ;;  %v7348_v47 = vmax.f32 %v7316_v36, 0.0  ;;  %v10421_v14 = vpack.i.bf16 %v7333_v7, %v7349_v54  ;;  %v14231_v36 = vld [vmem:[#allocation47_spill] sm:$0xff] }
 0x3ec   : > { %v10349_v51 = vpop.f32.mrf.mxu1  ;;  %v7307_v9 = vadd.f32 %v13633_v50, %v7268_v22  ;;  %v7269_v27 = vadd.f32 %v14232_v48, %v13640_v31  ;;  %v7272_v22 = vadd.f32 %v14234_v26, %v13644_v34  ;;  %v7273_v49 = vadd.f32 %v13595_v21, %v13663_v15 }
 0x3ed   : > { %v7351_v38 = vmax.f32 %v7319_v45, 0.0  ;;  %v7318_v52 = vadd.f32 %v13633_v50, %v7279_v23  ;;  %v7282_v44 = vadd.f32 %v10349_v51, %v6895_v17  ;;  %v10419_v8 = vpack.i.bf16 %v7332_v19, %v7348_v47  ;;  %v10311_v45 = vpop.f32.mrf.mxu0 }
 0x3ee   : > { %v7202_v30 = vpop.f32.mrf.mxu1  ;;  %v6899_v17 = vadd.f32 %v13648_v35, %v14231_v36  ;;  %v7339_v24 = vmax.f32 %v7307_v9, 0.0  ;;  %v7309_v35 = vadd.f32 %v13633_v50, %v7270_v13  ;;  %v14241_v36 = vld [vmem:[#allocation23_spill] sm:$0xff] }
 0x3ef   : > { %v7350_v53 = vmax.f32 %v7318_v52, 0.0  ;;  %v7321_v41 = vadd.f32 %v13633_v50, %v7282_v44  ;;  %v7281_v18 = vadd.f32 %v7202_v30, %v6894_v37  ;;  %10420 = vxpose.xlu0.b32.start [1/16] (narrow) %v10419_v8, 8  ;;  %v10425_v39 = vpack.i.bf16 %v7335_v6, %v7351_v38  ;;  %v14233_v37 = vld [vmem:[#allocation50_spill] sm:$0xff]  ;;  %v14235_v38 = vld [vmem:[#allocation101_spill] sm:$0xff]  ;;  %v6855_v60 = vpop.f32.mrf.mxu0 }
 0x3f0   : > { %v10352_v62 = vpop.f32.mrf.mxu1  ;;  %v6898_v6 = vadd.f32 %v13669_v58, %v14233_v37  ;;  %v7338_v52 = vmax.f32 %v7306_v43, 0.0  ;;  %v7308_v44 = vadd.f32 %v13633_v50, %v7269_v27  ;;  %v14236_v58 = vld [vmem:[#allocation53_spill] sm:$0xff]  ;;  %v7341_v30 = vmax.f32 %v7309_v35, 0.0 }
 0x3f1   : > { %v7353_v3 = vmax.f32 %v7321_v41, 0.0  ;;  %v7320_v7 = vadd.f32 %v13633_v50, %v7281_v18  ;;  %v7284_v54 = vadd.f32 %v10352_v62, %v6897_v2  ;;  %v10423_v42 = vpack.i.bf16 %v7334_v11, %v7350_v53  ;;  %v10314_v41 = vpop.f32.mrf.mxu0 }
 0x3f2   : > { %v7212_v19 = vpop.f32.mrf.mxu1  ;;  %v7271_v8 = vadd.f32 %v14236_v58, %v13652_v4  ;;  %v7340_v16 = vmax.f32 %v7308_v44, 0.0  ;;  %v7313_v27 = vadd.f32 %v13633_v50, %v7274_v46 }
 0x3f3   : > { %v7352_v23 = vmax.f32 %v7320_v7, 0.0  ;;  %v7323_v10 = vadd.f32 %v13633_v50, %v7284_v54  ;;  %v7283_v47 = vadd.f32 %v7212_v19, %v6896_v40  ;;  %10422 = vxpose.xlu0.b32.cont [2/16] (narrow) %v10421_v14, 8  ;;  %v13710_v63 = vpack.i.bf16 %v7337_v61, %v7353_v3  ;;  %v14239_v61 = vld [vmem:[#allocation22_spill] sm:$0xff] }
 0x3f4   : > { %v10355_v51 = vpop.f32.mrf.mxu1  ;;  %v6901_v14 = vadd.f32 %v13683_v57, %v14235_v38  ;;  %v7311_v57 = vadd.f32 %v13633_v50, %v7272_v22  ;;  %v6903_v9 = vadd.f32 %v10311_v45, %v14239_v61  ;;  %v7310_v13 = vadd.f32 %v13633_v50, %v7271_v8  ;;  %v6865_v45 = vpop.f32.mrf.mxu0  ;;  %v7544_v61 = vld [vmem:[#allocation3 + $0x3a0] sm:$0xff] }
 0x3f5   : > { %v7355_v31 = vmax.f32 %v7323_v10, 0.0  ;;  %v7322_v56 = vadd.f32 %v13633_v50, %v7283_v47  ;;  %v7286_v59 = vadd.f32 %v10355_v51, %v6899_v17  ;;  %v10427_v5 = vpack.i.bf16 %v7336_v29, %v7352_v23  ;;  %v14242_v29 = vld [vmem:[#allocation49_spill] sm:$0xff]  ;;  %v14243_v47 = vld [vmem:[#allocation48_spill] sm:$0xff] }
 0x3f6   : > { %v7222_v25 = vpop.f32.mrf.mxu1  ;;  %v6902_v43 = vadd.f32 %v6855_v60, %v14242_v29  ;;  %v7343_v48 = vmax.f32 %v7311_v57, 0.0  ;;  %v6905_v37 = vadd.f32 %v10314_v41, %v14243_v47  ;;  %v7345_v38 = vmax.f32 %v7313_v27, 0.0  ;;  %v7522_v29 = vld [vmem:[#allocation3 + $0x2f0] sm:$0xff]  ;;  %v7512_v27 = vld [vmem:[#allocation3 + $0x2a0] sm:$0xff]  ;;  %v7499_v47 = vld [vmem:[#allocation3 + $0x238] sm:$0xff] }
 0x3f7   : > { %v7354_v2 = vmax.f32 %v7322_v56, 0.0  ;;  %v7325_v34 = vadd.f32 %v13633_v50, %v7286_v59  ;;  %v7285_v11 = vadd.f32 %v7222_v25, %v6898_v6  ;;  %10424 = vxpose.xlu0.b32.cont [3/16] (narrow) %v10423_v42, 8  ;;  %v13724_v28 = vpack.i.bf16 %v7339_v24, %v7355_v31  ;;  %v14240_v42 = vld [vmem:[#allocation45_spill] sm:$0xff]  ;;  %v14244_v56 = vld [vmem:[#allocation91_spill] sm:$0xff] }
 0x3f8   : > { %v10358_v53 = vpop.f32.mrf.mxu1  ;;  %v6888_v17 = vadd.f32 %v14241_v36, %v14240_v42  ;;  %v7342_v6 = vmax.f32 %v7310_v13, 0.0  ;;  %v6904_v59 = vadd.f32 %v6865_v45, %v14244_v56  ;;  %v7539_v13 = vld [vmem:[#allocation3 + $0x378] sm:$0xff]  ;;  %v7521_v42 = vld [vmem:[#allocation3 + $0x2e8] sm:$0xff]  ;;  %v7482_v56 = vld [vmem:[#allocation3 + $0x1b0] sm:$0xff] }
 0x3f9   : > { %v7357_v4 = vmax.f32 %v7325_v34, 0.0  ;;  %v7324_v18 = vadd.f32 %v13633_v50, %v7285_v11  ;;  %v7288_v33 = vadd.f32 %v10358_v53, %v6901_v14  ;;  %v10431_v40 = vpack.i.bf16 %v7338_v52, %v7354_v2  ;;  %v7523_v36 = vld [vmem:[#allocation3 + $0x2f8] sm:$0xff]  ;;  %v7505_v45 = vld [vmem:[#allocation3 + $0x268] sm:$0xff] }
 0x3fa   : > { %v7232_v62 = vpop.f32.mrf.mxu1  ;;  %v7275_v24 = vadd.f32 %v13636_v1, %v6888_v17  ;;  %v7315_v14 = vadd.f32 %v13633_v50, %v13620_v20  ;;  %v7520_v17 = vld [vmem:[#allocation3 + $0x2e0] sm:$0xff] }
 0x3fb   : > { %v7356_v3 = vmax.f32 %v7324_v18, 0.0  ;;  %v7327_v7 = vadd.f32 %v13633_v50, %v7288_v33  ;;  %v7287_v12 = vadd.f32 %v7232_v62, %v6900_v55  ;;  %10426 = vxpose.xlu0.b32.cont [4/16] (narrow) %v10425_v39, 8  ;;  %v10437_v54 = vpack.i.bf16 %v7341_v30, %v7357_v4  ;;  %v7552_v18 = vld [vmem:[#allocation3 + $0x3e0] sm:$0xff]  ;;  %v7554_v33 = vld [vmem:[#allocation3 + $0x3f0] sm:$0xff] }
 0x3fc   : > { %v10361_v19 = vpop.f32.mrf.mxu1  ;;  %v7312_v39 = vadd.f32 %v13633_v50, %v7273_v49  ;;  %v7314_v60 = vadd.f32 %v13633_v50, %v7275_v24  ;;  %v7347_v55 = vmax.f32 %v7315_v14, 0.0  ;;  %v7536_v49 = vld [vmem:[#allocation3 + $0x360] sm:$0xff]  ;;  %v7538_v62 = vld [vmem:[#allocation3 + $0x370] sm:$0xff]  ;;  %v7491_v24 = vld [vmem:[#allocation3 + $0x1f8] sm:$0xff] }
 0x3fd   : > { %v7359_v23 = vmax.f32 %v7327_v7, 0.0  ;;  %v7326_v21 = vadd.f32 %v13633_v50, %v7287_v12  ;;  %v7290_v15 = vadd.f32 %v10361_v19, %v6903_v9  ;;  %v10435_v10 = vpack.i.bf16 %v7340_v16, %v7356_v3  ;;  %v7546_v9 = vld [vmem:[#allocation3 + $0x3b0] sm:$0xff]  ;;  %v7537_v16 = vld [vmem:[#allocation3 + $0x368] sm:$0xff]  ;;  %v7531_v7 = vld [vmem:[#allocation3 + $0x338] sm:$0xff] }
 0x3fe   : > { %v7242_v35 = vpop.f32.mrf.mxu1  ;;  %v7344_v1 = vmax.f32 %v7312_v39, 0.0  ;;  %v7346_v32 = vmax.f32 %v7314_v60, 0.0  ;;  %v7529_v3 = vld [vmem:[#allocation3 + $0x328] sm:$0xff]  ;;  %v7528_v12 = vld [vmem:[#allocation3 + $0x320] sm:$0xff]  ;;  %v7514_v19 = vld [vmem:[#allocation3 + $0x2b0] sm:$0xff] }
 0x3ff   : > { %v7358_v26 = vmax.f32 %v7326_v21, 0.0  ;;  %v7329_v22 = vadd.f32 %v13633_v50, %v7290_v15  ;;  %v7289_v51 = vadd.f32 %v7242_v35, %v6902_v43  ;;  %10428 = vxpose.xlu0.b32.cont [5/16] (narrow) %v10427_v5, 8  ;;  %v10441_v31 = vpack.i.bf16 %v7343_v48, %v7359_v23  ;;  %v7513_v43 = vld [vmem:[#allocation3 + $0x2a8] sm:$0xff]  ;;  %v7515_v48 = vld [vmem:[#allocation3 + $0x2b8] sm:$0xff]  ;;  %v7504_v21 = vld [vmem:[#allocation3 + $0x260] sm:$0xff] }
 0x400   : > { %v10364_v52 = vpop.f32.mrf.mxu1  ;;  %v7507_v23 = vld [vmem:[#allocation3 + $0x278] sm:$0xff]  ;;  %v7506_v15 = vld [vmem:[#allocation3 + $0x270] sm:$0xff]  ;;  %v7489_v39 = vld [vmem:[#allocation3 + $0x1e8] sm:$0xff] }
 0x401   : > { %v7361_v44 = vmax.f32 %v7329_v22, 0.0  ;;  %v7328_v58 = vadd.f32 %v13633_v50, %v7289_v51  ;;  %v7292_v8 = vadd.f32 %v10364_v52, %v6905_v37  ;;  %v10439_v25 = vpack.i.bf16 %v7342_v6, %v7358_v26  ;;  %v7496_v37 = vld [vmem:[#allocation3 + $0x220] sm:$0xff]  ;;  %v7498_v6 = vld [vmem:[#allocation3 + $0x230] sm:$0xff]  ;;  %v7481_v22 = vld [vmem:[#allocation3 + $0x1a8] sm:$0xff] }
 0x402   : > { %v7252_v2 = vpop.f32.mrf.mxu1  ;;  %v7488_v35 = vld [vmem:[#allocation3 + $0x1e0] sm:$0xff]  ;;  %v7490_v26 = vld [vmem:[#allocation3 + $0x1f0] sm:$0xff]  ;;  %v7483_v51 = vld [vmem:[#allocation3 + $0x1b8] sm:$0xff] }
 0x403   : > { %v7360_v34 = vmax.f32 %v7328_v58, 0.0  ;;  %v7331_v5 = vadd.f32 %v13633_v50, %v7292_v8  ;;  %v7291_v11 = vadd.f32 %v7252_v2, %v6904_v59  ;;  %10430 = vxpose.xlu0.b32.cont [6/16] (narrow) %v13710_v63, 8  ;;  %v10445_v0 = vpack.i.bf16 %v7345_v38, %v7361_v44  ;;  %v7473_v59 = vld [vmem:[#allocation3 + $0x168] sm:$0xff]  ;;  %v7475_v38 = vld [vmem:[#allocation3 + $0x178] sm:$0xff]  ;;  %v7472_v14 = vld [vmem:[#allocation3 + $0x160] sm:$0xff] }
 0x404   : > { %v7474_v52 = vld [vmem:[#allocation3 + $0x170] sm:$0xff]  ;;  %v7465_v44 = vld [vmem:[#allocation3 + $0x128] sm:$0xff]  ;;  %v7467_v58 = vld [vmem:[#allocation3 + $0x138] sm:$0xff] }
 0x405   : > { %v7363_v30 = vmax.f32 %v7331_v5, 0.0  ;;  %v7330_v20 = vadd.f32 %v13633_v50, %v7291_v11  ;;  %v10443_v57 = vpack.i.bf16 %v7344_v1, %v7360_v34  ;;  %v7464_v8 = vld [vmem:[#allocation3 + $0x120] sm:$0xff]  ;;  %v7457_v1 = vld [vmem:[#allocation3 + $0xe8] sm:$0xff]  ;;  %v7459_v60 = vld [vmem:[#allocation3 + $0xf8] sm:$0xff] }
 0x406   : > { %v7456_v2 = vld [vmem:[#allocation3 + $0xe0] sm:$0xff]  ;;  %v7458_v34 = vld [vmem:[#allocation3 + $0xf0] sm:$0xff]  ;;  %v7449_v5 = vld [vmem:[#allocation3 + $0xa8] sm:$0xff] }
 0x407   : > { %v7362_v46 = vmax.f32 %v7330_v20, 0.0  ;;  %10432 = vxpose.xlu0.b32.cont [7/16] (narrow) %v10431_v40, 8  ;;  %v10449_v53 = vpack.i.bf16 %v7347_v55, %v7363_v30  ;;  %v7545_v40 = vld [vmem:[#allocation3 + $0x3a8] sm:$0xff]  ;;  %v7451_v11 = vld [vmem:[#allocation3 + $0xb8] sm:$0xff]  ;;  %v7450_v55 = vld [vmem:[#allocation3 + $0xb0] sm:$0xff] }
 0x408   : > { %v7441_v30 = vld [vmem:[#allocation3 + $0x68] sm:$0xff]  ;;  %v7443_v20 = vld [vmem:[#allocation3 + $0x78] sm:$0xff] }
 0x409   : > { %v10447_v41 = vpack.i.bf16 %v7346_v32, %v7362_v46  ;;  %v7442_v32 = vld [vmem:[#allocation3 + $0x70] sm:$0xff]  ;;  %v7433_v46 = vld [vmem:[#allocation3 + $0x28] sm:$0xff] }
 0x40b   : > { %10434 = vxpose.xlu0.b32.cont [8/16] (narrow) %v13724_v28, 8  ;;  %v7547_v28 = vld [vmem:[#allocation3 + $0x3b8] sm:$0xff] }
 0x40f   : > { %10436 = vxpose.xlu0.b32.cont [9/16] (narrow) %v10435_v10, 8  ;;  %v7497_v10 = vld [vmem:[#allocation3 + $0x228] sm:$0xff] }
 0x413   : > { %10438 = vxpose.xlu0.b32.cont [10/16] (narrow) %v10437_v54, 8  ;;  %v7530_v54 = vld [vmem:[#allocation3 + $0x330] sm:$0xff] }
 0x417   : > { %10440 = vxpose.xlu0.b32.cont [11/16] (narrow) %v10439_v25, 8  ;;  %v7466_v25 = vld [vmem:[#allocation3 + $0x130] sm:$0xff] }
 0x41b   : > { %10442 = vxpose.xlu0.b32.cont [12/16] (narrow) %v10441_v31, 8  ;;  %v7480_v31 = vld [vmem:[#allocation3 + $0x1a0] sm:$0xff] }
 0x41f   : > { %10444 = vxpose.xlu0.b32.cont [13/16] (narrow) %v10443_v57, 8  ;;  %v7440_v57 = vld [vmem:[#allocation3 + $0x60] sm:$0xff] }
 0x423   : > { %10446 = vxpose.xlu0.b32.cont [14/16] (narrow) %v10445_v0, 8  ;;  %v7448_v0 = vld [vmem:[#allocation3 + $0xa0] sm:$0xff] }
 0x427   : > { %10448 = vxpose.xlu0.b32.cont [15/16] (narrow) %v10447_v41, 8  ;;  %v7432_v41 = vld [vmem:[#allocation3 + $0x20] sm:$0xff] }
 0x42b   : > { %10450 = vxpose.xlu0.b32.end [16/16] (narrow) %v10449_v53, 8  ;;  %v7435_v53 = vld [vmem:[#allocation3 + $0x38] sm:$0xff] }
 0x46b   : > { %v10451_v63 = vpop.trf.xlu0 }
 0x46c   : > { %v13754_v4 = vunpack.i.h.bf16 %v10451_v63  ;;  %v10452_v50 = vunpack.i.l.bf16 %v10451_v63  ;;  %v7434_v63 = vld [vmem:[#allocation3 + $0x30] sm:$0xff] }
 0x46e   : > { %7748 = vmatprep.mubr.f32.mxu0 %v10452_v50  ;;  %7819 = vmatprep.mubr.f32.mxu1 %v10452_v50 }
 0x46f   : > { %7749 = vmatmul.mubr.f32.vlgmr.msra.gmra.mxu0 %v13754_v4  ;;  %7820 = vmatmul.mubr.f32.vlgmr.msra.gmra.mxu1 %v13754_v4 }
 0x470   : > { %7827 = vmatpush1.msra.mxu0 %v7552_v18  ;;  %7898 = vmatpush1.msra.mxu1 %v7554_v33  ;;  %v7683_v18 = vld [vmem:[#allocation3 + $0x7f8] sm:$0xff]  ;;  %v7680_v33 = vld [vmem:[#allocation3 + $0x7e0] sm:$0xff] }
 0x471   : > { %7828 = vmatprep.subr.mxu0 %v7545_v40  ;;  %7890 = vmatprep.mubr.f32.mxu0 %v10452_v50  ;;  %v7682_v40 = vld [vmem:[#allocation3 + $0x7f0] sm:$0xff] }
 0x472   : > { %7899 = vmatprep.subr.mxu1 %v7547_v28  ;;  %7961 = vmatprep.mubr.f32.mxu1 %v10452_v50  ;;  %v7681_v50 = vld [vmem:[#allocation3 + $0x7e8] sm:$0xff] }
 0x473   : > { %7829 = vmatpush1.msra.mxu0 %v7544_v61  ;;  %7900 = vmatpush1.msra.mxu1 %v7546_v9  ;;  %v7673_v28 = vld [vmem:[#allocation3 + $0x7a8] sm:$0xff]  ;;  %v7675_v61 = vld [vmem:[#allocation3 + $0x7b8] sm:$0xff]  ;;  %v7672_v9 = vld [vmem:[#allocation3 + $0x7a0] sm:$0xff] }
 0x474   : > { %7830 = vmatprep.subr.mxu0 %v7537_v16  ;;  %7901 = vmatprep.subr.mxu1 %v7539_v13  ;;  %v7674_v16 = vld [vmem:[#allocation3 + $0x7b0] sm:$0xff]  ;;  %v7665_v13 = vld [vmem:[#allocation3 + $0x768] sm:$0xff] }
 0x475   : > { %7831 = vmatpush1.msra.mxu0 %v7536_v49  ;;  %7902 = vmatpush1.msra.mxu1 %v7538_v62  ;;  %v7667_v49 = vld [vmem:[#allocation3 + $0x778] sm:$0xff]  ;;  %v7664_v62 = vld [vmem:[#allocation3 + $0x760] sm:$0xff] }
 0x476   : > { %7832 = vmatprep.subr.mxu0 %v7529_v3  ;;  %7903 = vmatprep.subr.mxu1 %v7531_v7  ;;  %v7666_v3 = vld [vmem:[#allocation3 + $0x770] sm:$0xff]  ;;  %v7657_v7 = vld [vmem:[#allocation3 + $0x728] sm:$0xff] }
 0x477   : > { %7833 = vmatpush1.msra.mxu0 %v7528_v12  ;;  %7904 = vmatpush1.msra.mxu1 %v7530_v54  ;;  %v7659_v12 = vld [vmem:[#allocation3 + $0x738] sm:$0xff]  ;;  %v7656_v54 = vld [vmem:[#allocation3 + $0x720] sm:$0xff] }
 0x478   : > { %7834 = vmatprep.subr.mxu0 %v7521_v42  ;;  %7905 = vmatprep.subr.mxu1 %v7523_v36  ;;  %v7658_v42 = vld [vmem:[#allocation3 + $0x730] sm:$0xff]  ;;  %v7649_v36 = vld [vmem:[#allocation3 + $0x6e8] sm:$0xff] }
 0x479   : > { %7835 = vmatpush1.msra.mxu0 %v7520_v17  ;;  %7906 = vmatpush1.msra.mxu1 %v7522_v29  ;;  %v7651_v17 = vld [vmem:[#allocation3 + $0x6f8] sm:$0xff]  ;;  %v7648_v29 = vld [vmem:[#allocation3 + $0x6e0] sm:$0xff] }
 0x47a   : > { %7836 = vmatprep.subr.mxu0 %v7513_v43  ;;  %7907 = vmatprep.subr.mxu1 %v7515_v48  ;;  %v7650_v43 = vld [vmem:[#allocation3 + $0x6f0] sm:$0xff]  ;;  %v7641_v48 = vld [vmem:[#allocation3 + $0x6a8] sm:$0xff] }
 0x47b   : > { %7837 = vmatpush1.msra.mxu0 %v7512_v27  ;;  %7908 = vmatpush1.msra.mxu1 %v7514_v19  ;;  %v7643_v27 = vld [vmem:[#allocation3 + $0x6b8] sm:$0xff]  ;;  %v7640_v19 = vld [vmem:[#allocation3 + $0x6a0] sm:$0xff] }
 0x47c   : > { %7838 = vmatprep.subr.mxu0 %v7505_v45  ;;  %7909 = vmatprep.subr.mxu1 %v7507_v23  ;;  %v7642_v45 = vld [vmem:[#allocation3 + $0x6b0] sm:$0xff]  ;;  %v7633_v23 = vld [vmem:[#allocation3 + $0x668] sm:$0xff] }
 0x47d   : > { %7839 = vmatpush1.msra.mxu0 %v7504_v21  ;;  %7910 = vmatpush1.msra.mxu1 %v7506_v15  ;;  %v7635_v21 = vld [vmem:[#allocation3 + $0x678] sm:$0xff]  ;;  %v7632_v15 = vld [vmem:[#allocation3 + $0x660] sm:$0xff] }
 0x47e   : > { %7840 = vmatprep.subr.mxu0 %v7497_v10  ;;  %7911 = vmatprep.subr.mxu1 %v7499_v47  ;;  %v7634_v10 = vld [vmem:[#allocation3 + $0x670] sm:$0xff]  ;;  %v7625_v47 = vld [vmem:[#allocation3 + $0x628] sm:$0xff] }
 0x47f   : > { %7841 = vmatpush1.msra.mxu0 %v7496_v37  ;;  %7912 = vmatpush1.msra.mxu1 %v7498_v6  ;;  %v7627_v37 = vld [vmem:[#allocation3 + $0x638] sm:$0xff]  ;;  %v7624_v6 = vld [vmem:[#allocation3 + $0x620] sm:$0xff] }
 0x480   : > { %7842 = vmatprep.subr.mxu0 %v7489_v39  ;;  %7913 = vmatprep.subr.mxu1 %v7491_v24  ;;  %v7626_v39 = vld [vmem:[#allocation3 + $0x630] sm:$0xff]  ;;  %v7617_v24 = vld [vmem:[#allocation3 + $0x5e8] sm:$0xff] }
 0x481   : > { %7843 = vmatpush1.msra.mxu0 %v7488_v35  ;;  %7914 = vmatpush1.msra.mxu1 %v7490_v26  ;;  %v7619_v35 = vld [vmem:[#allocation3 + $0x5f8] sm:$0xff]  ;;  %v7616_v26 = vld [vmem:[#allocation3 + $0x5e0] sm:$0xff] }
 0x482   : > { %7844 = vmatprep.subr.mxu0 %v7481_v22  ;;  %7915 = vmatprep.subr.mxu1 %v7483_v51  ;;  %v7618_v22 = vld [vmem:[#allocation3 + $0x5f0] sm:$0xff]  ;;  %v7609_v51 = vld [vmem:[#allocation3 + $0x5a8] sm:$0xff] }
 0x483   : > { %7845 = vmatpush1.msra.mxu0 %v7480_v31  ;;  %7916 = vmatpush1.msra.mxu1 %v7482_v56  ;;  %v7611_v31 = vld [vmem:[#allocation3 + $0x5b8] sm:$0xff]  ;;  %v7608_v56 = vld [vmem:[#allocation3 + $0x5a0] sm:$0xff] }
 0x484   : > { %7846 = vmatprep.subr.mxu0 %v7473_v59  ;;  %7917 = vmatprep.subr.mxu1 %v7475_v38  ;;  %v7610_v59 = vld [vmem:[#allocation3 + $0x5b0] sm:$0xff]  ;;  %v7601_v38 = vld [vmem:[#allocation3 + $0x568] sm:$0xff] }
 0x485   : > { %7847 = vmatpush1.msra.mxu0 %v7472_v14  ;;  %7918 = vmatpush1.msra.mxu1 %v7474_v52  ;;  %v7603_v14 = vld [vmem:[#allocation3 + $0x578] sm:$0xff]  ;;  %v7600_v52 = vld [vmem:[#allocation3 + $0x560] sm:$0xff] }
 0x486   : > { %7848 = vmatprep.subr.mxu0 %v7465_v44  ;;  %7919 = vmatprep.subr.mxu1 %v7467_v58  ;;  %v7602_v44 = vld [vmem:[#allocation3 + $0x570] sm:$0xff]  ;;  %v7593_v58 = vld [vmem:[#allocation3 + $0x528] sm:$0xff] }
 0x487   : > { %7849 = vmatpush1.msra.mxu0 %v7464_v8  ;;  %7920 = vmatpush1.msra.mxu1 %v7466_v25  ;;  %v7595_v8 = vld [vmem:[#allocation3 + $0x538] sm:$0xff]  ;;  %v7592_v25 = vld [vmem:[#allocation3 + $0x520] sm:$0xff] }
 0x488   : > { %7850 = vmatprep.subr.mxu0 %v7457_v1  ;;  %7921 = vmatprep.subr.mxu1 %v7459_v60  ;;  %v7594_v1 = vld [vmem:[#allocation3 + $0x530] sm:$0xff]  ;;  %v7585_v60 = vld [vmem:[#allocation3 + $0x4e8] sm:$0xff] }
 0x489   : > { %7851 = vmatpush1.msra.mxu0 %v7456_v2  ;;  %7922 = vmatpush1.msra.mxu1 %v7458_v34  ;;  %v7587_v2 = vld [vmem:[#allocation3 + $0x4f8] sm:$0xff]  ;;  %v7584_v34 = vld [vmem:[#allocation3 + $0x4e0] sm:$0xff] }
 0x48a   : > { %7852 = vmatprep.subr.mxu0 %v7449_v5  ;;  %7923 = vmatprep.subr.mxu1 %v7451_v11  ;;  %v7586_v5 = vld [vmem:[#allocation3 + $0x4f0] sm:$0xff]  ;;  %v7577_v11 = vld [vmem:[#allocation3 + $0x4a8] sm:$0xff] }
 0x48b   : > { %7853 = vmatpush1.msra.mxu0 %v7448_v0  ;;  %7924 = vmatpush1.msra.mxu1 %v7450_v55  ;;  %v7579_v0 = vld [vmem:[#allocation3 + $0x4b8] sm:$0xff]  ;;  %v7576_v55 = vld [vmem:[#allocation3 + $0x4a0] sm:$0xff] }
 0x48c   : > { %7854 = vmatprep.subr.mxu0 %v7441_v30  ;;  %7925 = vmatprep.subr.mxu1 %v7443_v20  ;;  %v7578_v30 = vld [vmem:[#allocation3 + $0x4b0] sm:$0xff]  ;;  %v7569_v20 = vld [vmem:[#allocation3 + $0x468] sm:$0xff] }
 0x48d   : > { %7855 = vmatpush1.msra.mxu0 %v7440_v57  ;;  %7926 = vmatpush1.msra.mxu1 %v7442_v32  ;;  %v7571_v57 = vld [vmem:[#allocation3 + $0x478] sm:$0xff]  ;;  %v7568_v32 = vld [vmem:[#allocation3 + $0x460] sm:$0xff] }
 0x48e   : > { %7856 = vmatprep.subr.mxu0 %v7433_v46  ;;  %7927 = vmatprep.subr.mxu1 %v7435_v53  ;;  %v7570_v46 = vld [vmem:[#allocation3 + $0x470] sm:$0xff]  ;;  %v7561_v53 = vld [vmem:[#allocation3 + $0x428] sm:$0xff] }
 0x48f   : > { %7857 = vmatpush1.msra.mxu0 %v7432_v41  ;;  %7928 = vmatpush1.msra.mxu1 %v7434_v63  ;;  %v7563_v41 = vld [vmem:[#allocation3 + $0x438] sm:$0xff]  ;;  %v7560_v63 = vld [vmem:[#allocation3 + $0x420] sm:$0xff] }
 0x490   : > { %7858 = vmatprep.subr.mxu0 %v7681_v50  ;;  %7929 = vmatprep.subr.mxu1 %v7683_v18  ;;  %v7562_v50 = vld [vmem:[#allocation3 + $0x430] sm:$0xff] }
 0x491   : > { %7859 = vmatpush2.msra.mxu0 %v7680_v33  ;;  %7930 = vmatpush2.msra.mxu1 %v7682_v40 }
 0x492   : > { %7860 = vmatprep.subr.mxu0 %v7673_v28  ;;  %7931 = vmatprep.subr.mxu1 %v7675_v61 }
 0x493   : > { %7861 = vmatpush2.msra.mxu0 %v7672_v9  ;;  %7932 = vmatpush2.msra.mxu1 %v7674_v16 }
 0x494   : > { %7862 = vmatprep.subr.mxu0 %v7665_v13  ;;  %7933 = vmatprep.subr.mxu1 %v7667_v49 }
 0x495   : > { %7863 = vmatpush2.msra.mxu0 %v7664_v62  ;;  %7934 = vmatpush2.msra.mxu1 %v7666_v3 }
 0x496   : > { %7864 = vmatprep.subr.mxu0 %v7657_v7  ;;  %7935 = vmatprep.subr.mxu1 %v7659_v12 }
 0x497   : > { %7865 = vmatpush2.msra.mxu0 %v7656_v54  ;;  %7936 = vmatpush2.msra.mxu1 %v7658_v42 }
 0x498   : > { %7866 = vmatprep.subr.mxu0 %v7649_v36  ;;  %7937 = vmatprep.subr.mxu1 %v7651_v17 }
 0x499   : > { %7867 = vmatpush2.msra.mxu0 %v7648_v29  ;;  %7938 = vmatpush2.msra.mxu1 %v7650_v43 }
 0x49a   : > { %7868 = vmatprep.subr.mxu0 %v7641_v48  ;;  %7939 = vmatprep.subr.mxu1 %v7643_v27 }
 0x49b   : > { %7869 = vmatpush2.msra.mxu0 %v7640_v19  ;;  %7940 = vmatpush2.msra.mxu1 %v7642_v45 }
 0x49c   : > { %7870 = vmatprep.subr.mxu0 %v7633_v23  ;;  %7941 = vmatprep.subr.mxu1 %v7635_v21 }
 0x49d   : > { %7871 = vmatpush2.msra.mxu0 %v7632_v15  ;;  %7942 = vmatpush2.msra.mxu1 %v7634_v10 }
 0x49e   : > { %7872 = vmatprep.subr.mxu0 %v7625_v47  ;;  %7943 = vmatprep.subr.mxu1 %v7627_v37 }
 0x49f   : > { %7873 = vmatpush2.msra.mxu0 %v7624_v6  ;;  %7944 = vmatpush2.msra.mxu1 %v7626_v39 }
 0x4a0   : > { %7874 = vmatprep.subr.mxu0 %v7617_v24  ;;  %7945 = vmatprep.subr.mxu1 %v7619_v35 }
 0x4a1   : > { %7875 = vmatpush2.msra.mxu0 %v7616_v26  ;;  %7946 = vmatpush2.msra.mxu1 %v7618_v22 }
 0x4a2   : > { %7876 = vmatprep.subr.mxu0 %v7609_v51  ;;  %7947 = vmatprep.subr.mxu1 %v7611_v31 }
 0x4a3   : > { %7877 = vmatpush2.msra.mxu0 %v7608_v56  ;;  %7948 = vmatpush2.msra.mxu1 %v7610_v59 }
 0x4a4   : > { %7878 = vmatprep.subr.mxu0 %v7601_v38  ;;  %7949 = vmatprep.subr.mxu1 %v7603_v14 }
 0x4a5   : > { %7879 = vmatpush2.msra.mxu0 %v7600_v52  ;;  %7950 = vmatpush2.msra.mxu1 %v7602_v44 }
 0x4a6   : > { %7880 = vmatprep.subr.mxu0 %v7593_v58  ;;  %7951 = vmatprep.subr.mxu1 %v7595_v8 }
 0x4a7   : > { %7881 = vmatpush2.msra.mxu0 %v7592_v25  ;;  %7952 = vmatpush2.msra.mxu1 %v7594_v1 }
 0x4a8   : > { %7882 = vmatprep.subr.mxu0 %v7585_v60  ;;  %7953 = vmatprep.subr.mxu1 %v7587_v2 }
 0x4a9   : > { %7883 = vmatpush2.msra.mxu0 %v7584_v34  ;;  %7954 = vmatpush2.msra.mxu1 %v7586_v5 }
 0x4aa   : > { %7884 = vmatprep.subr.mxu0 %v7577_v11  ;;  %7955 = vmatprep.subr.mxu1 %v7579_v0 }
 0x4ab   : > { %7885 = vmatpush2.msra.mxu0 %v7576_v55  ;;  %7956 = vmatpush2.msra.mxu1 %v7578_v30 }
 0x4ac   : > { %7886 = vmatprep.subr.mxu0 %v7569_v20  ;;  %7957 = vmatprep.subr.mxu1 %v7571_v57 }
 0x4ad   : > { %7887 = vmatpush2.msra.mxu0 %v7568_v32  ;;  %7958 = vmatpush2.msra.mxu1 %v7570_v46 }
 0x4ae   : > { %7888 = vmatprep.subr.mxu0 %v7561_v53  ;;  %7959 = vmatprep.subr.mxu1 %v7563_v41 }
 0x4af   : > { %7889 = vmatpush2.msra.mxu0 %v7560_v63  ;;  %7960 = vmatpush2.msra.mxu1 %v7562_v50 }
 0x4b0   : > { %7891 = vmatmul.mubr.f32.vlgmr.msra.gmra.mxu0 %v13754_v4  ;;  %7962 = vmatmul.mubr.f32.vlgmr.msra.gmra.mxu1 %v13754_v4 }
 0x52f   : > { %v7750_v18 = vpop.f32.mrf.mxu0  ;;  %v7821_v33 = vpop.f32.mrf.mxu1 }
 0x530   : > { %7968 = vst [vmem:[%s259_s19] sm:$0xff] %v7750_v18  ;;  %7970 = vst [vmem:[%s259_s19 + $0x10] sm:$0xff] %v7821_v33 }
 0x531   : > { %v7752_v40 = vpop.f32.mrf.mxu0  ;;  %v7823_v28 = vpop.f32.mrf.mxu1 }
 0x532   : > { %7969 = vst [vmem:[%s259_s19 + $0x8] sm:$0xff] %v7752_v40  ;;  %7971 = vst [vmem:[%s259_s19 + $0x18] sm:$0xff] %v7823_v28 }
 0x570   : > { %v7892_v61 = vpop.f32.mrf.mxu0  ;;  %v7963_v9 = vpop.f32.mrf.mxu1 }
 0x571   : > { %7972 = vst [vmem:[%s259_s19 + $0x20] sm:$0xff] %v7892_v61  ;;  %7974 = vst [vmem:[%s259_s19 + $0x30] sm:$0xff] %v7963_v9 }
 0x572   : > { %v7894_v4 = vpop.f32.mrf.mxu0  ;;  %v7965_v16 = vpop.f32.mrf.mxu1 }
 0x573   : > { %7973 = vst [vmem:[%s259_s19 + $0x28] sm:$0xff] %v7894_v4  ;;  %7975 = vst [vmem:[%s259_s19 + $0x38] sm:$0xff] %v7965_v16 }
 0x574   : > { %10495 = shalt.err (!%p10492_p0)
}
 0x575   : > { %s10496_s14 = scalar_lea.hbm %s13765_s10, 1024  ;;  %s10500_s17 = scalar_lea.hbm %s13812_s6, 2048 }
 0x576   : > { %p10497_p1 = scmp.ne.s32.totalorder %s13765_s10, %s10496_s14  ;;  %p10501_p4 = scmp.lt.s32.totalorder %s13765_s10, %s13812_s6 }
 0x577   : > { %p10502_p7 = scmp.lt.s32.totalorder %s10500_s17, %s10496_s14 }
 0x578   : > { %p10498_p2 = pnand %p10497_p1, %p10626_p5 }
 0x579   : > { %p10503_p8 = por %p10502_p7, %p10501_p4 }
 0x57a   : > { %p10499_p3 = pneg %p10498_p2 }
 0x57c   : > { %p10504_p6 = pnand %p10503_p8, %p10499_p3 }
 0x57e   : > { %10507 = shalt.err (!%p10504_p6)
}
 0x57f   : > { %10370 = dma.vmem_to_hbm [thread:$0]  (%p10626_p5), %s13767_s28, 1024, %s13765_s10, %s7977_s25  }
 0x580 PF: > { %p10382_p9 = scmp.ge.s32.totalorder %s10546_s24, 2  ;;  %s8003_s20 = sand.u32 1, %s10534_s21  }
 0x581   : > { %p14245_p10 = scmp.ne.s32.totalorder %s13881_s8, 0  ;;  %s8004_s29 = scalar_lea.sflag [#allocation5], %s8003_s20 }
 0x583   : > { %p10377_p11 = pnand %p10382_p9, %p14245_p10 }
 0x585   : > { %p10378_p12 = pneg %p10377_p11 }
 0x587   : > { %10529 = dma.done.wait (%p10378_p12), %s8004_s29, 1024  }
 0x588   : > { %10531 = vsyncadd (%p10378_p12), %s8004_s29, 4294966272  ;;  %p17_p13 = scmp.ge.s32.totalorder %s10613_s27, 4   ;;  %s14246_s21 = smov %s10538_s22 }
 0x589   : > { %s14247_s22 = smov %s10542_s23  ;;  %s14248_s23 = smov %s10624_s30 }
 0x58a   : > { %s14249_s24 = smov %s10613_s27  ;;  %19 = sbr.rel (!%p17_p13) target bundleno = 4 (0x4), region = 104 }
 0x58f   :  { %8009 = vsyncpa [#allocation4], 1 }
 0x590   :  { %8011 = vsyncpa [#allocation4 + $0x1], 1 }
 0x591   :  { %8012 = vsyncpa [#allocation5], 1 }
 0x592   :  { %8014 = vsyncpa [#allocation5 + $0x1], 1 }

</bundles_post_ra>
